<compile_context>
chip_gen: v7x
topology: tpu7x:2x2x1
jax: 0.10.0
libtpu: 0.0.40
codegen_flags: <defaults>
</compile_context>

<pallas_src>
import jax
import jax.numpy as jnp
from jax.experimental import pallas as pl
from jax.experimental.pallas import tpu as pltpu


LANE = 128       # vreg lane width
SUBLANE = 8      # vreg sublane count (f32)

# Timesteps per grid step on the serial time axis (16-32 is the production
# sweet spot; bounded by the VMEM formula in gru_last_hidden).
GRU_TIME_CHUNK = 16
# Vocabulary tile for the similarity matmul (512-2048; keep
# 2*tile_v*D*2B + B*tile_v*4B well under the scoped VMEM limit).
LOGITS_TILE_V = 512


# -----------------------------------------------------------------------------
# Small helpers
# -----------------------------------------------------------------------------
def _round_up(n, m):
    return ((n + m - 1) // m) * m


def _pad_axis(x, axis, target):
    axis = axis % x.ndim
    pad = target - x.shape[axis]
    if pad <= 0:
        return x
    widths = [(0, 0)] * x.ndim
    widths[axis] = (0, pad)
    return jnp.pad(x, widths)


def _fuse_gates(per_gate, dp):
    """(3, ..., D) gate-major -> (..., 3*Dp): each gate zero-padded to Dp on the
    last axis then concatenated, so in-kernel gate slices land on lane
    multiples 0 / Dp / 2Dp."""
    return jnp.concatenate([_pad_axis(per_gate[g], -1, dp) for g in range(3)],
                           axis=-1)


def _resident_spec(block_shape, index_map):
    """BlockSpec for a block whose index is (near-)constant over the grid:
    single-buffer it to save VMEM.  Falls back to a plain BlockSpec if
    pipeline_mode / pl.Buffered is unavailable in this JAX version."""
    if hasattr(pl, "Buffered"):
        try:
            return pl.BlockSpec(block_shape, index_map,
                                pipeline_mode=pl.Buffered(1))
        except (TypeError, ValueError):
            pass
    return pl.BlockSpec(block_shape, index_map)


# -----------------------------------------------------------------------------
# GRU recurrence kernel (single layer, PyTorch gate order r | z | n).
# Consumes precomputed fused input gates gx = x @ W_ih + b_ih + [b_hr|b_hz|0]
# (bf16, gates at lane-aligned offsets 0/Dp/2Dp).  Emits only the last hidden
# state per row (selected by the `tgt` time index).
# -----------------------------------------------------------------------------
def _gru_kernel(tgt_ref, gx_ref, wh_ref, bhn_ref, out_ref, h_ref):
    t_chunk = gx_ref.shape[0]
    d = out_ref.shape[1]
    t_idx = pl.program_id(1)

    @pl.when(t_idx == 0)
    def _init():
        h_ref[...] = jnp.zeros_like(h_ref)
        out_ref[...] = jnp.zeros_like(out_ref)

    # Hoisted out of the timestep loop: constant weights / bias / targets.
    wh = wh_ref[...]            # (Dp, 3Dp) bf16, fused gate weights
    bhn = bhn_ref[...]          # (1, Dp) f32 (only the n-gate hidden bias stays inside)
    tgt = tgt_ref[...]          # (tb, 1) int32; jnp.where broadcasts it (no (B,D) blowup)
    t0 = t_idx * t_chunk

    def step(i, carry):
        h, out = carry                                        # f32 carries
        gx_t = gx_ref[i]                                      # (tb, 3Dp) bf16
        # Single fused (tb, Dp) @ (Dp, 3Dp) MXU call on the serial critical path.
        gh = jnp.dot(h.astype(wh.dtype), wh,
                     preferred_element_type=jnp.float32)      # (tb, 3Dp) f32
        r = jax.nn.sigmoid(gx_t[:, :d].astype(jnp.float32) + gh[:, :d])
        z = jax.nn.sigmoid(gx_t[:, d:2 * d].astype(jnp.float32) + gh[:, d:2 * d])
        n = jnp.tanh(gx_t[:, 2 * d:].astype(jnp.float32) + r * (gh[:, 2 * d:] + bhn))
        h_new = (1.0 - z) * n + z * h
        # Capture the hidden state for rows whose last valid step is t0 + i.
        out_new = jnp.where(tgt == t0 + i, h_new, out)
        return h_new, out_new

    h_fin, out_fin = jax.lax.fori_loop(
        0, t_chunk, step, (h_ref[...], out_ref[...]), unroll=True)
    h_ref[...] = h_fin
    out_ref[...] = out_fin


def gru_last_hidden(gx, wh_f, bhn, tgt, *, time_chunk=GRU_TIME_CHUNK,
                    batch_tile=None):
    """gx: (Sp, Bp, 3*Dp) bf16 precomputed input gates (b_ih + b_hh[r,z] folded).
    wh_f: (Dp, 3*Dp) bf16 fused hidden weights.  bhn: (1, Dp) f32 n-gate hidden
    bias.  tgt: (Bp, 1) int32 last-valid-timestep index per row.
    Returns the (Bp, Dp) f32 hidden state at `tgt` for each row."""
    sp, bp, k3 = gx.shape
    dp = k3 // 3
    t_chunk = min(time_chunk, sp)
    assert sp % t_chunk == 0, "pad the time axis to a multiple of time_chunk"
    tb = bp if batch_tile is None else min(batch_tile, bp)
    assert bp % tb == 0 and tb % SUBLANE == 0
    grid = (bp // tb, sp // t_chunk)   # (batch tiles [parallel], time chunks [serial])

    # Explicit VMEM budget: gx double-buffered, W_hh single-buffered, out + h
    # resident.  Sized per-call so the same code works on v5e/v6e/v7x.
    vmem_est = (2 * t_chunk * tb * 3 * dp * gx.dtype.itemsize   # gx stream
                + 3 * dp * dp * wh_f.dtype.itemsize             # fused W_hh
                + 3 * tb * dp * 4                               # out + h scratch
                + dp * 4 + tb * 4)
    vmem_limit = int(min(128 << 20, max(2 * vmem_est + (4 << 20), 16 << 20)))

    return pl.pallas_call(
        _gru_kernel,
        out_shape=jax.ShapeDtypeStruct((bp, dp), jnp.float32),
        grid_spec=pltpu.PrefetchScalarGridSpec(
            num_scalar_prefetch=0,
            grid=grid,
            in_specs=[
                _resident_spec((tb, 1), lambda b, t: (b, 0)),               # tgt
                pl.BlockSpec((t_chunk, tb, 3 * dp), lambda b, t: (t, b, 0)),  # gx
                _resident_spec((dp, 3 * dp), lambda b, t: (0, 0)),          # W_hh fused
                _resident_spec((1, dp), lambda b, t: (0, 0)),               # b_hh[n]
            ],
            # Same block index for every time chunk -> grid-resident accumulator.
            out_specs=pl.BlockSpec((tb, dp), lambda b, t: (b, 0)),
            scratch_shapes=[pltpu.VMEM((tb, dp), jnp.float32)],             # h carry
        ),
        compiler_params=pltpu.CompilerParams(
            # batch rows are independent (shards across v7x's two TCs);
            # the time axis is the serial recurrence.
            dimension_semantics=("parallel", "arbitrary"),
            vmem_limit_bytes=vmem_limit),
    )(tgt, gx, wh_f, bhn)


# -----------------------------------------------------------------------------
# Dot-product similarity, tiled over the vocabulary.
# logits[b, v] = sum_d query[b, d] * item_emb[v, d]   (no transpose in-kernel)
# -----------------------------------------------------------------------------
def _logits_kernel(q_ref, e_ref, o_ref):
    o_ref[...] = jax.lax.dot_general(
        q_ref[...], e_ref[...],
        dimension_numbers=(((1,), (1,)), ((), ())),
        preferred_element_type=jnp.float32)


def similarity_logits(query, item_emb, *, tile_v=LOGITS_TILE_V):
    """query: (Bp, Dp) bf16, item_emb: (V, Dp) bf16 -> logits (Bp, V) f32."""
    bp, dp = query.shape
    v = item_emb.shape[0]
    tile_v = min(tile_v, v)
    grid = (pl.cdiv(v, tile_v),)

    vmem_est = (2 * tile_v * dp * item_emb.dtype.itemsize   # streamed item tiles
                + bp * dp * query.dtype.itemsize            # resident query
                + 2 * bp * tile_v * 4)                      # output tiles
    vmem_limit = int(min(128 << 20, max(2 * vmem_est + (4 << 20), 16 << 20)))

    return pl.pallas_call(
        _logits_kernel,
        out_shape=jax.ShapeDtypeStruct((bp, v), jnp.float32),
        grid_spec=pltpu.PrefetchScalarGridSpec(
            num_scalar_prefetch=0,
            grid=grid,
            in_specs=[
                _resident_spec((bp, dp), lambda j: (0, 0)),      # query (resident)
                pl.BlockSpec((tile_v, dp), lambda j: (j, 0)),    # item tile (streamed)
            ],
            out_specs=pl.BlockSpec((bp, tile_v), lambda j: (0, j)),
        ),
        compiler_params=pltpu.CompilerParams(
            dimension_semantics=("parallel",),   # V tiles shard across cores
            vmem_limit_bytes=vmem_limit),
    )(query, item_emb)


# -----------------------------------------------------------------------------
# Parameters (gate-major natural layout; gate axis = [r, z, n]; weights stored
# as (in, out) per gate relative to PyTorch's (3H, In) storage).
# -----------------------------------------------------------------------------
def init_params(key, vocab_size, embedding_dim):
    d = embedding_dim
    ks = jax.random.split(key, 5)
    scale = 1.0 / jnp.sqrt(d)
    return {
        "emb": jax.random.normal(ks[0], (vocab_size, d), jnp.float32) * 0.1,
        "wx": jax.random.uniform(ks[1], (3, d, d), jnp.float32, -scale, scale),
        "wh": jax.random.uniform(ks[2], (3, d, d), jnp.float32, -scale, scale),
        "bx": jax.random.uniform(ks[3], (3, 1, d), jnp.float32, -scale, scale),
        "bh": jax.random.uniform(ks[4], (3, 1, d), jnp.float32, -scale, scale),
    }


# -----------------------------------------------------------------------------
# Forward pass (glue in plain JAX around the two Pallas kernels).
# -----------------------------------------------------------------------------
@jax.jit
def gru4rec_forward(params, input_ids, input_mask):
    """input_ids: (B, S) int32, input_mask: (B, S) int32 -> (logits (B, V), aux)."""
    b, s = input_ids.shape
    emb = params["emb"]
    v, d = emb.shape
    dp = _round_up(d, LANE)                 # lane-aligned hidden width
    bp = _round_up(b, SUBLANE)              # sublane-aligned batch
    t_chunk = min(GRU_TIME_CHUNK, s)
    sp = _round_up(s, t_chunk)

    # Embedding lookup + (identity, p=0.0) embedding dropout.
    ctx = jnp.take(emb, input_ids, axis=0)                         # (B, S, D)
    x = jnp.transpose(ctx, (1, 0, 2)).astype(jnp.float32)          # (S, B, D)
    x = _pad_axis(_pad_axis(x, 1, bp), 2, dp)                      # (S, Bp, Dp)

    # Fused, lane-padded GRU weights.  b_ih and the r/z parts of b_hh fold into
    # the precomputed input gates; only b_hh[n] stays inside the recurrence
    # (it sits under the r* multiply).
    wx_f = _pad_axis(_fuse_gates(params["wx"], dp), 0, dp)          # (Dp, 3Dp) f32
    wh_f = _pad_axis(_fuse_gates(params["wh"], dp), 0, dp).astype(jnp.bfloat16)
    b_rzn = jnp.stack([params["bx"][0] + params["bh"][0],
                       params["bx"][1] + params["bh"][1],
                       params["bx"][2]])                            # (3, 1, D)
    b_f = _fuse_gates(b_rzn, dp)                                    # (1, 3Dp)
    bhn = _pad_axis(params["bh"][2], -1, dp)                        # (1, Dp) f32

    # Hoisted input projection for ALL timesteps in one batched matmul; stored
    # bf16 to halve the HBM stream into the serial GRU kernel.
    gx = jnp.einsum("sbd,dk->sbk", x, wx_f,
                    preferred_element_type=jnp.float32) + b_f       # (S, Bp, 3Dp)
    gx = _pad_axis(gx, 0, sp).astype(jnp.bfloat16)                  # (Sp, Bp, 3Dp)

    # Last valid timestep per row; matches torch negative indexing (all-zero
    # mask -> index -1 -> last timestep) via (len - 1) mod S.
    lengths = jnp.sum(input_mask, axis=1).astype(jnp.int32)         # (B,)
    tgt = jnp.mod(lengths - 1, s).astype(jnp.int32).reshape(b, 1)
    tgt = _pad_axis(tgt, 0, bp)                                     # (Bp, 1)

    # On v7x, pass batch_tile=bp // 2 to shard the recurrence across both TCs.
    last_hidden = gru_last_hidden(gx, wh_f, bhn, tgt,
                                  time_chunk=t_chunk)               # (Bp, Dp) f32

    # Dot-product similarity against the full (lane-padded, bf16) item table.
    emb_p = _pad_axis(emb, 1, dp).astype(jnp.bfloat16)              # (V, Dp)
    logits = similarity_logits(last_hidden.astype(jnp.bfloat16), emb_p)  # (Bp, V)
    logits = logits[:b]
    # TODO(synk): SimilarityModule aux losses / user_id conditioning are
    # undefined upstream; plain dot-product similarity with no aux losses.
    aux_losses = {}
    return logits, aux_losses


# -----------------------------------------------------------------------------
# Pure-JAX f32 reference (for validation).
# -----------------------------------------------------------------------------
def gru_ref(x_sbd, wx, wh, bx, bh):
    s, b, d = x_sbd.shape

    def step(h, x):
        r = jax.nn.sigmoid(x @ wx[0] + bx[0] + h @ wh[0] + bh[0])
        z = jax.nn.sigmoid(x @ wx[1] + bx[1] + h @ wh[1] + bh[1])
        n = jnp.tanh(x @ wx[2] + bx[2] + r * (h @ wh[2] + bh[2]))
        h_new = (1.0 - z) * n + z * h
        return h_new, h_new

    _, outs = jax.lax.scan(step, jnp.zeros((b, d), jnp.float32), x_sbd)
    return outs


def forward_ref(params, input_ids, input_mask):
    b, s = input_ids.shape
    ctx = jnp.take(params["emb"], input_ids, axis=0)
    x_sbd = jnp.transpose(ctx, (1, 0, 2)).astype(jnp.float32)
    outs = gru_ref(x_sbd, params["wx"], params["wh"], params["bx"], params["bh"])
    lens = jnp.sum(input_mask, axis=1).astype(jnp.int32)
    tgt = jnp.mod(lens - 1, s)
    last = outs[tgt, jnp.arange(b), :]
    return last @ params["emb"].T


if __name__ == "__main__":
    VOCAB = 512
    EMBED_DIM = 32
    BATCH = 2
    SEQ = 24   # > GRU_TIME_CHUNK so the cross-chunk hidden-state carry is exercised

    key = jax.random.PRNGKey(0)
    k_params, k_ids = jax.random.split(key)

    params = init_params(k_params, VOCAB, EMBED_DIM)

    input_ids = jax.random.randint(k_ids, (BATCH, SEQ), 0, VOCAB, dtype=jnp.int32)
    # Variable-length sequences via mask (lengths: 24 and 10).
    seq_lengths = jnp.array([SEQ, 10], dtype=jnp.int32)
    input_mask = (jnp.arange(SEQ)[None, :] < seq_lengths[:, None]).astype(jnp.int32)

    logits, aux_losses = gru4rec_forward(params, input_ids, input_mask)
    logits = jax.block_until_ready(logits)

    # Validate against the pure-f32 JAX reference (bf16 matmul operands with
    # f32 accumulation in the kernels -> loosened tolerance).
    ref = forward_ref(params, input_ids, input_mask)
    assert logits.shape == (BATCH, VOCAB)
    assert jnp.allclose(logits, ref, atol=1e-2, rtol=5e-2), "mismatch vs reference"

    print("KERNEL_OK")
</pallas_src>

<mosaic_0001>
module attributes {stable_mosaic.version = 11 : i64} {
  func.func @_logits_kernel(%arg0: i32, %arg1: memref<8x128xbf16, #tpu.memory_space<vmem>>, %arg2: memref<512x128xbf16, #tpu.memory_space<vmem>>, %arg3: memref<8x512xf32, #tpu.memory_space<vmem>>) attributes {dimension_semantics = [#tpu.dimension_semantics<parallel>], iteration_bounds = array<i64: 1>, scalar_prefetch = 0 : i64, scratch_operands = 0 : i64, tpu.core_type = #tpu.core_type<tc>, window_params = [{pipeline_mode = #tpu.pipeline_mode<synchronous>, transform_indices = @transform_0, window_bounds = array<i64: 8, 128>}, {transform_indices = @transform_1, window_bounds = array<i64: 512, 128>}, {transform_indices = @transform_2, window_bounds = array<i64: 8, 512>}]} {
    %c0 = arith.constant 0 : index
    %c0_0 = arith.constant 0 : index
    %0 = vector.load %arg1[%c0, %c0_0] : memref<8x128xbf16, #tpu.memory_space<vmem>>, vector<8x128xbf16>
    %c0_1 = arith.constant 0 : index
    %c0_2 = arith.constant 0 : index
    %1 = vector.load %arg2[%c0_1, %c0_2] : memref<512x128xbf16, #tpu.memory_space<vmem>>, vector<512x128xbf16>
    %cst = arith.constant dense<0.000000e+00> : vector<8x512xf32>
    %2 = tpu.matmul %0, %1, %cst {dimension_numbers = #tpu.dot_dimension_numbers<[1], [1], [0], [0], [0, 0, 1, 0], [], []>} : vector<8x128xbf16>, vector<512x128xbf16>, vector<8x512xf32> -> vector<8x512xf32>
    %c0_3 = arith.constant 0 : index
    %c0_4 = arith.constant 0 : index
    %3 = vector.load %arg3[%c0_3, %c0_4] : memref<8x512xf32, #tpu.memory_space<vmem>>, vector<8x512xf32>
    tpu.vector_store %arg3[%c0_3, %c0_4], %2 {strides = array<i32>} : memref<8x512xf32, #tpu.memory_space<vmem>>, vector<8x512xf32>,
    return
  }
  func.func @transform_0(%arg0: i32) -> (i32, i32) {
    %c0_i32 = arith.constant 0 : i32
    %c0_i32_0 = arith.constant 0 : i32
    %c0_i32_1 = arith.constant 0 : i32
    return %c0_i32, %c0_i32_0 : i32, i32
  }
  func.func @transform_1(%arg0: i32) -> (i32, i32) {
    %c0_i32 = arith.constant 0 : i32
    %c0_i32_0 = arith.constant 0 : i32
    return %arg0, %c0_i32 : i32, i32
  }
  func.func @transform_2(%arg0: i32) -> (i32, i32) {
    %c0_i32 = arith.constant 0 : i32
    %c0_i32_0 = arith.constant 0 : i32
    return %c0_i32, %arg0 : i32, i32
  }
}

module attributes {stable_mosaic.version = 11 : i64} {
  func.func @_gru_kernel(%arg0: i32, %arg1: i32, %arg2: memref<8x1xi32, #tpu.memory_space<vmem>>, %arg3: memref<16x8x384xbf16, #tpu.memory_space<vmem>>, %arg4: memref<128x384xbf16, #tpu.memory_space<vmem>>, %arg5: memref<1x128xf32, #tpu.memory_space<vmem>>, %arg6: memref<8x128xf32, #tpu.memory_space<vmem>>, %arg7: memref<8x128xf32, #tpu.memory_space<vmem>>) attributes {dimension_semantics = [#tpu.dimension_semantics<parallel>, #tpu.dimension_semantics<arbitrary>], iteration_bounds = array<i64: 1, 2>, scalar_prefetch = 0 : i64, scratch_operands = 1 : i64, tpu.core_type = #tpu.core_type<tc>, window_params = [{pipeline_mode = #tpu.pipeline_mode<synchronous>, transform_indices = @transform_0, window_bounds = array<i64: 8, 1>}, {transform_indices = @transform_1, window_bounds = array<i64: 16, 8, 384>}, {pipeline_mode = #tpu.pipeline_mode<synchronous>, transform_indices = @transform_2, window_bounds = array<i64: 128, 384>}, {pipeline_mode = #tpu.pipeline_mode<synchronous>, transform_indices = @transform_3, window_bounds = array<i64: 1, 128>}, {transform_indices = @transform_4, window_bounds = array<i64: 8, 128>}]} {
    %c0_i32 = arith.constant 0 : i32
    %0 = arith.cmpi eq, %arg1, %c0_i32 : i32
    %1 = arith.extui %0 : i1 to i32
    %c0_i32_0 = arith.constant 0 : i32
    %2 = arith.cmpi ne, %1, %c0_i32_0 : i32
    scf.if %2 {
      %cst_111 = arith.constant 0.000000e+00 : f32
      %683 = vector.broadcast %cst_111 : f32 to vector<8x128xf32>
      %c0_112 = arith.constant 0 : index
      %c0_113 = arith.constant 0 : index
      %684 = vector.load %arg7[%c0_112, %c0_113] : memref<8x128xf32, #tpu.memory_space<vmem>>, vector<8x128xf32>
      tpu.vector_store %arg7[%c0_112, %c0_113], %683 {strides = array<i32>} : memref<8x128xf32, #tpu.memory_space<vmem>>, vector<8x128xf32>,
      %cst_114 = arith.constant 0.000000e+00 : f32
      %685 = vector.broadcast %cst_114 : f32 to vector<8x128xf32>
      %c0_115 = arith.constant 0 : index
      %c0_116 = arith.constant 0 : index
      %686 = vector.load %arg6[%c0_115, %c0_116] : memref<8x128xf32, #tpu.memory_space<vmem>>, vector<8x128xf32>
      tpu.vector_store %arg6[%c0_115, %c0_116], %685 {strides = array<i32>} : memref<8x128xf32, #tpu.memory_space<vmem>>, vector<8x128xf32>,
    } else {
    }
    %c0 = arith.constant 0 : index
    %c0_1 = arith.constant 0 : index
    %3 = vector.load %arg4[%c0, %c0_1] : memref<128x384xbf16, #tpu.memory_space<vmem>>, vector<128x384xbf16>
    %c0_2 = arith.constant 0 : index
    %c0_3 = arith.constant 0 : index
    %4 = vector.load %arg5[%c0_2, %c0_3] : memref<1x128xf32, #tpu.memory_space<vmem>>, vector<1x128xf32>
    %c0_4 = arith.constant 0 : index
    %c0_5 = arith.constant 0 : index
    %5 = vector.load %arg2[%c0_4, %c0_5] : memref<8x1xi32, #tpu.memory_space<vmem>>, vector<8x1xi32>
    %c16_i32 = arith.constant 16 : i32
    %6 = arith.muli %arg1, %c16_i32 : i32
    %c0_6 = arith.constant 0 : index
    %c0_7 = arith.constant 0 : index
    %7 = vector.load %arg7[%c0_6, %c0_7] : memref<8x128xf32, #tpu.memory_space<vmem>>, vector<8x128xf32>
    %c0_8 = arith.constant 0 : index
    %c0_9 = arith.constant 0 : index
    %8 = vector.load %arg6[%c0_8, %c0_9] : memref<8x128xf32, #tpu.memory_space<vmem>>, vector<8x128xf32>
    %c0_i32_10 = arith.constant 0 : i32
    %9 = arith.index_cast %c0_i32_10 : i32 to index
    %c0_11 = arith.constant 0 : index
    %c0_12 = arith.constant 0 : index
    %10 = vector.load %arg3[%9, %c0_11, %c0_12] : memref<16x8x384xbf16, #tpu.memory_space<vmem>>, vector<1x8x384xbf16>
    %11 = vector.shape_cast %10 : vector<1x8x384xbf16> to vector<8x384xbf16>
    %12 = arith.truncf %7 : vector<8x128xf32> to vector<8x128xbf16>
    %cst = arith.constant dense<0.000000e+00> : vector<8x384xf32>
    %13 = tpu.matmul %12, %3, %cst {dimension_numbers = #tpu.dot_dimension_numbers<[1], [0], [0], [1], [0, 0, 1, 1], [], []>} : vector<8x128xbf16>, vector<128x384xbf16>, vector<8x384xf32> -> vector<8x384xf32>
    %14 = vector.extract_strided_slice %11 {offsets = [0, 0], sizes = [8, 128], strides = [1, 1]} : vector<8x384xbf16> to vector<8x128xbf16>
    %15 = arith.extf %14 : vector<8x128xbf16> to vector<8x128xf32>
    %16 = vector.extract_strided_slice %13 {offsets = [0, 0], sizes = [8, 128], strides = [1, 1]} : vector<8x384xf32> to vector<8x128xf32>
    %17 = arith.addf %15, %16 : vector<8x128xf32>
    %18 = arith.negf %17 : vector<8x128xf32>
    %19 = math.exp %18 : vector<8x128xf32>
    %cst_13 = arith.constant 1.000000e+00 : f32
    %20 = vector.broadcast %cst_13 : f32 to vector<8x128xf32>
    %21 = arith.addf %20, %19 : vector<8x128xf32>
    %22 = arith.divf %20, %21 : vector<8x128xf32>
    %23 = vector.extract_strided_slice %11 {offsets = [0, 128], sizes = [8, 128], strides = [1, 1]} : vector<8x384xbf16> to vector<8x128xbf16>
    %24 = arith.extf %23 : vector<8x128xbf16> to vector<8x128xf32>
    %25 = vector.extract_strided_slice %13 {offsets = [0, 128], sizes = [8, 128], strides = [1, 1]} : vector<8x384xf32> to vector<8x128xf32>
    %26 = arith.addf %24, %25 : vector<8x128xf32>
    %27 = arith.negf %26 : vector<8x128xf32>
    %28 = math.exp %27 : vector<8x128xf32>
    %cst_14 = arith.constant 1.000000e+00 : f32
    %29 = vector.broadcast %cst_14 : f32 to vector<8x128xf32>
    %30 = arith.addf %29, %28 : vector<8x128xf32>
    %31 = arith.divf %29, %30 : vector<8x128xf32>
    %32 = vector.extract_strided_slice %11 {offsets = [0, 256], sizes = [8, 128], strides = [1, 1]} : vector<8x384xbf16> to vector<8x128xbf16>
    %33 = arith.extf %32 : vector<8x128xbf16> to vector<8x128xf32>
    %34 = vector.extract_strided_slice %13 {offsets = [0, 256], sizes = [8, 128], strides = [1, 1]} : vector<8x384xf32> to vector<8x128xf32>
    %35 = vector.broadcast %4 : vector<1x128xf32> to vector<8x128xf32>
    %36 = arith.addf %34, %35 : vector<8x128xf32>
    %37 = arith.mulf %22, %36 : vector<8x128xf32>
    %38 = arith.addf %33, %37 : vector<8x128xf32>
    %39 = math.tanh %38 : vector<8x128xf32>
    %cst_15 = arith.constant 1.000000e+00 : f32
    %40 = vector.broadcast %cst_15 : f32 to vector<8x128xf32>
    %41 = arith.subf %40, %31 : vector<8x128xf32>
    %42 = arith.mulf %41, %39 : vector<8x128xf32>
    %43 = arith.mulf %31, %7 : vector<8x128xf32>
    %44 = arith.addf %42, %43 : vector<8x128xf32>
    %45 = arith.addi %6, %c0_i32_10 : i32
    %46 = vector.broadcast %45 : i32 to vector<8x1xi32>
    %47 = arith.cmpi eq, %5, %46 : vector<8x1xi32>
    %48 = vector.shape_cast %47 : vector<8x1xi1> to vector<8x1xi1>
    %49 = vector.broadcast %48 : vector<8x1xi1> to vector<8x128xi1>
    %50 = arith.select %49, %44, %8 : vector<8x128xi1>, vector<8x128xf32>
    %c1_i32 = arith.constant 1 : i32
    %51 = arith.index_cast %c1_i32 : i32 to index
    %c0_16 = arith.constant 0 : index
    %c0_17 = arith.constant 0 : index
    %52 = vector.load %arg3[%51, %c0_16, %c0_17] : memref<16x8x384xbf16, #tpu.memory_space<vmem>>, vector<1x8x384xbf16>
    %53 = vector.shape_cast %52 : vector<1x8x384xbf16> to vector<8x384xbf16>
    %54 = arith.truncf %44 : vector<8x128xf32> to vector<8x128xbf16>
    %cst_18 = arith.constant dense<0.000000e+00> : vector<8x384xf32>
    %55 = tpu.matmul %54, %3, %cst_18 {dimension_numbers = #tpu.dot_dimension_numbers<[1], [0], [0], [1], [0, 0, 1, 1], [], []>} : vector<8x128xbf16>, vector<128x384xbf16>, vector<8x384xf32> -> vector<8x384xf32>
    %56 = vector.extract_strided_slice %53 {offsets = [0, 0], sizes = [8, 128], strides = [1, 1]} : vector<8x384xbf16> to vector<8x128xbf16>
    %57 = arith.extf %56 : vector<8x128xbf16> to vector<8x128xf32>
    %58 = vector.extract_strided_slice %55 {offsets = [0, 0], sizes = [8, 128], strides = [1, 1]} : vector<8x384xf32> to vector<8x128xf32>
    %59 = arith.addf %57, %58 : vector<8x128xf32>
    %60 = arith.negf %59 : vector<8x128xf32>
    %61 = math.exp %60 : vector<8x128xf32>
    %cst_19 = arith.constant 1.000000e+00 : f32
    %62 = vector.broadcast %cst_19 : f32 to vector<8x128xf32>
    %63 = arith.addf %62, %61 : vector<8x128xf32>
    %64 = arith.divf %62, %63 : vector<8x128xf32>
    %65 = vector.extract_strided_slice %53 {offsets = [0, 128], sizes = [8, 128], strides = [1, 1]} : vector<8x384xbf16> to vector<8x128xbf16>
    %66 = arith.extf %65 : vector<8x128xbf16> to vector<8x128xf32>
    %67 = vector.extract_strided_slice %55 {offsets = [0, 128], sizes = [8, 128], strides = [1, 1]} : vector<8x384xf32> to vector<8x128xf32>
    %68 = arith.addf %66, %67 : vector<8x128xf32>
    %69 = arith.negf %68 : vector<8x128xf32>
    %70 = math.exp %69 : vector<8x128xf32>
    %cst_20 = arith.constant 1.000000e+00 : f32
    %71 = vector.broadcast %cst_20 : f32 to vector<8x128xf32>
    %72 = arith.addf %71, %70 : vector<8x128xf32>
    %73 = arith.divf %71, %72 : vector<8x128xf32>
    %74 = vector.extract_strided_slice %53 {offsets = [0, 256], sizes = [8, 128], strides = [1, 1]} : vector<8x384xbf16> to vector<8x128xbf16>
    %75 = arith.extf %74 : vector<8x128xbf16> to vector<8x128xf32>
    %76 = vector.extract_strided_slice %55 {offsets = [0, 256], sizes = [8, 128], strides = [1, 1]} : vector<8x384xf32> to vector<8x128xf32>
    %77 = vector.broadcast %4 : vector<1x128xf32> to vector<8x128xf32>
    %78 = arith.addf %76, %77 : vector<8x128xf32>
    %79 = arith.mulf %64, %78 : vector<8x128xf32>
    %80 = arith.addf %75, %79 : vector<8x128xf32>
    %81 = math.tanh %80 : vector<8x128xf32>
    %cst_21 = arith.constant 1.000000e+00 : f32
    %82 = vector.broadcast %cst_21 : f32 to vector<8x128xf32>
    %83 = arith.subf %82, %73 : vector<8x128xf32>
    %84 = arith.mulf %83, %81 : vector<8x128xf32>
    %85 = arith.mulf %73, %44 : vector<8x128xf32>
    %86 = arith.addf %84, %85 : vector<8x128xf32>
    %87 = arith.addi %6, %c1_i32 : i32
    %88 = vector.broadcast %87 : i32 to vector<8x1xi32>
    %89 = arith.cmpi eq, %5, %88 : vector<8x1xi32>
    %90 = vector.shape_cast %89 : vector<8x1xi1> to vector<8x1xi1>
    %91 = vector.broadcast %90 : vector<8x1xi1> to vector<8x128xi1>
    %92 = arith.select %91, %86, %50 : vector<8x128xi1>, vector<8x128xf32>
    %c2_i32 = arith.constant 2 : i32
    %93 = arith.index_cast %c2_i32 : i32 to index
    %c0_22 = arith.constant 0 : index
    %c0_23 = arith.constant 0 : index
    %94 = vector.load %arg3[%93, %c0_22, %c0_23] : memref<16x8x384xbf16, #tpu.memory_space<vmem>>, vector<1x8x384xbf16>
    %95 = vector.shape_cast %94 : vector<1x8x384xbf16> to vector<8x384xbf16>
    %96 = arith.truncf %86 : vector<8x128xf32> to vector<8x128xbf16>
    %cst_24 = arith.constant dense<0.000000e+00> : vector<8x384xf32>
    %97 = tpu.matmul %96, %3, %cst_24 {dimension_numbers = #tpu.dot_dimension_numbers<[1], [0], [0], [1], [0, 0, 1, 1], [], []>} : vector<8x128xbf16>, vector<128x384xbf16>, vector<8x384xf32> -> vector<8x384xf32>
    %98 = vector.extract_strided_slice %95 {offsets = [0, 0], sizes = [8, 128], strides = [1, 1]} : vector<8x384xbf16> to vector<8x128xbf16>
    %99 = arith.extf %98 : vector<8x128xbf16> to vector<8x128xf32>
    %100 = vector.extract_strided_slice %97 {offsets = [0, 0], sizes = [8, 128], strides = [1, 1]} : vector<8x384xf32> to vector<8x128xf32>
    %101 = arith.addf %99, %100 : vector<8x128xf32>
    %102 = arith.negf %101 : vector<8x128xf32>
    %103 = math.exp %102 : vector<8x128xf32>
    %cst_25 = arith.constant 1.000000e+00 : f32
    %104 = vector.broadcast %cst_25 : f32 to vector<8x128xf32>
    %105 = arith.addf %104, %103 : vector<8x128xf32>
    %106 = arith.divf %104, %105 : vector<8x128xf32>
    %107 = vector.extract_strided_slice %95 {offsets = [0, 128], sizes = [8, 128], strides = [1, 1]} : vector<8x384xbf16> to vector<8x128xbf16>
    %108 = arith.extf %107 : vector<8x128xbf16> to vector<8x128xf32>
    %109 = vector.extract_strided_slice %97 {offsets = [0, 128], sizes = [8, 128], strides = [1, 1]} : vector<8x384xf32> to vector<8x128xf32>
    %110 = arith.addf %108, %109 : vector<8x128xf32>
    %111 = arith.negf %110 : vector<8x128xf32>
    %112 = math.exp %111 : vector<8x128xf32>
    %cst_26 = arith.constant 1.000000e+00 : f32
    %113 = vector.broadcast %cst_26 : f32 to vector<8x128xf32>
    %114 = arith.addf %113, %112 : vector<8x128xf32>
    %115 = arith.divf %113, %114 : vector<8x128xf32>
    %116 = vector.extract_strided_slice %95 {offsets = [0, 256], sizes = [8, 128], strides = [1, 1]} : vector<8x384xbf16> to vector<8x128xbf16>
    %117 = arith.extf %116 : vector<8x128xbf16> to vector<8x128xf32>
    %118 = vector.extract_strided_slice %97 {offsets = [0, 256], sizes = [8, 128], strides = [1, 1]} : vector<8x384xf32> to vector<8x128xf32>
    %119 = vector.broadcast %4 : vector<1x128xf32> to vector<8x128xf32>
    %120 = arith.addf %118, %119 : vector<8x128xf32>
    %121 = arith.mulf %106, %120 : vector<8x128xf32>
    %122 = arith.addf %117, %121 : vector<8x128xf32>
    %123 = math.tanh %122 : vector<8x128xf32>
    %cst_27 = arith.constant 1.000000e+00 : f32
    %124 = vector.broadcast %cst_27 : f32 to vector<8x128xf32>
    %125 = arith.subf %124, %115 : vector<8x128xf32>
    %126 = arith.mulf %125, %123 : vector<8x128xf32>
    %127 = arith.mulf %115, %86 : vector<8x128xf32>
    %128 = arith.addf %126, %127 : vector<8x128xf32>
    %129 = arith.addi %6, %c2_i32 : i32
    %130 = vector.broadcast %129 : i32 to vector<8x1xi32>
    %131 = arith.cmpi eq, %5, %130 : vector<8x1xi32>
    %132 = vector.shape_cast %131 : vector<8x1xi1> to vector<8x1xi1>
    %133 = vector.broadcast %132 : vector<8x1xi1> to vector<8x128xi1>
    %134 = arith.select %133, %128, %92 : vector<8x128xi1>, vector<8x128xf32>
    %c3_i32 = arith.constant 3 : i32
    %135 = arith.index_cast %c3_i32 : i32 to index
    %c0_28 = arith.constant 0 : index
    %c0_29 = arith.constant 0 : index
    %136 = vector.load %arg3[%135, %c0_28, %c0_29] : memref<16x8x384xbf16, #tpu.memory_space<vmem>>, vector<1x8x384xbf16>
    %137 = vector.shape_cast %136 : vector<1x8x384xbf16> to vector<8x384xbf16>
    %138 = arith.truncf %128 : vector<8x128xf32> to vector<8x128xbf16>
    %cst_30 = arith.constant dense<0.000000e+00> : vector<8x384xf32>
    %139 = tpu.matmul %138, %3, %cst_30 {dimension_numbers = #tpu.dot_dimension_numbers<[1], [0], [0], [1], [0, 0, 1, 1], [], []>} : vector<8x128xbf16>, vector<128x384xbf16>, vector<8x384xf32> -> vector<8x384xf32>
    %140 = vector.extract_strided_slice %137 {offsets = [0, 0], sizes = [8, 128], strides = [1, 1]} : vector<8x384xbf16> to vector<8x128xbf16>
    %141 = arith.extf %140 : vector<8x128xbf16> to vector<8x128xf32>
    %142 = vector.extract_strided_slice %139 {offsets = [0, 0], sizes = [8, 128], strides = [1, 1]} : vector<8x384xf32> to vector<8x128xf32>
    %143 = arith.addf %141, %142 : vector<8x128xf32>
    %144 = arith.negf %143 : vector<8x128xf32>
    %145 = math.exp %144 : vector<8x128xf32>
    %cst_31 = arith.constant 1.000000e+00 : f32
    %146 = vector.broadcast %cst_31 : f32 to vector<8x128xf32>
    %147 = arith.addf %146, %145 : vector<8x128xf32>
    %148 = arith.divf %146, %147 : vector<8x128xf32>
    %149 = vector.extract_strided_slice %137 {offsets = [0, 128], sizes = [8, 128], strides = [1, 1]} : vector<8x384xbf16> to vector<8x128xbf16>
    %150 = arith.extf %149 : vector<8x128xbf16> to vector<8x128xf32>
    %151 = vector.extract_strided_slice %139 {offsets = [0, 128], sizes = [8, 128], strides = [1, 1]} : vector<8x384xf32> to vector<8x128xf32>
    %152 = arith.addf %150, %151 : vector<8x128xf32>
    %153 = arith.negf %152 : vector<8x128xf32>
    %154 = math.exp %153 : vector<8x128xf32>
    %cst_32 = arith.constant 1.000000e+00 : f32
    %155 = vector.broadcast %cst_32 : f32 to vector<8x128xf32>
    %156 = arith.addf %155, %154 : vector<8x128xf32>
    %157 = arith.divf %155, %156 : vector<8x128xf32>
    %158 = vector.extract_strided_slice %137 {offsets = [0, 256], sizes = [8, 128], strides = [1, 1]} : vector<8x384xbf16> to vector<8x128xbf16>
    %159 = arith.extf %158 : vector<8x128xbf16> to vector<8x128xf32>
    %160 = vector.extract_strided_slice %139 {offsets = [0, 256], sizes = [8, 128], strides = [1, 1]} : vector<8x384xf32> to vector<8x128xf32>
    %161 = vector.broadcast %4 : vector<1x128xf32> to vector<8x128xf32>
    %162 = arith.addf %160, %161 : vector<8x128xf32>
    %163 = arith.mulf %148, %162 : vector<8x128xf32>
    %164 = arith.addf %159, %163 : vector<8x128xf32>
    %165 = math.tanh %164 : vector<8x128xf32>
    %cst_33 = arith.constant 1.000000e+00 : f32
    %166 = vector.broadcast %cst_33 : f32 to vector<8x128xf32>
    %167 = arith.subf %166, %157 : vector<8x128xf32>
    %168 = arith.mulf %167, %165 : vector<8x128xf32>
    %169 = arith.mulf %157, %128 : vector<8x128xf32>
    %170 = arith.addf %168, %169 : vector<8x128xf32>
    %171 = arith.addi %6, %c3_i32 : i32
    %172 = vector.broadcast %171 : i32 to vector<8x1xi32>
    %173 = arith.cmpi eq, %5, %172 : vector<8x1xi32>
    %174 = vector.shape_cast %173 : vector<8x1xi1> to vector<8x1xi1>
    %175 = vector.broadcast %174 : vector<8x1xi1> to vector<8x128xi1>
    %176 = arith.select %175, %170, %134 : vector<8x128xi1>, vector<8x128xf32>
    %c4_i32 = arith.constant 4 : i32
    %177 = arith.index_cast %c4_i32 : i32 to index
    %c0_34 = arith.constant 0 : index
    %c0_35 = arith.constant 0 : index
    %178 = vector.load %arg3[%177, %c0_34, %c0_35] : memref<16x8x384xbf16, #tpu.memory_space<vmem>>, vector<1x8x384xbf16>
    %179 = vector.shape_cast %178 : vector<1x8x384xbf16> to vector<8x384xbf16>
    %180 = arith.truncf %170 : vector<8x128xf32> to vector<8x128xbf16>
    %cst_36 = arith.constant dense<0.000000e+00> : vector<8x384xf32>
    %181 = tpu.matmul %180, %3, %cst_36 {dimension_numbers = #tpu.dot_dimension_numbers<[1], [0], [0], [1], [0, 0, 1, 1], [], []>} : vector<8x128xbf16>, vector<128x384xbf16>, vector<8x384xf32> -> vector<8x384xf32>
    %182 = vector.extract_strided_slice %179 {offsets = [0, 0], sizes = [8, 128], strides = [1, 1]} : vector<8x384xbf16> to vector<8x128xbf16>
    %183 = arith.extf %182 : vector<8x128xbf16> to vector<8x128xf32>
    %184 = vector.extract_strided_slice %181 {offsets = [0, 0], sizes = [8, 128], strides = [1, 1]} : vector<8x384xf32> to vector<8x128xf32>
    %185 = arith.addf %183, %184 : vector<8x128xf32>
    %186 = arith.negf %185 : vector<8x128xf32>
    %187 = math.exp %186 : vector<8x128xf32>
    %cst_37 = arith.constant 1.000000e+00 : f32
    %188 = vector.broadcast %cst_37 : f32 to vector<8x128xf32>
    %189 = arith.addf %188, %187 : vector<8x128xf32>
    %190 = arith.divf %188, %189 : vector<8x128xf32>
    %191 = vector.extract_strided_slice %179 {offsets = [0, 128], sizes = [8, 128], strides = [1, 1]} : vector<8x384xbf16> to vector<8x128xbf16>
    %192 = arith.extf %191 : vector<8x128xbf16> to vector<8x128xf32>
    %193 = vector.extract_strided_slice %181 {offsets = [0, 128], sizes = [8, 128], strides = [1, 1]} : vector<8x384xf32> to vector<8x128xf32>
    %194 = arith.addf %192, %193 : vector<8x128xf32>
    %195 = arith.negf %194 : vector<8x128xf32>
    %196 = math.exp %195 : vector<8x128xf32>
    %cst_38 = arith.constant 1.000000e+00 : f32
    %197 = vector.broadcast %cst_38 : f32 to vector<8x128xf32>
    %198 = arith.addf %197, %196 : vector<8x128xf32>
    %199 = arith.divf %197, %198 : vector<8x128xf32>
    %200 = vector.extract_strided_slice %179 {offsets = [0, 256], sizes = [8, 128], strides = [1, 1]} : vector<8x384xbf16> to vector<8x128xbf16>
    %201 = arith.extf %200 : vector<8x128xbf16> to vector<8x128xf32>
    %202 = vector.extract_strided_slice %181 {offsets = [0, 256], sizes = [8, 128], strides = [1, 1]} : vector<8x384xf32> to vector<8x128xf32>
    %203 = vector.broadcast %4 : vector<1x128xf32> to vector<8x128xf32>
    %204 = arith.addf %202, %203 : vector<8x128xf32>
    %205 = arith.mulf %190, %204 : vector<8x128xf32>
    %206 = arith.addf %201, %205 : vector<8x128xf32>
    %207 = math.tanh %206 : vector<8x128xf32>
    %cst_39 = arith.constant 1.000000e+00 : f32
    %208 = vector.broadcast %cst_39 : f32 to vector<8x128xf32>
    %209 = arith.subf %208, %199 : vector<8x128xf32>
    %210 = arith.mulf %209, %207 : vector<8x128xf32>
    %211 = arith.mulf %199, %170 : vector<8x128xf32>
    %212 = arith.addf %210, %211 : vector<8x128xf32>
    %213 = arith.addi %6, %c4_i32 : i32
    %214 = vector.broadcast %213 : i32 to vector<8x1xi32>
    %215 = arith.cmpi eq, %5, %214 : vector<8x1xi32>
    %216 = vector.shape_cast %215 : vector<8x1xi1> to vector<8x1xi1>
    %217 = vector.broadcast %216 : vector<8x1xi1> to vector<8x128xi1>
    %218 = arith.select %217, %212, %176 : vector<8x128xi1>, vector<8x128xf32>
    %c5_i32 = arith.constant 5 : i32
    %219 = arith.index_cast %c5_i32 : i32 to index
    %c0_40 = arith.constant 0 : index
    %c0_41 = arith.constant 0 : index
    %220 = vector.load %arg3[%219, %c0_40, %c0_41] : memref<16x8x384xbf16, #tpu.memory_space<vmem>>, vector<1x8x384xbf16>
    %221 = vector.shape_cast %220 : vector<1x8x384xbf16> to vector<8x384xbf16>
    %222 = arith.truncf %212 : vector<8x128xf32> to vector<8x128xbf16>
    %cst_42 = arith.constant dense<0.000000e+00> : vector<8x384xf32>
    %223 = tpu.matmul %222, %3, %cst_42 {dimension_numbers = #tpu.dot_dimension_numbers<[1], [0], [0], [1], [0, 0, 1, 1], [], []>} : vector<8x128xbf16>, vector<128x384xbf16>, vector<8x384xf32> -> vector<8x384xf32>
    %224 = vector.extract_strided_slice %221 {offsets = [0, 0], sizes = [8, 128], strides = [1, 1]} : vector<8x384xbf16> to vector<8x128xbf16>
    %225 = arith.extf %224 : vector<8x128xbf16> to vector<8x128xf32>
    %226 = vector.extract_strided_slice %223 {offsets = [0, 0], sizes = [8, 128], strides = [1, 1]} : vector<8x384xf32> to vector<8x128xf32>
    %227 = arith.addf %225, %226 : vector<8x128xf32>
    %228 = arith.negf %227 : vector<8x128xf32>
    %229 = math.exp %228 : vector<8x128xf32>
    %cst_43 = arith.constant 1.000000e+00 : f32
    %230 = vector.broadcast %cst_43 : f32 to vector<8x128xf32>
    %231 = arith.addf %230, %229 : vector<8x128xf32>
    %232 = arith.divf %230, %231 : vector<8x128xf32>
    %233 = vector.extract_strided_slice %221 {offsets = [0, 128], sizes = [8, 128], strides = [1, 1]} : vector<8x384xbf16> to vector<8x128xbf16>
    %234 = arith.extf %233 : vector<8x128xbf16> to vector<8x128xf32>
    %235 = vector.extract_strided_slice %223 {offsets = [0, 128], sizes = [8, 128], strides = [1, 1]} : vector<8x384xf32> to vector<8x128xf32>
    %236 = arith.addf %234, %235 : vector<8x128xf32>
    %237 = arith.negf %236 : vector<8x128xf32>
    %238 = math.exp %237 : vector<8x128xf32>
    %cst_44 = arith.constant 1.000000e+00 : f32
    %239 = vector.broadcast %cst_44 : f32 to vector<8x128xf32>
    %240 = arith.addf %239, %238 : vector<8x128xf32>
    %241 = arith.divf %239, %240 : vector<8x128xf32>
    %242 = vector.extract_strided_slice %221 {offsets = [0, 256], sizes = [8, 128], strides = [1, 1]} : vector<8x384xbf16> to vector<8x128xbf16>
    %243 = arith.extf %242 : vector<8x128xbf16> to vector<8x128xf32>
    %244 = vector.extract_strided_slice %223 {offsets = [0, 256], sizes = [8, 128], strides = [1, 1]} : vector<8x384xf32> to vector<8x128xf32>
    %245 = vector.broadcast %4 : vector<1x128xf32> to vector<8x128xf32>
    %246 = arith.addf %244, %245 : vector<8x128xf32>
    %247 = arith.mulf %232, %246 : vector<8x128xf32>
    %248 = arith.addf %243, %247 : vector<8x128xf32>
    %249 = math.tanh %248 : vector<8x128xf32>
    %cst_45 = arith.constant 1.000000e+00 : f32
    %250 = vector.broadcast %cst_45 : f32 to vector<8x128xf32>
    %251 = arith.subf %250, %241 : vector<8x128xf32>
    %252 = arith.mulf %251, %249 : vector<8x128xf32>
    %253 = arith.mulf %241, %212 : vector<8x128xf32>
    %254 = arith.addf %252, %253 : vector<8x128xf32>
    %255 = arith.addi %6, %c5_i32 : i32
    %256 = vector.broadcast %255 : i32 to vector<8x1xi32>
    %257 = arith.cmpi eq, %5, %256 : vector<8x1xi32>
    %258 = vector.shape_cast %257 : vector<8x1xi1> to vector<8x1xi1>
    %259 = vector.broadcast %258 : vector<8x1xi1> to vector<8x128xi1>
    %260 = arith.select %259, %254, %218 : vector<8x128xi1>, vector<8x128xf32>
    %c6_i32 = arith.constant 6 : i32
    %261 = arith.index_cast %c6_i32 : i32 to index
    %c0_46 = arith.constant 0 : index
    %c0_47 = arith.constant 0 : index
    %262 = vector.load %arg3[%261, %c0_46, %c0_47] : memref<16x8x384xbf16, #tpu.memory_space<vmem>>, vector<1x8x384xbf16>
    %263 = vector.shape_cast %262 : vector<1x8x384xbf16> to vector<8x384xbf16>
    %264 = arith.truncf %254 : vector<8x128xf32> to vector<8x128xbf16>
    %cst_48 = arith.constant dense<0.000000e+00> : vector<8x384xf32>
    %265 = tpu.matmul %264, %3, %cst_48 {dimension_numbers = #tpu.dot_dimension_numbers<[1], [0], [0], [1], [0, 0, 1, 1], [], []>} : vector<8x128xbf16>, vector<128x384xbf16>, vector<8x384xf32> -> vector<8x384xf32>
    %266 = vector.extract_strided_slice %263 {offsets = [0, 0], sizes = [8, 128], strides = [1, 1]} : vector<8x384xbf16> to vector<8x128xbf16>
    %267 = arith.extf %266 : vector<8x128xbf16> to vector<8x128xf32>
    %268 = vector.extract_strided_slice %265 {offsets = [0, 0], sizes = [8, 128], strides = [1, 1]} : vector<8x384xf32> to vector<8x128xf32>
    %269 = arith.addf %267, %268 : vector<8x128xf32>
    %270 = arith.negf %269 : vector<8x128xf32>
    %271 = math.exp %270 : vector<8x128xf32>
    %cst_49 = arith.constant 1.000000e+00 : f32
    %272 = vector.broadcast %cst_49 : f32 to vector<8x128xf32>
    %273 = arith.addf %272, %271 : vector<8x128xf32>
    %274 = arith.divf %272, %273 : vector<8x128xf32>
    %275 = vector.extract_strided_slice %263 {offsets = [0, 128], sizes = [8, 128], strides = [1, 1]} : vector<8x384xbf16> to vector<8x128xbf16>
    %276 = arith.extf %275 : vector<8x128xbf16> to vector<8x128xf32>
    %277 = vector.extract_strided_slice %265 {offsets = [0, 128], sizes = [8, 128], strides = [1, 1]} : vector<8x384xf32> to vector<8x128xf32>
    %278 = arith.addf %276, %277 : vector<8x128xf32>
    %279 = arith.negf %278 : vector<8x128xf32>
    %280 = math.exp %279 : vector<8x128xf32>
    %cst_50 = arith.constant 1.000000e+00 : f32
    %281 = vector.broadcast %cst_50 : f32 to vector<8x128xf32>
    %282 = arith.addf %281, %280 : vector<8x128xf32>
    %283 = arith.divf %281, %282 : vector<8x128xf32>
    %284 = vector.extract_strided_slice %263 {offsets = [0, 256], sizes = [8, 128], strides = [1, 1]} : vector<8x384xbf16> to vector<8x128xbf16>
    %285 = arith.extf %284 : vector<8x128xbf16> to vector<8x128xf32>
    %286 = vector.extract_strided_slice %265 {offsets = [0, 256], sizes = [8, 128], strides = [1, 1]} : vector<8x384xf32> to vector<8x128xf32>
    %287 = vector.broadcast %4 : vector<1x128xf32> to vector<8x128xf32>
    %288 = arith.addf %286, %287 : vector<8x128xf32>
    %289 = arith.mulf %274, %288 : vector<8x128xf32>
    %290 = arith.addf %285, %289 : vector<8x128xf32>
    %291 = math.tanh %290 : vector<8x128xf32>
    %cst_51 = arith.constant 1.000000e+00 : f32
    %292 = vector.broadcast %cst_51 : f32 to vector<8x128xf32>
    %293 = arith.subf %292, %283 : vector<8x128xf32>
    %294 = arith.mulf %293, %291 : vector<8x128xf32>
    %295 = arith.mulf %283, %254 : vector<8x128xf32>
    %296 = arith.addf %294, %295 : vector<8x128xf32>
    %297 = arith.addi %6, %c6_i32 : i32
    %298 = vector.broadcast %297 : i32 to vector<8x1xi32>
    %299 = arith.cmpi eq, %5, %298 : vector<8x1xi32>
    %300 = vector.shape_cast %299 : vector<8x1xi1> to vector<8x1xi1>
    %301 = vector.broadcast %300 : vector<8x1xi1> to vector<8x128xi1>
    %302 = arith.select %301, %296, %260 : vector<8x128xi1>, vector<8x128xf32>
    %c7_i32 = arith.constant 7 : i32
    %303 = arith.index_cast %c7_i32 : i32 to index
    %c0_52 = arith.constant 0 : index
    %c0_53 = arith.constant 0 : index
    %304 = vector.load %arg3[%303, %c0_52, %c0_53] : memref<16x8x384xbf16, #tpu.memory_space<vmem>>, vector<1x8x384xbf16>
    %305 = vector.shape_cast %304 : vector<1x8x384xbf16> to vector<8x384xbf16>
    %306 = arith.truncf %296 : vector<8x128xf32> to vector<8x128xbf16>
    %cst_54 = arith.constant dense<0.000000e+00> : vector<8x384xf32>
    %307 = tpu.matmul %306, %3, %cst_54 {dimension_numbers = #tpu.dot_dimension_numbers<[1], [0], [0], [1], [0, 0, 1, 1], [], []>} : vector<8x128xbf16>, vector<128x384xbf16>, vector<8x384xf32> -> vector<8x384xf32>
    %308 = vector.extract_strided_slice %305 {offsets = [0, 0], sizes = [8, 128], strides = [1, 1]} : vector<8x384xbf16> to vector<8x128xbf16>
    %309 = arith.extf %308 : vector<8x128xbf16> to vector<8x128xf32>
    %310 = vector.extract_strided_slice %307 {offsets = [0, 0], sizes = [8, 128], strides = [1, 1]} : vector<8x384xf32> to vector<8x128xf32>
    %311 = arith.addf %309, %310 : vector<8x128xf32>
    %312 = arith.negf %311 : vector<8x128xf32>
    %313 = math.exp %312 : vector<8x128xf32>
    %cst_55 = arith.constant 1.000000e+00 : f32
    %314 = vector.broadcast %cst_55 : f32 to vector<8x128xf32>
    %315 = arith.addf %314, %313 : vector<8x128xf32>
    %316 = arith.divf %314, %315 : vector<8x128xf32>
    %317 = vector.extract_strided_slice %305 {offsets = [0, 128], sizes = [8, 128], strides = [1, 1]} : vector<8x384xbf16> to vector<8x128xbf16>
    %318 = arith.extf %317 : vector<8x128xbf16> to vector<8x128xf32>
    %319 = vector.extract_strided_slice %307 {offsets = [0, 128], sizes = [8, 128], strides = [1, 1]} : vector<8x384xf32> to vector<8x128xf32>
    %320 = arith.addf %318, %319 : vector<8x128xf32>
    %321 = arith.negf %320 : vector<8x128xf32>
    %322 = math.exp %321 : vector<8x128xf32>
    %cst_56 = arith.constant 1.000000e+00 : f32
    %323 = vector.broadcast %cst_56 : f32 to vector<8x128xf32>
    %324 = arith.addf %323, %322 : vector<8x128xf32>
    %325 = arith.divf %323, %324 : vector<8x128xf32>
    %326 = vector.extract_strided_slice %305 {offsets = [0, 256], sizes = [8, 128], strides = [1, 1]} : vector<8x384xbf16> to vector<8x128xbf16>
    %327 = arith.extf %326 : vector<8x128xbf16> to vector<8x128xf32>
    %328 = vector.extract_strided_slice %307 {offsets = [0, 256], sizes = [8, 128], strides = [1, 1]} : vector<8x384xf32> to vector<8x128xf32>
    %329 = vector.broadcast %4 : vector<1x128xf32> to vector<8x128xf32>
    %330 = arith.addf %328, %329 : vector<8x128xf32>
    %331 = arith.mulf %316, %330 : vector<8x128xf32>
    %332 = arith.addf %327, %331 : vector<8x128xf32>
    %333 = math.tanh %332 : vector<8x128xf32>
    %cst_57 = arith.constant 1.000000e+00 : f32
    %334 = vector.broadcast %cst_57 : f32 to vector<8x128xf32>
    %335 = arith.subf %334, %325 : vector<8x128xf32>
    %336 = arith.mulf %335, %333 : vector<8x128xf32>
    %337 = arith.mulf %325, %296 : vector<8x128xf32>
    %338 = arith.addf %336, %337 : vector<8x128xf32>
    %339 = arith.addi %6, %c7_i32 : i32
    %340 = vector.broadcast %339 : i32 to vector<8x1xi32>
    %341 = arith.cmpi eq, %5, %340 : vector<8x1xi32>
    %342 = vector.shape_cast %341 : vector<8x1xi1> to vector<8x1xi1>
    %343 = vector.broadcast %342 : vector<8x1xi1> to vector<8x128xi1>
    %344 = arith.select %343, %338, %302 : vector<8x128xi1>, vector<8x128xf32>
    %c8_i32 = arith.constant 8 : i32
    %345 = arith.index_cast %c8_i32 : i32 to index
    %c0_58 = arith.constant 0 : index
    %c0_59 = arith.constant 0 : index
    %346 = vector.load %arg3[%345, %c0_58, %c0_59] : memref<16x8x384xbf16, #tpu.memory_space<vmem>>, vector<1x8x384xbf16>
    %347 = vector.shape_cast %346 : vector<1x8x384xbf16> to vector<8x384xbf16>
    %348 = arith.truncf %338 : vector<8x128xf32> to vector<8x128xbf16>
    %cst_60 = arith.constant dense<0.000000e+00> : vector<8x384xf32>
    %349 = tpu.matmul %348, %3, %cst_60 {dimension_numbers = #tpu.dot_dimension_numbers<[1], [0], [0], [1], [0, 0, 1, 1], [], []>} : vector<8x128xbf16>, vector<128x384xbf16>, vector<8x384xf32> -> vector<8x384xf32>
    %350 = vector.extract_strided_slice %347 {offsets = [0, 0], sizes = [8, 128], strides = [1, 1]} : vector<8x384xbf16> to vector<8x128xbf16>
    %351 = arith.extf %350 : vector<8x128xbf16> to vector<8x128xf32>
    %352 = vector.extract_strided_slice %349 {offsets = [0, 0], sizes = [8, 128], strides = [1, 1]} : vector<8x384xf32> to vector<8x128xf32>
    %353 = arith.addf %351, %352 : vector<8x128xf32>
    %354 = arith.negf %353 : vector<8x128xf32>
    %355 = math.exp %354 : vector<8x128xf32>
    %cst_61 = arith.constant 1.000000e+00 : f32
    %356 = vector.broadcast %cst_61 : f32 to vector<8x128xf32>
    %357 = arith.addf %356, %355 : vector<8x128xf32>
    %358 = arith.divf %356, %357 : vector<8x128xf32>
    %359 = vector.extract_strided_slice %347 {offsets = [0, 128], sizes = [8, 128], strides = [1, 1]} : vector<8x384xbf16> to vector<8x128xbf16>
    %360 = arith.extf %359 : vector<8x128xbf16> to vector<8x128xf32>
    %361 = vector.extract_strided_slice %349 {offsets = [0, 128], sizes = [8, 128], strides = [1, 1]} : vector<8x384xf32> to vector<8x128xf32>
    %362 = arith.addf %360, %361 : vector<8x128xf32>
    %363 = arith.negf %362 : vector<8x128xf32>
    %364 = math.exp %363 : vector<8x128xf32>
    %cst_62 = arith.constant 1.000000e+00 : f32
    %365 = vector.broadcast %cst_62 : f32 to vector<8x128xf32>
    %366 = arith.addf %365, %364 : vector<8x128xf32>
    %367 = arith.divf %365, %366 : vector<8x128xf32>
    %368 = vector.extract_strided_slice %347 {offsets = [0, 256], sizes = [8, 128], strides = [1, 1]} : vector<8x384xbf16> to vector<8x128xbf16>
    %369 = arith.extf %368 : vector<8x128xbf16> to vector<8x128xf32>
    %370 = vector.extract_strided_slice %349 {offsets = [0, 256], sizes = [8, 128], strides = [1, 1]} : vector<8x384xf32> to vector<8x128xf32>
    %371 = vector.broadcast %4 : vector<1x128xf32> to vector<8x128xf32>
    %372 = arith.addf %370, %371 : vector<8x128xf32>
    %373 = arith.mulf %358, %372 : vector<8x128xf32>
    %374 = arith.addf %369, %373 : vector<8x128xf32>
    %375 = math.tanh %374 : vector<8x128xf32>
    %cst_63 = arith.constant 1.000000e+00 : f32
    %376 = vector.broadcast %cst_63 : f32 to vector<8x128xf32>
    %377 = arith.subf %376, %367 : vector<8x128xf32>
    %378 = arith.mulf %377, %375 : vector<8x128xf32>
    %379 = arith.mulf %367, %338 : vector<8x128xf32>
    %380 = arith.addf %378, %379 : vector<8x128xf32>
    %381 = arith.addi %6, %c8_i32 : i32
    %382 = vector.broadcast %381 : i32 to vector<8x1xi32>
    %383 = arith.cmpi eq, %5, %382 : vector<8x1xi32>
    %384 = vector.shape_cast %383 : vector<8x1xi1> to vector<8x1xi1>
    %385 = vector.broadcast %384 : vector<8x1xi1> to vector<8x128xi1>
    %386 = arith.select %385, %380, %344 : vector<8x128xi1>, vector<8x128xf32>
    %c9_i32 = arith.constant 9 : i32
    %387 = arith.index_cast %c9_i32 : i32 to index
    %c0_64 = arith.constant 0 : index
    %c0_65 = arith.constant 0 : index
    %388 = vector.load %arg3[%387, %c0_64, %c0_65] : memref<16x8x384xbf16, #tpu.memory_space<vmem>>, vector<1x8x384xbf16>
    %389 = vector.shape_cast %388 : vector<1x8x384xbf16> to vector<8x384xbf16>
    %390 = arith.truncf %380 : vector<8x128xf32> to vector<8x128xbf16>
    %cst_66 = arith.constant dense<0.000000e+00> : vector<8x384xf32>
    %391 = tpu.matmul %390, %3, %cst_66 {dimension_numbers = #tpu.dot_dimension_numbers<[1], [0], [0], [1], [0, 0, 1, 1], [], []>} : vector<8x128xbf16>, vector<128x384xbf16>, vector<8x384xf32> -> vector<8x384xf32>
    %392 = vector.extract_strided_slice %389 {offsets = [0, 0], sizes = [8, 128], strides = [1, 1]} : vector<8x384xbf16> to vector<8x128xbf16>
    %393 = arith.extf %392 : vector<8x128xbf16> to vector<8x128xf32>
    %394 = vector.extract_strided_slice %391 {offsets = [0, 0], sizes = [8, 128], strides = [1, 1]} : vector<8x384xf32> to vector<8x128xf32>
    %395 = arith.addf %393, %394 : vector<8x128xf32>
    %396 = arith.negf %395 : vector<8x128xf32>
    %397 = math.exp %396 : vector<8x128xf32>
    %cst_67 = arith.constant 1.000000e+00 : f32
    %398 = vector.broadcast %cst_67 : f32 to vector<8x128xf32>
    %399 = arith.addf %398, %397 : vector<8x128xf32>
    %400 = arith.divf %398, %399 : vector<8x128xf32>
    %401 = vector.extract_strided_slice %389 {offsets = [0, 128], sizes = [8, 128], strides = [1, 1]} : vector<8x384xbf16> to vector<8x128xbf16>
    %402 = arith.extf %401 : vector<8x128xbf16> to vector<8x128xf32>
    %403 = vector.extract_strided_slice %391 {offsets = [0, 128], sizes = [8, 128], strides = [1, 1]} : vector<8x384xf32> to vector<8x128xf32>
    %404 = arith.addf %402, %403 : vector<8x128xf32>
    %405 = arith.negf %404 : vector<8x128xf32>
    %406 = math.exp %405 : vector<8x128xf32>
    %cst_68 = arith.constant 1.000000e+00 : f32
    %407 = vector.broadcast %cst_68 : f32 to vector<8x128xf32>
    %408 = arith.addf %407, %406 : vector<8x128xf32>
    %409 = arith.divf %407, %408 : vector<8x128xf32>
    %410 = vector.extract_strided_slice %389 {offsets = [0, 256], sizes = [8, 128], strides = [1, 1]} : vector<8x384xbf16> to vector<8x128xbf16>
    %411 = arith.extf %410 : vector<8x128xbf16> to vector<8x128xf32>
    %412 = vector.extract_strided_slice %391 {offsets = [0, 256], sizes = [8, 128], strides = [1, 1]} : vector<8x384xf32> to vector<8x128xf32>
    %413 = vector.broadcast %4 : vector<1x128xf32> to vector<8x128xf32>
    %414 = arith.addf %412, %413 : vector<8x128xf32>
    %415 = arith.mulf %400, %414 : vector<8x128xf32>
    %416 = arith.addf %411, %415 : vector<8x128xf32>
    %417 = math.tanh %416 : vector<8x128xf32>
    %cst_69 = arith.constant 1.000000e+00 : f32
    %418 = vector.broadcast %cst_69 : f32 to vector<8x128xf32>
    %419 = arith.subf %418, %409 : vector<8x128xf32>
    %420 = arith.mulf %419, %417 : vector<8x128xf32>
    %421 = arith.mulf %409, %380 : vector<8x128xf32>
    %422 = arith.addf %420, %421 : vector<8x128xf32>
    %423 = arith.addi %6, %c9_i32 : i32
    %424 = vector.broadcast %423 : i32 to vector<8x1xi32>
    %425 = arith.cmpi eq, %5, %424 : vector<8x1xi32>
    %426 = vector.shape_cast %425 : vector<8x1xi1> to vector<8x1xi1>
    %427 = vector.broadcast %426 : vector<8x1xi1> to vector<8x128xi1>
    %428 = arith.select %427, %422, %386 : vector<8x128xi1>, vector<8x128xf32>
    %c10_i32 = arith.constant 10 : i32
    %429 = arith.index_cast %c10_i32 : i32 to index
    %c0_70 = arith.constant 0 : index
    %c0_71 = arith.constant 0 : index
    %430 = vector.load %arg3[%429, %c0_70, %c0_71] : memref<16x8x384xbf16, #tpu.memory_space<vmem>>, vector<1x8x384xbf16>
    %431 = vector.shape_cast %430 : vector<1x8x384xbf16> to vector<8x384xbf16>
    %432 = arith.truncf %422 : vector<8x128xf32> to vector<8x128xbf16>
    %cst_72 = arith.constant dense<0.000000e+00> : vector<8x384xf32>
    %433 = tpu.matmul %432, %3, %cst_72 {dimension_numbers = #tpu.dot_dimension_numbers<[1], [0], [0], [1], [0, 0, 1, 1], [], []>} : vector<8x128xbf16>, vector<128x384xbf16>, vector<8x384xf32> -> vector<8x384xf32>
    %434 = vector.extract_strided_slice %431 {offsets = [0, 0], sizes = [8, 128], strides = [1, 1]} : vector<8x384xbf16> to vector<8x128xbf16>
    %435 = arith.extf %434 : vector<8x128xbf16> to vector<8x128xf32>
    %436 = vector.extract_strided_slice %433 {offsets = [0, 0], sizes = [8, 128], strides = [1, 1]} : vector<8x384xf32> to vector<8x128xf32>
    %437 = arith.addf %435, %436 : vector<8x128xf32>
    %438 = arith.negf %437 : vector<8x128xf32>
    %439 = math.exp %438 : vector<8x128xf32>
    %cst_73 = arith.constant 1.000000e+00 : f32
    %440 = vector.broadcast %cst_73 : f32 to vector<8x128xf32>
    %441 = arith.addf %440, %439 : vector<8x128xf32>
    %442 = arith.divf %440, %441 : vector<8x128xf32>
    %443 = vector.extract_strided_slice %431 {offsets = [0, 128], sizes = [8, 128], strides = [1, 1]} : vector<8x384xbf16> to vector<8x128xbf16>
    %444 = arith.extf %443 : vector<8x128xbf16> to vector<8x128xf32>
    %445 = vector.extract_strided_slice %433 {offsets = [0, 128], sizes = [8, 128], strides = [1, 1]} : vector<8x384xf32> to vector<8x128xf32>
    %446 = arith.addf %444, %445 : vector<8x128xf32>
    %447 = arith.negf %446 : vector<8x128xf32>
    %448 = math.exp %447 : vector<8x128xf32>
    %cst_74 = arith.constant 1.000000e+00 : f32
    %449 = vector.broadcast %cst_74 : f32 to vector<8x128xf32>
    %450 = arith.addf %449, %448 : vector<8x128xf32>
    %451 = arith.divf %449, %450 : vector<8x128xf32>
    %452 = vector.extract_strided_slice %431 {offsets = [0, 256], sizes = [8, 128], strides = [1, 1]} : vector<8x384xbf16> to vector<8x128xbf16>
    %453 = arith.extf %452 : vector<8x128xbf16> to vector<8x128xf32>
    %454 = vector.extract_strided_slice %433 {offsets = [0, 256], sizes = [8, 128], strides = [1, 1]} : vector<8x384xf32> to vector<8x128xf32>
    %455 = vector.broadcast %4 : vector<1x128xf32> to vector<8x128xf32>
    %456 = arith.addf %454, %455 : vector<8x128xf32>
    %457 = arith.mulf %442, %456 : vector<8x128xf32>
    %458 = arith.addf %453, %457 : vector<8x128xf32>
    %459 = math.tanh %458 : vector<8x128xf32>
    %cst_75 = arith.constant 1.000000e+00 : f32
    %460 = vector.broadcast %cst_75 : f32 to vector<8x128xf32>
    %461 = arith.subf %460, %451 : vector<8x128xf32>
    %462 = arith.mulf %461, %459 : vector<8x128xf32>
    %463 = arith.mulf %451, %422 : vector<8x128xf32>
    %464 = arith.addf %462, %463 : vector<8x128xf32>
    %465 = arith.addi %6, %c10_i32 : i32
    %466 = vector.broadcast %465 : i32 to vector<8x1xi32>
    %467 = arith.cmpi eq, %5, %466 : vector<8x1xi32>
    %468 = vector.shape_cast %467 : vector<8x1xi1> to vector<8x1xi1>
    %469 = vector.broadcast %468 : vector<8x1xi1> to vector<8x128xi1>
    %470 = arith.select %469, %464, %428 : vector<8x128xi1>, vector<8x128xf32>
    %c11_i32 = arith.constant 11 : i32
    %471 = arith.index_cast %c11_i32 : i32 to index
    %c0_76 = arith.constant 0 : index
    %c0_77 = arith.constant 0 : index
    %472 = vector.load %arg3[%471, %c0_76, %c0_77] : memref<16x8x384xbf16, #tpu.memory_space<vmem>>, vector<1x8x384xbf16>
    %473 = vector.shape_cast %472 : vector<1x8x384xbf16> to vector<8x384xbf16>
    %474 = arith.truncf %464 : vector<8x128xf32> to vector<8x128xbf16>
    %cst_78 = arith.constant dense<0.000000e+00> : vector<8x384xf32>
    %475 = tpu.matmul %474, %3, %cst_78 {dimension_numbers = #tpu.dot_dimension_numbers<[1], [0], [0], [1], [0, 0, 1, 1], [], []>} : vector<8x128xbf16>, vector<128x384xbf16>, vector<8x384xf32> -> vector<8x384xf32>
    %476 = vector.extract_strided_slice %473 {offsets = [0, 0], sizes = [8, 128], strides = [1, 1]} : vector<8x384xbf16> to vector<8x128xbf16>
    %477 = arith.extf %476 : vector<8x128xbf16> to vector<8x128xf32>
    %478 = vector.extract_strided_slice %475 {offsets = [0, 0], sizes = [8, 128], strides = [1, 1]} : vector<8x384xf32> to vector<8x128xf32>
    %479 = arith.addf %477, %478 : vector<8x128xf32>
    %480 = arith.negf %479 : vector<8x128xf32>
    %481 = math.exp %480 : vector<8x128xf32>
    %cst_79 = arith.constant 1.000000e+00 : f32
    %482 = vector.broadcast %cst_79 : f32 to vector<8x128xf32>
    %483 = arith.addf %482, %481 : vector<8x128xf32>
    %484 = arith.divf %482, %483 : vector<8x128xf32>
    %485 = vector.extract_strided_slice %473 {offsets = [0, 128], sizes = [8, 128], strides = [1, 1]} : vector<8x384xbf16> to vector<8x128xbf16>
    %486 = arith.extf %485 : vector<8x128xbf16> to vector<8x128xf32>
    %487 = vector.extract_strided_slice %475 {offsets = [0, 128], sizes = [8, 128], strides = [1, 1]} : vector<8x384xf32> to vector<8x128xf32>
    %488 = arith.addf %486, %487 : vector<8x128xf32>
    %489 = arith.negf %488 : vector<8x128xf32>
    %490 = math.exp %489 : vector<8x128xf32>
    %cst_80 = arith.constant 1.000000e+00 : f32
    %491 = vector.broadcast %cst_80 : f32 to vector<8x128xf32>
    %492 = arith.addf %491, %490 : vector<8x128xf32>
    %493 = arith.divf %491, %492 : vector<8x128xf32>
    %494 = vector.extract_strided_slice %473 {offsets = [0, 256], sizes = [8, 128], strides = [1, 1]} : vector<8x384xbf16> to vector<8x128xbf16>
    %495 = arith.extf %494 : vector<8x128xbf16> to vector<8x128xf32>
    %496 = vector.extract_strided_slice %475 {offsets = [0, 256], sizes = [8, 128], strides = [1, 1]} : vector<8x384xf32> to vector<8x128xf32>
    %497 = vector.broadcast %4 : vector<1x128xf32> to vector<8x128xf32>
    %498 = arith.addf %496, %497 : vector<8x128xf32>
    %499 = arith.mulf %484, %498 : vector<8x128xf32>
    %500 = arith.addf %495, %499 : vector<8x128xf32>
    %501 = math.tanh %500 : vector<8x128xf32>
    %cst_81 = arith.constant 1.000000e+00 : f32
    %502 = vector.broadcast %cst_81 : f32 to vector<8x128xf32>
    %503 = arith.subf %502, %493 : vector<8x128xf32>
    %504 = arith.mulf %503, %501 : vector<8x128xf32>
    %505 = arith.mulf %493, %464 : vector<8x128xf32>
    %506 = arith.addf %504, %505 : vector<8x128xf32>
    %507 = arith.addi %6, %c11_i32 : i32
    %508 = vector.broadcast %507 : i32 to vector<8x1xi32>
    %509 = arith.cmpi eq, %5, %508 : vector<8x1xi32>
    %510 = vector.shape_cast %509 : vector<8x1xi1> to vector<8x1xi1>
    %511 = vector.broadcast %510 : vector<8x1xi1> to vector<8x128xi1>
    %512 = arith.select %511, %506, %470 : vector<8x128xi1>, vector<8x128xf32>
    %c12_i32 = arith.constant 12 : i32
    %513 = arith.index_cast %c12_i32 : i32 to index
    %c0_82 = arith.constant 0 : index
    %c0_83 = arith.constant 0 : index
    %514 = vector.load %arg3[%513, %c0_82, %c0_83] : memref<16x8x384xbf16, #tpu.memory_space<vmem>>, vector<1x8x384xbf16>
    %515 = vector.shape_cast %514 : vector<1x8x384xbf16> to vector<8x384xbf16>
    %516 = arith.truncf %506 : vector<8x128xf32> to vector<8x128xbf16>
    %cst_84 = arith.constant dense<0.000000e+00> : vector<8x384xf32>
    %517 = tpu.matmul %516, %3, %cst_84 {dimension_numbers = #tpu.dot_dimension_numbers<[1], [0], [0], [1], [0, 0, 1, 1], [], []>} : vector<8x128xbf16>, vector<128x384xbf16>, vector<8x384xf32> -> vector<8x384xf32>
    %518 = vector.extract_strided_slice %515 {offsets = [0, 0], sizes = [8, 128], strides = [1, 1]} : vector<8x384xbf16> to vector<8x128xbf16>
    %519 = arith.extf %518 : vector<8x128xbf16> to vector<8x128xf32>
    %520 = vector.extract_strided_slice %517 {offsets = [0, 0], sizes = [8, 128], strides = [1, 1]} : vector<8x384xf32> to vector<8x128xf32>
    %521 = arith.addf %519, %520 : vector<8x128xf32>
    %522 = arith.negf %521 : vector<8x128xf32>
    %523 = math.exp %522 : vector<8x128xf32>
    %cst_85 = arith.constant 1.000000e+00 : f32
    %524 = vector.broadcast %cst_85 : f32 to vector<8x128xf32>
    %525 = arith.addf %524, %523 : vector<8x128xf32>
    %526 = arith.divf %524, %525 : vector<8x128xf32>
    %527 = vector.extract_strided_slice %515 {offsets = [0, 128], sizes = [8, 128], strides = [1, 1]} : vector<8x384xbf16> to vector<8x128xbf16>
    %528 = arith.extf %527 : vector<8x128xbf16> to vector<8x128xf32>
    %529 = vector.extract_strided_slice %517 {offsets = [0, 128], sizes = [8, 128], strides = [1, 1]} : vector<8x384xf32> to vector<8x128xf32>
    %530 = arith.addf %528, %529 : vector<8x128xf32>
    %531 = arith.negf %530 : vector<8x128xf32>
    %532 = math.exp %531 : vector<8x128xf32>
    %cst_86 = arith.constant 1.000000e+00 : f32
    %533 = vector.broadcast %cst_86 : f32 to vector<8x128xf32>
    %534 = arith.addf %533, %532 : vector<8x128xf32>
    %535 = arith.divf %533, %534 : vector<8x128xf32>
    %536 = vector.extract_strided_slice %515 {offsets = [0, 256], sizes = [8, 128], strides = [1, 1]} : vector<8x384xbf16> to vector<8x128xbf16>
    %537 = arith.extf %536 : vector<8x128xbf16> to vector<8x128xf32>
    %538 = vector.extract_strided_slice %517 {offsets = [0, 256], sizes = [8, 128], strides = [1, 1]} : vector<8x384xf32> to vector<8x128xf32>
    %539 = vector.broadcast %4 : vector<1x128xf32> to vector<8x128xf32>
    %540 = arith.addf %538, %539 : vector<8x128xf32>
    %541 = arith.mulf %526, %540 : vector<8x128xf32>
    %542 = arith.addf %537, %541 : vector<8x128xf32>
    %543 = math.tanh %542 : vector<8x128xf32>
    %cst_87 = arith.constant 1.000000e+00 : f32
    %544 = vector.broadcast %cst_87 : f32 to vector<8x128xf32>
    %545 = arith.subf %544, %535 : vector<8x128xf32>
    %546 = arith.mulf %545, %543 : vector<8x128xf32>
    %547 = arith.mulf %535, %506 : vector<8x128xf32>
    %548 = arith.addf %546, %547 : vector<8x128xf32>
    %549 = arith.addi %6, %c12_i32 : i32
    %550 = vector.broadcast %549 : i32 to vector<8x1xi32>
    %551 = arith.cmpi eq, %5, %550 : vector<8x1xi32>
    %552 = vector.shape_cast %551 : vector<8x1xi1> to vector<8x1xi1>
    %553 = vector.broadcast %552 : vector<8x1xi1> to vector<8x128xi1>
    %554 = arith.select %553, %548, %512 : vector<8x128xi1>, vector<8x128xf32>
    %c13_i32 = arith.constant 13 : i32
    %555 = arith.index_cast %c13_i32 : i32 to index
    %c0_88 = arith.constant 0 : index
    %c0_89 = arith.constant 0 : index
    %556 = vector.load %arg3[%555, %c0_88, %c0_89] : memref<16x8x384xbf16, #tpu.memory_space<vmem>>, vector<1x8x384xbf16>
    %557 = vector.shape_cast %556 : vector<1x8x384xbf16> to vector<8x384xbf16>
    %558 = arith.truncf %548 : vector<8x128xf32> to vector<8x128xbf16>
    %cst_90 = arith.constant dense<0.000000e+00> : vector<8x384xf32>
    %559 = tpu.matmul %558, %3, %cst_90 {dimension_numbers = #tpu.dot_dimension_numbers<[1], [0], [0], [1], [0, 0, 1, 1], [], []>} : vector<8x128xbf16>, vector<128x384xbf16>, vector<8x384xf32> -> vector<8x384xf32>
    %560 = vector.extract_strided_slice %557 {offsets = [0, 0], sizes = [8, 128], strides = [1, 1]} : vector<8x384xbf16> to vector<8x128xbf16>
    %561 = arith.extf %560 : vector<8x128xbf16> to vector<8x128xf32>
    %562 = vector.extract_strided_slice %559 {offsets = [0, 0], sizes = [8, 128], strides = [1, 1]} : vector<8x384xf32> to vector<8x128xf32>
    %563 = arith.addf %561, %562 : vector<8x128xf32>
    %564 = arith.negf %563 : vector<8x128xf32>
    %565 = math.exp %564 : vector<8x128xf32>
    %cst_91 = arith.constant 1.000000e+00 : f32
    %566 = vector.broadcast %cst_91 : f32 to vector<8x128xf32>
    %567 = arith.addf %566, %565 : vector<8x128xf32>
    %568 = arith.divf %566, %567 : vector<8x128xf32>
    %569 = vector.extract_strided_slice %557 {offsets = [0, 128], sizes = [8, 128], strides = [1, 1]} : vector<8x384xbf16> to vector<8x128xbf16>
    %570 = arith.extf %569 : vector<8x128xbf16> to vector<8x128xf32>
    %571 = vector.extract_strided_slice %559 {offsets = [0, 128], sizes = [8, 128], strides = [1, 1]} : vector<8x384xf32> to vector<8x128xf32>
    %572 = arith.addf %570, %571 : vector<8x128xf32>
    %573 = arith.negf %572 : vector<8x128xf32>
    %574 = math.exp %573 : vector<8x128xf32>
    %cst_92 = arith.constant 1.000000e+00 : f32
    %575 = vector.broadcast %cst_92 : f32 to vector<8x128xf32>
    %576 = arith.addf %575, %574 : vector<8x128xf32>
    %577 = arith.divf %575, %576 : vector<8x128xf32>
    %578 = vector.extract_strided_slice %557 {offsets = [0, 256], sizes = [8, 128], strides = [1, 1]} : vector<8x384xbf16> to vector<8x128xbf16>
    %579 = arith.extf %578 : vector<8x128xbf16> to vector<8x128xf32>
    %580 = vector.extract_strided_slice %559 {offsets = [0, 256], sizes = [8, 128], strides = [1, 1]} : vector<8x384xf32> to vector<8x128xf32>
    %581 = vector.broadcast %4 : vector<1x128xf32> to vector<8x128xf32>
    %582 = arith.addf %580, %581 : vector<8x128xf32>
    %583 = arith.mulf %568, %582 : vector<8x128xf32>
    %584 = arith.addf %579, %583 : vector<8x128xf32>
    %585 = math.tanh %584 : vector<8x128xf32>
    %cst_93 = arith.constant 1.000000e+00 : f32
    %586 = vector.broadcast %cst_93 : f32 to vector<8x128xf32>
    %587 = arith.subf %586, %577 : vector<8x128xf32>
    %588 = arith.mulf %587, %585 : vector<8x128xf32>
    %589 = arith.mulf %577, %548 : vector<8x128xf32>
    %590 = arith.addf %588, %589 : vector<8x128xf32>
    %591 = arith.addi %6, %c13_i32 : i32
    %592 = vector.broadcast %591 : i32 to vector<8x1xi32>
    %593 = arith.cmpi eq, %5, %592 : vector<8x1xi32>
    %594 = vector.shape_cast %593 : vector<8x1xi1> to vector<8x1xi1>
    %595 = vector.broadcast %594 : vector<8x1xi1> to vector<8x128xi1>
    %596 = arith.select %595, %590, %554 : vector<8x128xi1>, vector<8x128xf32>
    %c14_i32 = arith.constant 14 : i32
    %597 = arith.index_cast %c14_i32 : i32 to index
    %c0_94 = arith.constant 0 : index
    %c0_95 = arith.constant 0 : index
    %598 = vector.load %arg3[%597, %c0_94, %c0_95] : memref<16x8x384xbf16, #tpu.memory_space<vmem>>, vector<1x8x384xbf16>
    %599 = vector.shape_cast %598 : vector<1x8x384xbf16> to vector<8x384xbf16>
    %600 = arith.truncf %590 : vector<8x128xf32> to vector<8x128xbf16>
    %cst_96 = arith.constant dense<0.000000e+00> : vector<8x384xf32>
    %601 = tpu.matmul %600, %3, %cst_96 {dimension_numbers = #tpu.dot_dimension_numbers<[1], [0], [0], [1], [0, 0, 1, 1], [], []>} : vector<8x128xbf16>, vector<128x384xbf16>, vector<8x384xf32> -> vector<8x384xf32>
    %602 = vector.extract_strided_slice %599 {offsets = [0, 0], sizes = [8, 128], strides = [1, 1]} : vector<8x384xbf16> to vector<8x128xbf16>
    %603 = arith.extf %602 : vector<8x128xbf16> to vector<8x128xf32>
    %604 = vector.extract_strided_slice %601 {offsets = [0, 0], sizes = [8, 128], strides = [1, 1]} : vector<8x384xf32> to vector<8x128xf32>
    %605 = arith.addf %603, %604 : vector<8x128xf32>
    %606 = arith.negf %605 : vector<8x128xf32>
    %607 = math.exp %606 : vector<8x128xf32>
    %cst_97 = arith.constant 1.000000e+00 : f32
    %608 = vector.broadcast %cst_97 : f32 to vector<8x128xf32>
    %609 = arith.addf %608, %607 : vector<8x128xf32>
    %610 = arith.divf %608, %609 : vector<8x128xf32>
    %611 = vector.extract_strided_slice %599 {offsets = [0, 128], sizes = [8, 128], strides = [1, 1]} : vector<8x384xbf16> to vector<8x128xbf16>
    %612 = arith.extf %611 : vector<8x128xbf16> to vector<8x128xf32>
    %613 = vector.extract_strided_slice %601 {offsets = [0, 128], sizes = [8, 128], strides = [1, 1]} : vector<8x384xf32> to vector<8x128xf32>
    %614 = arith.addf %612, %613 : vector<8x128xf32>
    %615 = arith.negf %614 : vector<8x128xf32>
    %616 = math.exp %615 : vector<8x128xf32>
    %cst_98 = arith.constant 1.000000e+00 : f32
    %617 = vector.broadcast %cst_98 : f32 to vector<8x128xf32>
    %618 = arith.addf %617, %616 : vector<8x128xf32>
    %619 = arith.divf %617, %618 : vector<8x128xf32>
    %620 = vector.extract_strided_slice %599 {offsets = [0, 256], sizes = [8, 128], strides = [1, 1]} : vector<8x384xbf16> to vector<8x128xbf16>
    %621 = arith.extf %620 : vector<8x128xbf16> to vector<8x128xf32>
    %622 = vector.extract_strided_slice %601 {offsets = [0, 256], sizes = [8, 128], strides = [1, 1]} : vector<8x384xf32> to vector<8x128xf32>
    %623 = vector.broadcast %4 : vector<1x128xf32> to vector<8x128xf32>
    %624 = arith.addf %622, %623 : vector<8x128xf32>
    %625 = arith.mulf %610, %624 : vector<8x128xf32>
    %626 = arith.addf %621, %625 : vector<8x128xf32>
    %627 = math.tanh %626 : vector<8x128xf32>
    %cst_99 = arith.constant 1.000000e+00 : f32
    %628 = vector.broadcast %cst_99 : f32 to vector<8x128xf32>
    %629 = arith.subf %628, %619 : vector<8x128xf32>
    %630 = arith.mulf %629, %627 : vector<8x128xf32>
    %631 = arith.mulf %619, %590 : vector<8x128xf32>
    %632 = arith.addf %630, %631 : vector<8x128xf32>
    %633 = arith.addi %6, %c14_i32 : i32
    %634 = vector.broadcast %633 : i32 to vector<8x1xi32>
    %635 = arith.cmpi eq, %5, %634 : vector<8x1xi32>
    %636 = vector.shape_cast %635 : vector<8x1xi1> to vector<8x1xi1>
    %637 = vector.broadcast %636 : vector<8x1xi1> to vector<8x128xi1>
    %638 = arith.select %637, %632, %596 : vector<8x128xi1>, vector<8x128xf32>
    %c15_i32 = arith.constant 15 : i32
    %639 = arith.index_cast %c15_i32 : i32 to index
    %c0_100 = arith.constant 0 : index
    %c0_101 = arith.constant 0 : index
    %640 = vector.load %arg3[%639, %c0_100, %c0_101] : memref<16x8x384xbf16, #tpu.memory_space<vmem>>, vector<1x8x384xbf16>
    %641 = vector.shape_cast %640 : vector<1x8x384xbf16> to vector<8x384xbf16>
    %642 = arith.truncf %632 : vector<8x128xf32> to vector<8x128xbf16>
    %cst_102 = arith.constant dense<0.000000e+00> : vector<8x384xf32>
    %643 = tpu.matmul %642, %3, %cst_102 {dimension_numbers = #tpu.dot_dimension_numbers<[1], [0], [0], [1], [0, 0, 1, 1], [], []>} : vector<8x128xbf16>, vector<128x384xbf16>, vector<8x384xf32> -> vector<8x384xf32>
    %644 = vector.extract_strided_slice %641 {offsets = [0, 0], sizes = [8, 128], strides = [1, 1]} : vector<8x384xbf16> to vector<8x128xbf16>
    %645 = arith.extf %644 : vector<8x128xbf16> to vector<8x128xf32>
    %646 = vector.extract_strided_slice %643 {offsets = [0, 0], sizes = [8, 128], strides = [1, 1]} : vector<8x384xf32> to vector<8x128xf32>
    %647 = arith.addf %645, %646 : vector<8x128xf32>
    %648 = arith.negf %647 : vector<8x128xf32>
    %649 = math.exp %648 : vector<8x128xf32>
    %cst_103 = arith.constant 1.000000e+00 : f32
    %650 = vector.broadcast %cst_103 : f32 to vector<8x128xf32>
    %651 = arith.addf %650, %649 : vector<8x128xf32>
    %652 = arith.divf %650, %651 : vector<8x128xf32>
    %653 = vector.extract_strided_slice %641 {offsets = [0, 128], sizes = [8, 128], strides = [1, 1]} : vector<8x384xbf16> to vector<8x128xbf16>
    %654 = arith.extf %653 : vector<8x128xbf16> to vector<8x128xf32>
    %655 = vector.extract_strided_slice %643 {offsets = [0, 128], sizes = [8, 128], strides = [1, 1]} : vector<8x384xf32> to vector<8x128xf32>
    %656 = arith.addf %654, %655 : vector<8x128xf32>
    %657 = arith.negf %656 : vector<8x128xf32>
    %658 = math.exp %657 : vector<8x128xf32>
    %cst_104 = arith.constant 1.000000e+00 : f32
    %659 = vector.broadcast %cst_104 : f32 to vector<8x128xf32>
    %660 = arith.addf %659, %658 : vector<8x128xf32>
    %661 = arith.divf %659, %660 : vector<8x128xf32>
    %662 = vector.extract_strided_slice %641 {offsets = [0, 256], sizes = [8, 128], strides = [1, 1]} : vector<8x384xbf16> to vector<8x128xbf16>
    %663 = arith.extf %662 : vector<8x128xbf16> to vector<8x128xf32>
    %664 = vector.extract_strided_slice %643 {offsets = [0, 256], sizes = [8, 128], strides = [1, 1]} : vector<8x384xf32> to vector<8x128xf32>
    %665 = vector.broadcast %4 : vector<1x128xf32> to vector<8x128xf32>
    %666 = arith.addf %664, %665 : vector<8x128xf32>
    %667 = arith.mulf %652, %666 : vector<8x128xf32>
    %668 = arith.addf %663, %667 : vector<8x128xf32>
    %669 = math.tanh %668 : vector<8x128xf32>
    %cst_105 = arith.constant 1.000000e+00 : f32
    %670 = vector.broadcast %cst_105 : f32 to vector<8x128xf32>
    %671 = arith.subf %670, %661 : vector<8x128xf32>
    %672 = arith.mulf %671, %669 : vector<8x128xf32>
    %673 = arith.mulf %661, %632 : vector<8x128xf32>
    %674 = arith.addf %672, %673 : vector<8x128xf32>
    %675 = arith.addi %6, %c15_i32 : i32
    %676 = vector.broadcast %675 : i32 to vector<8x1xi32>
    %677 = arith.cmpi eq, %5, %676 : vector<8x1xi32>
    %678 = vector.shape_cast %677 : vector<8x1xi1> to vector<8x1xi1>
    %679 = vector.broadcast %678 : vector<8x1xi1> to vector<8x128xi1>
    %680 = arith.select %679, %674, %638 : vector<8x128xi1>, vector<8x128xf32>
    %c16_i32_106 = arith.constant 16 : i32
    %c0_107 = arith.constant 0 : index
    %c0_108 = arith.constant 0 : index
    %681 = vector.load %arg7[%c0_107, %c0_108] : memref<8x128xf32, #tpu.memory_space<vmem>>, vector<8x128xf32>
    tpu.vector_store %arg7[%c0_107, %c0_108], %674 {strides = array<i32>} : memref<8x128xf32, #tpu.memory_space<vmem>>, vector<8x128xf32>,
    %c0_109 = arith.constant 0 : index
    %c0_110 = arith.constant 0 : index
    %682 = vector.load %arg6[%c0_109, %c0_110] : memref<8x128xf32, #tpu.memory_space<vmem>>, vector<8x128xf32>
    tpu.vector_store %arg6[%c0_109, %c0_110], %680 {strides = array<i32>} : memref<8x128xf32, #tpu.memory_space<vmem>>, vector<8x128xf32>,
    return
  }
  func.func @transform_0(%arg0: i32, %arg1: i32) -> (i32, i32) {
    %c0_i32 = arith.constant 0 : i32
    %c0_i32_0 = arith.constant 0 : i32
    return %arg0, %c0_i32 : i32, i32
  }
  func.func @transform_1(%arg0: i32, %arg1: i32) -> (i32, i32, i32) {
    %c0_i32 = arith.constant 0 : i32
    %c0_i32_0 = arith.constant 0 : i32
    return %arg1, %arg0, %c0_i32 : i32, i32, i32
  }
  func.func @transform_2(%arg0: i32, %arg1: i32) -> (i32, i32) {
    %c0_i32 = arith.constant 0 : i32
    %c0_i32_0 = arith.constant 0 : i32
    %c0_i32_1 = arith.constant 0 : i32
    return %c0_i32, %c0_i32_0 : i32, i32
  }
  func.func @transform_3(%arg0: i32, %arg1: i32) -> (i32, i32) {
    %c0_i32 = arith.constant 0 : i32
    %c0_i32_0 = arith.constant 0 : i32
    %c0_i32_1 = arith.constant 0 : i32
    return %c0_i32, %c0_i32_0 : i32, i32
  }
  func.func @transform_4(%arg0: i32, %arg1: i32) -> (i32, i32) {
    %c0_i32 = arith.constant 0 : i32
    %c0_i32_0 = arith.constant 0 : i32
    return %arg0, %c0_i32 : i32, i32
  }
}

</mosaic_0001>

<bundles_post_ra>
// kernel: gru4rec_forward.3
= control target key start
LH: loop header
LB: loop body
LE: loop exit
PB: predicated region body
PF: predicated region fallthrough
CT: control target
= control target key end

     0   :  { %s585_s1 = inlined_call_operand.vmem [shape: bf16[512,128], index: 1, kind: input, shape index: {}]   ;;  %s586_s0 = inlined_call_operand.vmem [shape: bf16[8,128], index: 0, kind: input, shape index: {}]   ;;  %s587_s2 = inlined_call_operand.vmem [shape: f32[8,512], index: 2, kind: output, shape index: {}]  }
   0x1   :  { %v427_v0 = vld [vmem:[%s585_s1 + $0x40] sm:$0xff]   ;;  %v431_v4 = vld [vmem:[%s585_s1 + $0x48] sm:$0xff]   ;;  %v435_v8 = vld [vmem:[%s585_s1 + $0x50] sm:$0xff]  }
   0x2   :  { %v428_v1 = vld [vmem:[%s585_s1 + $0xc0] sm:$0xff]   ;;  %391 = vmatprep.subr.bf16.mxu0 %v427_v0  ;;  %v432_v5 = vld [vmem:[%s585_s1 + $0xc8] sm:$0xff]   ;;  %v436_v9 = vld [vmem:[%s585_s1 + $0xd0] sm:$0xff]  }
   0x3   :  { %v429_v2 = vld [vmem:[%s585_s1] sm:$0xff]   ;;  %409 = vmatprep.subr.bf16.mxu1 %v428_v1  ;;  %v433_v6 = vld [vmem:[%s585_s1 + $0x8] sm:$0xff]   ;;  %v437_v10 = vld [vmem:[%s585_s1 + $0x10] sm:$0xff]  }
   0x4   :  { %v430_v3 = vld [vmem:[%s585_s1 + $0x80] sm:$0xff]   ;;  %392 = vmatpush3.bf16.xpose.msra.mxu0 %v429_v2  ;;  %v434_v7 = vld [vmem:[%s585_s1 + $0x88] sm:$0xff]   ;;  %v438_v11 = vld [vmem:[%s585_s1 + $0x90] sm:$0xff]  }
   0x5   :  { %410 = vmatpush3.bf16.xpose.msra.mxu1 %v430_v3  ;;  %393 = vmatprep.subr.bf16.mxu0 %v431_v4  ;;  %v439_v12 = vld [vmem:[%s585_s1 + $0x58] sm:$0xff]   ;;  %v443_v16 = vld [vmem:[%s585_s1 + $0x60] sm:$0xff]   ;;  %v447_v21 = vld [vmem:[%s585_s1 + $0x68] sm:$0xff]  }
   0x6   :  { %411 = vmatprep.subr.bf16.mxu1 %v432_v5  ;;  %v440_v13 = vld [vmem:[%s585_s1 + $0xd8] sm:$0xff]   ;;  %v444_v17 = vld [vmem:[%s585_s1 + $0xe0] sm:$0xff]   ;;  %v448_v22 = vld [vmem:[%s585_s1 + $0xe8] sm:$0xff]  }
   0x7   :  { %v441_v14 = vld [vmem:[%s585_s1 + $0x18] sm:$0xff]   ;;  %v445_v18 = vld [vmem:[%s585_s1 + $0x20] sm:$0xff]   ;;  %v449_v23 = vld [vmem:[%s585_s1 + $0x28] sm:$0xff]  }
   0x8   :  { %v442_v15 = vld [vmem:[%s585_s1 + $0x98] sm:$0xff]   ;;  %v12_v19 = vld [vmem:[%s586_s0] sm:$0xf]  ;;  %v450_v24 = vld [vmem:[%s585_s1 + $0xa8] sm:$0xff]  }
   0x9   :  { %v446_v20 = vld [vmem:[%s585_s1 + $0xa0] sm:$0xff]   ;;  %407 = vmatprep.mubr.bf16.mxu0 %v12_v19  ;;  %425 = vmatprep.mubr.bf16.mxu1 %v12_v19  ;;  %v451_v25 = vld [vmem:[%s585_s1 + $0x70] sm:$0xff]   ;;  %v455_v29 = vld [vmem:[%s585_s1 + $0x78] sm:$0xff]  }
   0xa   :  { %v452_v26 = vld [vmem:[%s585_s1 + $0xf0] sm:$0xff]   ;;  %v456_v30 = vld [vmem:[%s585_s1 + $0xf8] sm:$0xff]  }
   0xb   :  { %v453_v27 = vld [vmem:[%s585_s1 + $0x30] sm:$0xff]   ;;  %v457_v31 = vld [vmem:[%s585_s1 + $0x38] sm:$0xff]  }
   0xc   :  { %394 = vmatpush3.bf16.xpose.msra.mxu0 %v433_v6  ;;  %v454_v28 = vld [vmem:[%s585_s1 + $0xb0] sm:$0xff]   ;;  %v458_v32 = vld [vmem:[%s585_s1 + $0xb8] sm:$0xff]  }
   0xd   :  { %412 = vmatpush3.bf16.xpose.msra.mxu1 %v434_v7  ;;  %395 = vmatprep.subr.bf16.mxu0 %v435_v8 }
   0xe   :  { %413 = vmatprep.subr.bf16.mxu1 %v436_v9 }
  0x14   :  { %396 = vmatpush3.bf16.xpose.msra.mxu0 %v437_v10 }
  0x15   :  { %414 = vmatpush3.bf16.xpose.msra.mxu1 %v438_v11  ;;  %397 = vmatprep.subr.bf16.mxu0 %v439_v12 }
  0x16   :  { %415 = vmatprep.subr.bf16.mxu1 %v440_v13 }
  0x1c   :  { %398 = vmatpush3.bf16.xpose.msra.mxu0 %v441_v14 }
  0x1d   :  { %416 = vmatpush3.bf16.xpose.msra.mxu1 %v442_v15  ;;  %399 = vmatprep.subr.bf16.mxu0 %v443_v16 }
  0x1e   :  { %417 = vmatprep.subr.bf16.mxu1 %v444_v17 }
  0x24   :  { %400 = vmatpush3.bf16.xpose.msra.mxu0 %v445_v18 }
  0x25   :  { %418 = vmatpush3.bf16.xpose.msra.mxu1 %v446_v20  ;;  %401 = vmatprep.subr.bf16.mxu0 %v447_v21 }
  0x26   :  { %419 = vmatprep.subr.bf16.mxu1 %v448_v22 }
  0x2c   :  { %402 = vmatpush3.bf16.xpose.msra.mxu0 %v449_v23 }
  0x2d   :  { %420 = vmatpush3.bf16.xpose.msra.mxu1 %v450_v24  ;;  %403 = vmatprep.subr.bf16.mxu0 %v451_v25 }
  0x2e   :  { %421 = vmatprep.subr.bf16.mxu1 %v452_v26 }
  0x34   :  { %404 = vmatpush3.bf16.xpose.msra.mxu0 %v453_v27 }
  0x35   :  { %422 = vmatpush3.bf16.xpose.msra.mxu1 %v454_v28  ;;  %405 = vmatprep.subr.bf16.mxu0 %v455_v29 }
  0x36   :  { %423 = vmatprep.subr.bf16.mxu1 %v456_v30 }
  0x3c   :  { %406 = vmatpush3.bf16.xpose.msra.mxu0 %v457_v31 }
  0x3d   :  { %424 = vmatpush3.bf16.xpose.msra.mxu1 %v458_v32 }
  0x43   :  { %408 = vmatmul.mubr.bf16.vlgmr.msra.gmra.mrb[0].mxu0 %v12_v19 }
  0x44   :  { %426 = vmatmul.mubr.bf16.vlgmr.msra.gmra.mrb[0].mxu1 %v12_v19 }
 0x116   :  { %v303_v33 = vpop.f32.mrb[0].mxu0 }
 0x117   :  { %351 = vst [vmem:[%s587_s2] sm:$0xff] %v303_v33  ;;  %v344_v34 = vpop.f32.mrb[0].mxu1  ;;  %v305_v35 = vpop.f32.mrb[1].mxu0 }
 0x118   :  { %353 = vst [vmem:[%s587_s2 + $0x10] sm:$0xff] %v344_v34  ;;  %352 = vst [vmem:[%s587_s2 + $0x8] sm:$0xff] %v305_v35  ;;  %v346_v36 = vpop.f32.mrb[1].mxu1  ;;  %v307_v37 = vpop.f32.mrb[2].mxu0 }
 0x119   :  { %354 = vst [vmem:[%s587_s2 + $0x18] sm:$0xff] %v346_v36  ;;  %v348_v38 = vpop.f32.mrb[2].mxu1  ;;  %v308_v39 = vpop.f32.mrb[3].mxu0 }
 0x11a   :  { %v349_v40 = vpop.f32.mrb[3].mxu1 }

// kernel: gru4rec_forward.2
= control target key start
LH: loop header
LB: loop body
LE: loop exit
PB: predicated region body
PF: predicated region fallthrough
CT: control target
= control target key end

     0   :  { %s3348_s15 = smov 0   ;;  %s3350_s16 = smov 0   ;;  %s4543_s0 = inlined_call_operand.vmem [shape: s32[8,1], index: 0, kind: input, shape index: {}]   ;;  %s4544_s1 = inlined_call_operand.vmem [shape: bf16[32,8,384], index: 1, kind: input, shape index: {}]   ;;  %s4545_s2 = inlined_call_operand.vmem [shape: bf16[128,384], index: 2, kind: input, shape index: {}]   ;;  %s4546_s3 = inlined_call_operand.vmem [shape: f32[1,128], index: 3, kind: input, shape index: {}]   ;;  %s4547_s4 = inlined_call_operand.vmem [shape: f32[8,128], index: 4, kind: output, shape index: {}]  }
   0x1   :  { %s3352_s17 = smov 0  }
   0x2 LB: > { %s23_s18 = sadd.s32 1, %s3313_s16  ;;  %p2461_p0 = scmp.ge.s32.totalorder %s3317_s17, 1  ;;  %s3317_s17 = sphi %s3352_s17, %s14_s17   ;;  %s3313_s16 = sphi %s3350_s16, %s4549_s16   ;;  %s3309_s15 = sphi %s3348_s15, %s4548_s15  }
   0x3   : > { %p24_p1 = scmp.ge.s32.totalorder %s23_s18, 2  ;;  %p191_p2 = scmp.lt.s32.totalorder %s3317_s17, 3 }
   0x5   : > { %s4551_s18 = smov (%p24_p1, %s23_s18), 0  ;;  %p192_p3 = pnand %p2461_p0, %p191_p2 }
   0x6   : > { %s3366_s19 = sshll.u32 (!%p192_p3), %s3309_s15, 4  ;;  %p2464_p5 = scmp.ne.s32.totalorder (!%p192_p3), %s3309_s15, 0 }
   0x7   : > { %195 = sbr.rel (%p192_p3) target bundleno = 4232 (0x1088), region = 36  ;;  %p230_p4 = scmp.lt.s32.totalorder (!%p192_p3), %s3366_s19, 31 }
   0xe   : > { %s231_s20 = scalar_select %p230_p4, %s3366_s19, 31 }
   0xf   : > { %248 = sbr.rel (%p2464_p5) target bundleno = 22 (0x16), region = 40  ;;  %v3319_v0 = vmov (!%p2464_p5), 0.0  }
  0x10   : > { %s3020_s21 = smul.u32 12, %s231_s20  ;;  %249 = vst [vmem:[#allocation2] sm:$0xff] (!%p2464_p5), %v3319_v0  ;;  %250 = vst [vmem:[%s4547_s4] sm:$0xff] (!%p2464_p5), %v3319_v0 }
  0x12   : > { %s3373_s24 = scalar_lea.vmem %s4544_s1, %s3020_s21 }
  0x16 PF: > { %v3381_v1 = vld [vmem:[%s4545_s2 + $0x4] ss:$12 sps:$4 sm:$0xff]   ;;  %v3386_v2 = vld [vmem:[%s4545_s2] ss:$12 sps:$4 sm:$0xff]   ;;  %v3320_v3 = vmov 0.0   ;;  %v3321_v4 = vmov 0   ;;  %v534_v17 = vstv %s3366_s19 }
  0x17   : > { %2700 = vmatprep.subr.bf16.mxu1 %v3320_v3  ;;  %451 = vmatprep.mubr.bf16.mxu0 %v3321_v4  ;;  %v3394_v5 = vld [vmem:[%s4545_s2 + $0x1c] ss:$12 sps:$4 sm:$0xff]   ;;  %vm3322_vm0 = vmmov 0   ;;  %v3402_v6 = vld [vmem:[%s4545_s2 + $0x18] ss:$12 sps:$4 sm:$0xff]   ;;  %s655_s9 = sadd.s32 1, %s3366_s19 }
  0x18   : > { %419 = vmatprep.subr.bf16.mxu0 %v3381_v1  ;;  %2716 = vmatprep.mubr.msk.bf16.mxu1 %vm3322_vm0, %v3320_v3  ;;  %v3409_v7 = vld [vmem:[%s4545_s2 + $0x34] ss:$12 sps:$4 sm:$0xff]   ;;  %v3416_v8 = vld [vmem:[%s4545_s2 + $0x30] ss:$12 sps:$4 sm:$0xff]   ;;  %v3422_v9 = vld [vmem:[%s4545_s2 + $0x4c] ss:$12 sps:$4 sm:$0xff]   ;;  %v656_v32 = vstv %s655_s9 }
  0x19   : > { %420 = vmatpush1.bf16.msra.mxu0 %v3386_v2  ;;  %3049 = vset.pattern.permute.xlu0 %v3321_v4  ;;  %v3427_v10 = vld [vmem:[%s4545_s2 + $0x8] ss:$12 sps:$4 sm:$0xff]   ;;  %v3440_v12 = vld [vmem:[%s4545_s2 + $0x64] ss:$12 sps:$4 sm:$0xff]   ;;  %v3446_v13 = vld [vmem:[%s4545_s2 + $0x20] ss:$12 sps:$4 sm:$0xff]  }
  0x1a   : > { %421 = vmatprep.subr.bf16.mxu0 %v3394_v5  ;;  %3050 = vset.pattern.permute.xlu1 %v3321_v4  ;;  %v3433_v11 = vld [vmem:[%s4545_s2 + $0x48] ss:$12 sps:$4 sm:$0xff]   ;;  %v3451_v14 = vld [vmem:[%s4545_s2 + $0x60] ss:$12 sps:$4 sm:$0xff]   ;;  %v3458_v15 = vld [vmem:[%s4545_s2 + $0x38] ss:$12 sps:$4 sm:$0xff]  }
  0x1b   : > { %2701 = vmatpush3.bf16.msra.mxu1 %v3427_v10  ;;  %v3464_v16 = vld [vmem:[%s4545_s2 + $0x7c] ss:$12 sps:$4 sm:$0xff]   ;;  %v3472_v18 = vld [vmem:[%s4545_s2 + $0x78] ss:$12 sps:$4 sm:$0xff]   ;;  %v3489_v21 = vld [vmem:[%s4545_s2 + $0x94] ss:$12 sps:$4 sm:$0xff]  }
  0x1c   : > { %2702 = vmatprep.subr.bf16.mxu1 %v3320_v3  ;;  %v3478_v19 = vld [vmem:[%s4545_s2 + $0x50] ss:$12 sps:$4 sm:$0xff]   ;;  %v3483_v20 = vld [vmem:[%s4543_s0] sm:$0xff]  ;;  %v3504_v24 = vld [vmem:[%s4545_s2 + $0x68] ss:$12 sps:$4 sm:$0xff]   ;;  %s777_s12 = sadd.s32 2, %s3366_s19 }
  0x1d   : > { %422 = vmatpush1.bf16.msra.mxu0 %v3402_v6  ;;  %vm535_vm1 = vcmp.eq.s32.totalorder %v3483_v20, %v534_v17  ;;  %v3498_v23 = vld [vmem:[%s4545_s2 + $0x90] ss:$12 sps:$4 sm:$0xff]   ;;  %v3510_v25 = vld [vmem:[%s4545_s2 + $0xac] ss:$12 sps:$4 sm:$0xff]   ;;  %v3517_v26 = vld [vmem:[%s4545_s2 + $0xa8] ss:$12 sps:$4 sm:$0xff]   ;;  %vm657_vm2 = vcmp.eq.s32.totalorder %v3483_v20, %v656_v32 }
  0x1e   : > { %423 = vmatprep.subr.bf16.mxu0 %v3409_v7  ;;  %v536_v22 = vsel %vm535_vm1, 1, %v3321_v4  ;;  %v3519_v27 = vld [vmem:[#allocation2] sm:$0xff]  ;;  %v3544_v31 = vld [vmem:[%s4545_s2 + $0xb0] ss:$12 sps:$4 sm:$0xff]   ;;  %v658_v33 = vsel %vm657_vm2, 1, %v3321_v4  ;;  %s899_s13 = sadd.s32 3, %s3366_s19 }
  0x1f   : > { %2703 = vmatpush3.bf16.msra.mxu1 %v3446_v13  ;;  %538 = vperm.xlu0 %3049, %v536_v22   ;;  %v3525_v28 = vld [vmem:[%s4545_s2 + $0x80] ss:$12 sps:$4 sm:$0xff]   ;;  %v290_v29 = vpack.c.bf16 %v3519_v27, %v3519_v27  ;;  %v3536_v30 = vld [vmem:[%s4545_s2 + $0x98] ss:$12 sps:$4 sm:$0xff]   ;;  %v3594_v54 = vld [vmem:[%s3373_s24 + $0x8] ss:$12 sps:$4 sm:$0xff]  }
  0x20   : > { %2704 = vmatprep.subr.bf16.mxu1 %v3320_v3  ;;  %v288_v34 = vld [vmem:[%s3373_s24] sm:$0xff]  ;;  %v519_v57 = vunpack.c.l.bf16 %v3594_v54  ;;  %s1021_s14 = sadd.s32 4, %s3366_s19  ;;  %s1143_s15 = sadd.s32 5, %s3366_s19 }
  0x21   : > { %424 = vmatpush1.bf16.msra.mxu0 %v3416_v8  ;;  %v509_v35 = vrot.slane %v288_v34, 4  ;;  %v500_v36 = vunpack.c.l.bf16 %v288_v34  ;;  %v3591_v53 = vld [vmem:[%s4546_s3] ss:$0 sm:$0xff]  ;;  %s1265_s22 = sadd.s32 6, %s3366_s19  ;;  %s1387_s21 = sadd.s32 7, %s3366_s19 }
  0x22   : > { %425 = vmatprep.subr.bf16.mxu0 %v3422_v9  ;;  %s1509_s5 = sadd.s32 8, %s3366_s19  ;;  %s1631_s8 = sadd.s32 9, %s3366_s19 }
  0x23   : > { %2705 = vmatpush3.bf16.msra.mxu1 %v3458_v15  ;;  %660 = vperm.xlu0 %3049, %v658_v33   ;;  %v511_v38 = vunpack.c.l.bf16 %v509_v35  ;;  %v2493_v33 = vld [vmem:[%s3373_s24 + $0xc] sm:$0xff]  ;;  %s1753_s9 = sadd.s32 10, %s3366_s19  ;;  %s1875_s10 = sadd.s32 11, %s3366_s19 }
  0x24   : > { %2706 = vmatprep.subr.bf16.mxu1 %v3320_v3  ;;  %v636_v34 = vrot.slane %v2493_v33, 4  ;;  %v627_v35 = vunpack.c.l.bf16 %v2493_v33  ;;  %s1997_s11 = sadd.s32 12, %s3366_s19  ;;  %s2363_s27 = sadd.s32 15, %s3366_s19 }
  0x25   : > { %426 = vmatpush1.bf16.msra.mxu0 %v3433_v11 }
  0x26   : > { %427 = vmatprep.subr.bf16.mxu0 %v3440_v12 }
  0x27   : > { %2707 = vmatpush3.bf16.msra.mxu1 %v3478_v19 }
  0x28   : > { %2708 = vmatprep.subr.bf16.mxu1 %v3320_v3 }
  0x29   : > { %428 = vmatpush1.bf16.msra.mxu0 %v3451_v14 }
  0x2a   : > { %429 = vmatprep.subr.bf16.mxu0 %v3464_v16 }
  0x2b   : > { %2709 = vmatpush3.bf16.msra.mxu1 %v3504_v24 }
  0x2c   : > { %2710 = vmatprep.subr.bf16.mxu1 %v3320_v3 }
  0x2d   : > { %430 = vmatpush1.bf16.msra.mxu0 %v3472_v18 }
  0x2e   : > { %431 = vmatprep.subr.bf16.mxu0 %v3489_v21 }
  0x2f   : > { %2711 = vmatpush3.bf16.msra.mxu1 %v3525_v28 }
  0x30   : > { %2712 = vmatprep.subr.bf16.mxu1 %v3320_v3 }
  0x31   : > { %432 = vmatpush1.bf16.msra.mxu0 %v3498_v23 }
  0x32   : > { %433 = vmatprep.subr.bf16.mxu0 %v3510_v25 }
  0x33   : > { %2713 = vmatpush3.bf16.msra.mxu1 %v3536_v30 }
  0x34   : > { %2714 = vmatprep.subr.bf16.mxu1 %v3320_v3 }
  0x35   : > { %434 = vmatpush1.bf16.msra.mxu0 %v3517_v26 }
  0x36   : > { %546 = vmatprep.subr.bf16.mxu0 %v3381_v1 }
  0x37   : > { %2715 = vmatpush3.bf16.msra.mxu1 %v3544_v31 }
  0x38   : > { %452 = vmatmul.mubr.bf16.vlgmr.msra.gmra.mrb[0].mxu0 %v290_v29  ;;  %2720 = vmatprep.subr.bf16.mxu1 %v3320_v3 }
  0x39   : > { %547 = vmatpush1.bf16.msra.mxu0 %v3386_v2  ;;  %578 = vmatprep.mubr.bf16.mxu0 %v3321_v4 }
  0x3a   : > { %548 = vmatprep.subr.bf16.mxu0 %v3394_v5  ;;  %2717 = vmatmul.mubr.bf16.vlgmr.msra.gmra.mrb[0].mxu1 %v290_v29 }
  0x3b   : > { %2721 = vmatpush3.bf16.msra.mxu1 %v3427_v10  ;;  %2736 = vmatprep.mubr.msk.bf16.mxu1 %vm3322_vm0, %v3320_v3 }
  0x3c   : > { %2722 = vmatprep.subr.bf16.mxu1 %v3320_v3 }
  0x3d   : > { %549 = vmatpush1.bf16.msra.mxu0 %v3402_v6 }
  0x3e   : > { %550 = vmatprep.subr.bf16.mxu0 %v3409_v7 }
  0x3f   : > { %2723 = vmatpush3.bf16.msra.mxu1 %v3446_v13 }
  0x40   : > { %2724 = vmatprep.subr.bf16.mxu1 %v3320_v3 }
  0x41   : > { %551 = vmatpush1.bf16.msra.mxu0 %v3416_v8 }
  0x42   : > { %552 = vmatprep.subr.bf16.mxu0 %v3422_v9 }
  0x43   : > { %2725 = vmatpush3.bf16.msra.mxu1 %v3458_v15 }
  0x44   : > { %2726 = vmatprep.subr.bf16.mxu1 %v3320_v3 }
  0x45   : > { %553 = vmatpush1.bf16.msra.mxu0 %v3433_v11 }
  0x46   : > { %554 = vmatprep.subr.bf16.mxu0 %v3440_v12 }
  0x47   : > { %2727 = vmatpush3.bf16.msra.mxu1 %v3478_v19 }
  0x48   : > { %2728 = vmatprep.subr.bf16.mxu1 %v3320_v3 }
  0x49   : > { %555 = vmatpush1.bf16.msra.mxu0 %v3451_v14 }
  0x4a   : > { %556 = vmatprep.subr.bf16.mxu0 %v3464_v16 }
  0x4b   : > { %2729 = vmatpush3.bf16.msra.mxu1 %v3504_v24 }
  0x4c   : > { %2730 = vmatprep.subr.bf16.mxu1 %v3320_v3 }
  0x4d   : > { %557 = vmatpush1.bf16.msra.mxu0 %v3472_v18 }
  0x4e   : > { %558 = vmatprep.subr.bf16.mxu0 %v3489_v21 }
  0x4f   : > { %2731 = vmatpush3.bf16.msra.mxu1 %v3525_v28 }
  0x50   : > { %2732 = vmatprep.subr.bf16.mxu1 %v3320_v3 }
  0x51   : > { %559 = vmatpush1.bf16.msra.mxu0 %v3498_v23 }
  0x52   : > { %560 = vmatprep.subr.bf16.mxu0 %v3510_v25 }
  0x53   : > { %2733 = vmatpush3.bf16.msra.mxu1 %v3536_v30 }
  0x54   : > { %2734 = vmatprep.subr.bf16.mxu1 %v3320_v3 }
  0x55   : > { %561 = vmatpush1.bf16.msra.mxu0 %v3517_v26 }
  0x56   : > { %668 = vmatprep.subr.bf16.mxu0 %v3381_v1 }
  0x57   : > { %2735 = vmatpush3.bf16.msra.mxu1 %v3544_v31 }
  0x58   : > { %2740 = vmatprep.subr.bf16.mxu1 %v3320_v3 }
 0x10b   : > { %v453_v37 = vpop.f32.mrb[0].mxu0 }
 0x10c   : > { %v501_v39 = vadd.f32 %v500_v36, %v453_v37  ;;  %v455_v40 = vpop.f32.mrb[1].mxu0 }
 0x10d   : > { %v457_v41 = vpop.f32.mrb[2].mxu0  ;;  %v512_v44 = vadd.f32 %v511_v38, %v455_v40  ;;  %v494_v46 = vpop.f32.mrb[0].mxu1  ;;  %v638_v38 = vunpack.c.l.bf16 %v636_v34 }
 0x10e   : > { %v2490_v42 = vmul.f32 -1.442695, %v501_v39  ;;  %v458_v43 = vpop.f32.mrb[3].mxu0  ;;  %v2718_v47 = vpop.f32.mrb[1].mxu1  ;;  %v526_v56 = vadd.f32 %v3591_v53, %v494_v46 }
 0x10f   : > { %v2491_v45 = vmul.f32 -1.442695, %v512_v44  ;;  %v497_v48 = vpop.f32.mrb[2].mxu1 }
 0x110   : > { %3083 = vpow2.f32 %v2490_v42  ;;  %v2719_v49 = vpop.f32.mrb[3].mxu1 }
 0x111   : > { %3085 = vpow2.f32 %v2491_v45 }
 0x11a   : > { %v3084_v50 = vpop.eup %3083 }
 0x11b   : > { %v505_v51 = vadd.f32 1.0, %v3084_v50  ;;  %v3086_v52 = vpop.eup %3085 }
 0x11c   : > { %v516_v55 = vadd.f32 1.0, %v3086_v52 }
 0x11d   : > { %3087 = vrcp.f32 %v505_v51 }
 0x11e   : > { %3089 = vrcp.f32 %v516_v55  ;;  %v646_v55 = vunpack.c.h.bf16 %v3594_v54  ;;  %v900_v54 = vstv %s899_s13  ;;  %s2241_s13 = sadd.s32 14, %s3366_s19 }
 0x11f   : > { %vm901_vm4 = vcmp.eq.s32.totalorder %v3483_v20, %v900_v54 }
 0x127   : > { %v3088_v58 = vpop.eup %3087 }
 0x128   : > { %v527_v59 = vmul.f32 %v3088_v58, %v526_v56  ;;  %v3090_v61 = vpop.eup %3089 }
 0x129   : > { %v530_v62 = vsub.f32 1.0, %v3090_v61  ;;  %v532_v17 = vmul.f32 %v3090_v61, %v3519_v27  ;;  %v778_v27 = vstv %s777_s12 }
 0x12a   : > { %v528_v60 = vadd.f32 %v527_v59, %v519_v57  ;;  %vm779_vm3 = vcmp.eq.s32.totalorder %v3483_v20, %v778_v27  ;;  %v902_v27 = vsel %vm901_vm4, 1, %v3321_v4 }
 0x12b   : > { %v780_v32 = vsel %vm779_vm3, 1, %v3321_v4 }
 0x12c   : > { %3091 = vtanh.f32 %v528_v60  ;;  %782 = vperm.xlu1 %3050, %v780_v32   ;;  %v2497_v32 = vld [vmem:[%s3373_s24 + $0x18] sm:$0xff] }
 0x12d   : > { %v758_v33 = vrot.slane %v2497_v32, 4  ;;  %v749_v34 = vunpack.c.l.bf16 %v2497_v32 }
 0x130   : > { %904 = vperm.xlu1 %3050, %v902_v27   ;;  %v1022_v27 = vstv %s1021_s14  ;;  %s2119_s14 = sadd.s32 13, %s3366_s19 }
 0x131   : > { %vm1023_vm5 = vcmp.eq.s32.totalorder %v3483_v20, %v1022_v27 }
 0x132   : > { %v1024_v32 = vsel %vm1023_vm5, 1, %v3321_v4 }
 0x133   : > { %1026 = vperm.xlu0 %3049, %v1024_v32  }
 0x136   : > { %v3092_v63 = vpop.eup %3091 }
 0x137   : > { %v531_v0 = vmul.f32 %v3092_v63, %v530_v62 }
 0x139   : > { %v3599_v22 = vadd.f32 %v532_v17, %v531_v0 }
 0x13b   : > { %v545_v29 = vpack.c.bf16 %v3599_v22, %v3599_v22 }
 0x13d   : > { %579 = vmatmul.mubr.bf16.vlgmr.msra.gmra.mrb[4].mxu0 %v545_v29  ;;  %2737 = vmatmul.mubr.bf16.vlgmr.msra.gmra.mrb[4].mxu1 %v545_v29 }
 0x13e   : > { %669 = vmatpush1.bf16.msra.mxu0 %v3386_v2  ;;  %2741 = vmatpush3.bf16.msra.mxu1 %v3427_v10 }
 0x13f   : > { %670 = vmatprep.subr.bf16.mxu0 %v3394_v5  ;;  %2742 = vmatprep.subr.bf16.mxu1 %v3320_v3 }
 0x140   : > { %700 = vmatprep.mubr.bf16.mxu0 %v3321_v4  ;;  %2756 = vmatprep.mubr.msk.bf16.mxu1 %vm3322_vm0, %v3320_v3 }
 0x142   : > { %671 = vmatpush1.bf16.msra.mxu0 %v3402_v6  ;;  %2743 = vmatpush3.bf16.msra.mxu1 %v3446_v13 }
 0x143   : > { %672 = vmatprep.subr.bf16.mxu0 %v3409_v7  ;;  %2744 = vmatprep.subr.bf16.mxu1 %v3320_v3 }
 0x146   : > { %673 = vmatpush1.bf16.msra.mxu0 %v3416_v8  ;;  %2745 = vmatpush3.bf16.msra.mxu1 %v3458_v15 }
 0x147   : > { %674 = vmatprep.subr.bf16.mxu0 %v3422_v9  ;;  %2746 = vmatprep.subr.bf16.mxu1 %v3320_v3 }
 0x14a   : > { %675 = vmatpush1.bf16.msra.mxu0 %v3433_v11  ;;  %2747 = vmatpush3.bf16.msra.mxu1 %v3478_v19 }
 0x14b   : > { %676 = vmatprep.subr.bf16.mxu0 %v3440_v12  ;;  %2748 = vmatprep.subr.bf16.mxu1 %v3320_v3 }
 0x14e   : > { %677 = vmatpush1.bf16.msra.mxu0 %v3451_v14  ;;  %2749 = vmatpush3.bf16.msra.mxu1 %v3504_v24 }
 0x14f   : > { %678 = vmatprep.subr.bf16.mxu0 %v3464_v16  ;;  %2750 = vmatprep.subr.bf16.mxu1 %v3320_v3 }
 0x152   : > { %679 = vmatpush1.bf16.msra.mxu0 %v3472_v18  ;;  %2751 = vmatpush3.bf16.msra.mxu1 %v3525_v28 }
 0x153   : > { %680 = vmatprep.subr.bf16.mxu0 %v3489_v21  ;;  %2752 = vmatprep.subr.bf16.mxu1 %v3320_v3 }
 0x156   : > { %681 = vmatpush1.bf16.msra.mxu0 %v3498_v23  ;;  %2753 = vmatpush3.bf16.msra.mxu1 %v3536_v30 }
 0x157   : > { %682 = vmatprep.subr.bf16.mxu0 %v3510_v25  ;;  %2754 = vmatprep.subr.bf16.mxu1 %v3320_v3 }
 0x15a   : > { %683 = vmatpush1.bf16.msra.mxu0 %v3517_v26  ;;  %2755 = vmatpush3.bf16.msra.mxu1 %v3544_v31 }
 0x15b   : > { %790 = vmatprep.subr.bf16.mxu0 %v3381_v1  ;;  %2760 = vmatprep.subr.bf16.mxu1 %v3320_v3 }
 0x210   : > { %v580_v36 = vpop.f32.mrb[4].mxu0  ;;  %v621_v37 = vpop.f32.mrb[4].mxu1 }
 0x211   : > { %v628_v39 = vadd.f32 %v627_v35, %v580_v36  ;;  %v582_v40 = vpop.f32.mrb[5].mxu0  ;;  %v2738_v41 = vpop.f32.mrb[5].mxu1  ;;  %v647_v56 = vadd.f32 %v3591_v53, %v621_v37  ;;  %v760_v37 = vunpack.c.l.bf16 %v758_v33  ;;  %v2501_v33 = vld [vmem:[%s3373_s24 + $0x24] sm:$0xff] }
 0x212   : > { %v584_v42 = vpop.f32.mrb[6].mxu0  ;;  %v624_v43 = vpop.f32.mrb[6].mxu1  ;;  %v639_v47 = vadd.f32 %v638_v38, %v582_v40 }
 0x213   : > { %v2495_v44 = vmul.f32 -1.442695, %v628_v39  ;;  %v585_v45 = vpop.f32.mrb[7].mxu0  ;;  %v2739_v46 = vpop.f32.mrb[7].mxu1 }
 0x214   : > { %v2496_v48 = vmul.f32 -1.442695, %v639_v47 }
 0x215   : > { %3093 = vpow2.f32 %v2495_v44 }
 0x216   : > { %3095 = vpow2.f32 %v2496_v48 }
 0x21f   : > { %v3094_v49 = vpop.eup %3093 }
 0x220   : > { %v632_v50 = vadd.f32 1.0, %v3094_v49  ;;  %v3096_v51 = vpop.eup %3095 }
 0x221   : > { %v643_v52 = vadd.f32 1.0, %v3096_v51  ;;  %v3689_v51 = vld [vmem:[%s3373_s24 + $0x20] ss:$12 sps:$4 sm:$0xff]  }
 0x222   : > { %3097 = vrcp.f32 %v632_v50 }
 0x223   : > { %3099 = vrcp.f32 %v643_v52 }
 0x22c   : > { %v3098_v57 = vpop.eup %3097 }
 0x22d   : > { %v648_v58 = vmul.f32 %v3098_v57, %v647_v56  ;;  %v3100_v60 = vpop.eup %3099 }
 0x22e   : > { %v651_v61 = vsub.f32 1.0, %v3100_v60  ;;  %v653_v0 = vmul.f32 %v3100_v60, %v3599_v22 }
 0x22f   : > { %v649_v59 = vadd.f32 %v648_v58, %v646_v55  ;;  %v768_v55 = vunpack.c.l.bf16 %v3689_v51 }
 0x231   : > { %3101 = vtanh.f32 %v649_v59 }
 0x23b   : > { %v3102_v62 = vpop.eup %3101 }
 0x23c   : > { %v652_v63 = vmul.f32 %v3102_v62, %v651_v61 }
 0x23e   : > { %v3645_v17 = vadd.f32 %v653_v0, %v652_v63 }
 0x240   : > { %v667_v29 = vpack.c.bf16 %v3645_v17, %v3645_v17 }
 0x242   : > { %701 = vmatmul.mubr.bf16.vlgmr.msra.gmra.mrb[8].mxu0 %v667_v29  ;;  %2757 = vmatmul.mubr.bf16.vlgmr.msra.gmra.mrb[8].mxu1 %v667_v29 }
 0x243   : > { %791 = vmatpush1.bf16.msra.mxu0 %v3386_v2  ;;  %2761 = vmatpush3.bf16.msra.mxu1 %v3427_v10 }
 0x244   : > { %792 = vmatprep.subr.bf16.mxu0 %v3394_v5  ;;  %2762 = vmatprep.subr.bf16.mxu1 %v3320_v3 }
 0x245   : > { %822 = vmatprep.mubr.bf16.mxu0 %v3321_v4  ;;  %2776 = vmatprep.mubr.msk.bf16.mxu1 %vm3322_vm0, %v3320_v3 }
 0x247   : > { %793 = vmatpush1.bf16.msra.mxu0 %v3402_v6  ;;  %2763 = vmatpush3.bf16.msra.mxu1 %v3446_v13 }
 0x248   : > { %794 = vmatprep.subr.bf16.mxu0 %v3409_v7  ;;  %2764 = vmatprep.subr.bf16.mxu1 %v3320_v3 }
 0x24b   : > { %795 = vmatpush1.bf16.msra.mxu0 %v3416_v8  ;;  %2765 = vmatpush3.bf16.msra.mxu1 %v3458_v15 }
 0x24c   : > { %796 = vmatprep.subr.bf16.mxu0 %v3422_v9  ;;  %2766 = vmatprep.subr.bf16.mxu1 %v3320_v3 }
 0x24f   : > { %797 = vmatpush1.bf16.msra.mxu0 %v3433_v11  ;;  %2767 = vmatpush3.bf16.msra.mxu1 %v3478_v19 }
 0x250   : > { %798 = vmatprep.subr.bf16.mxu0 %v3440_v12  ;;  %2768 = vmatprep.subr.bf16.mxu1 %v3320_v3 }
 0x253   : > { %799 = vmatpush1.bf16.msra.mxu0 %v3451_v14  ;;  %2769 = vmatpush3.bf16.msra.mxu1 %v3504_v24 }
 0x254   : > { %800 = vmatprep.subr.bf16.mxu0 %v3464_v16  ;;  %2770 = vmatprep.subr.bf16.mxu1 %v3320_v3 }
 0x257   : > { %801 = vmatpush1.bf16.msra.mxu0 %v3472_v18  ;;  %2771 = vmatpush3.bf16.msra.mxu1 %v3525_v28 }
 0x258   : > { %802 = vmatprep.subr.bf16.mxu0 %v3489_v21  ;;  %2772 = vmatprep.subr.bf16.mxu1 %v3320_v3 }
 0x25b   : > { %803 = vmatpush1.bf16.msra.mxu0 %v3498_v23  ;;  %2773 = vmatpush3.bf16.msra.mxu1 %v3536_v30 }
 0x25c   : > { %804 = vmatprep.subr.bf16.mxu0 %v3510_v25  ;;  %2774 = vmatprep.subr.bf16.mxu1 %v3320_v3 }
 0x25f   : > { %805 = vmatpush1.bf16.msra.mxu0 %v3517_v26  ;;  %2775 = vmatpush3.bf16.msra.mxu1 %v3544_v31 }
 0x260   : > { %912 = vmatprep.subr.bf16.mxu0 %v3381_v1  ;;  %2780 = vmatprep.subr.bf16.mxu1 %v3320_v3 }
 0x315   : > { %v702_v35 = vpop.f32.mrb[8].mxu0  ;;  %v743_v36 = vpop.f32.mrb[8].mxu1 }
 0x316   : > { %v750_v38 = vadd.f32 %v749_v34, %v702_v35  ;;  %v704_v39 = vpop.f32.mrb[9].mxu0  ;;  %v2758_v40 = vpop.f32.mrb[9].mxu1  ;;  %v769_v56 = vadd.f32 %v3591_v53, %v743_v36  ;;  %v880_v34 = vrot.slane %v2501_v33, 4  ;;  %v871_v35 = vunpack.c.l.bf16 %v2501_v33 }
 0x317   : > { %v706_v41 = vpop.f32.mrb[10].mxu0  ;;  %v746_v42 = vpop.f32.mrb[10].mxu1  ;;  %v761_v46 = vadd.f32 %v760_v37, %v704_v39 }
 0x318   : > { %v2499_v43 = vmul.f32 -1.442695, %v750_v38  ;;  %v707_v44 = vpop.f32.mrb[11].mxu0  ;;  %v2759_v45 = vpop.f32.mrb[11].mxu1  ;;  %v882_v38 = vunpack.c.l.bf16 %v880_v34  ;;  %v2505_v34 = vld [vmem:[%s3373_s24 + $0x30] sm:$0xff] }
 0x319   : > { %v2500_v47 = vmul.f32 -1.442695, %v761_v46 }
 0x31a   : > { %3103 = vpow2.f32 %v2499_v43 }
 0x31b   : > { %3105 = vpow2.f32 %v2500_v47 }
 0x324   : > { %v3104_v48 = vpop.eup %3103 }
 0x325   : > { %v754_v49 = vadd.f32 1.0, %v3104_v48  ;;  %v3106_v50 = vpop.eup %3105 }
 0x326   : > { %v765_v52 = vadd.f32 1.0, %v3106_v50 }
 0x327   : > { %3107 = vrcp.f32 %v754_v49 }
 0x328   : > { %3109 = vrcp.f32 %v765_v52 }
 0x331   : > { %v3108_v57 = vpop.eup %3107 }
 0x332   : > { %v770_v58 = vmul.f32 %v3108_v57, %v769_v56  ;;  %v3110_v60 = vpop.eup %3109  ;;  %v890_v56 = vunpack.c.h.bf16 %v3689_v51  ;;  %v1144_v51 = vstv %s1143_s15 }
 0x333   : > { %v773_v61 = vsub.f32 1.0, %v3110_v60  ;;  %v775_v0 = vmul.f32 %v3110_v60, %v3645_v17  ;;  %vm1145_vm6 = vcmp.eq.s32.totalorder %v3483_v20, %v1144_v51 }
 0x334   : > { %v771_v59 = vadd.f32 %v770_v58, %v768_v55  ;;  %v1146_v33 = vsel %vm1145_vm6, 1, %v3321_v4 }
 0x335   : > { %1148 = vperm.xlu1 %3050, %v1146_v33  }
 0x336   : > { %3111 = vtanh.f32 %v771_v59 }
 0x340   : > { %v3112_v62 = vpop.eup %3111 }
 0x341   : > { %v774_v63 = vmul.f32 %v3112_v62, %v773_v61 }
 0x343   : > { %v3694_v29 = vadd.f32 %v775_v0, %v774_v63 }
 0x345   : > { %v789_v54 = vpack.c.bf16 %v3694_v29, %v3694_v29 }
 0x347   : > { %823 = vmatmul.mubr.bf16.vlgmr.msra.gmra.mrb[12].mxu0 %v789_v54  ;;  %2777 = vmatmul.mubr.bf16.vlgmr.msra.gmra.mrb[12].mxu1 %v789_v54 }
 0x348   : > { %913 = vmatpush1.bf16.msra.mxu0 %v3386_v2  ;;  %2781 = vmatpush3.bf16.msra.mxu1 %v3427_v10 }
 0x349   : > { %914 = vmatprep.subr.bf16.mxu0 %v3394_v5  ;;  %2782 = vmatprep.subr.bf16.mxu1 %v3320_v3 }
 0x34a   : > { %944 = vmatprep.mubr.bf16.mxu0 %v3321_v4  ;;  %2796 = vmatprep.mubr.msk.bf16.mxu1 %vm3322_vm0, %v3320_v3 }
 0x34c   : > { %915 = vmatpush1.bf16.msra.mxu0 %v3402_v6  ;;  %2783 = vmatpush3.bf16.msra.mxu1 %v3446_v13 }
 0x34d   : > { %916 = vmatprep.subr.bf16.mxu0 %v3409_v7  ;;  %2784 = vmatprep.subr.bf16.mxu1 %v3320_v3 }
 0x350   : > { %917 = vmatpush1.bf16.msra.mxu0 %v3416_v8  ;;  %2785 = vmatpush3.bf16.msra.mxu1 %v3458_v15 }
 0x351   : > { %918 = vmatprep.subr.bf16.mxu0 %v3422_v9  ;;  %2786 = vmatprep.subr.bf16.mxu1 %v3320_v3 }
 0x354   : > { %919 = vmatpush1.bf16.msra.mxu0 %v3433_v11  ;;  %2787 = vmatpush3.bf16.msra.mxu1 %v3478_v19 }
 0x355   : > { %920 = vmatprep.subr.bf16.mxu0 %v3440_v12  ;;  %2788 = vmatprep.subr.bf16.mxu1 %v3320_v3 }
 0x358   : > { %921 = vmatpush1.bf16.msra.mxu0 %v3451_v14  ;;  %2789 = vmatpush3.bf16.msra.mxu1 %v3504_v24 }
 0x359   : > { %922 = vmatprep.subr.bf16.mxu0 %v3464_v16  ;;  %2790 = vmatprep.subr.bf16.mxu1 %v3320_v3 }
 0x35c   : > { %923 = vmatpush1.bf16.msra.mxu0 %v3472_v18  ;;  %2791 = vmatpush3.bf16.msra.mxu1 %v3525_v28 }
 0x35d   : > { %924 = vmatprep.subr.bf16.mxu0 %v3489_v21  ;;  %2792 = vmatprep.subr.bf16.mxu1 %v3320_v3 }
 0x360   : > { %925 = vmatpush1.bf16.msra.mxu0 %v3498_v23  ;;  %2793 = vmatpush3.bf16.msra.mxu1 %v3536_v30 }
 0x361   : > { %926 = vmatprep.subr.bf16.mxu0 %v3510_v25  ;;  %2794 = vmatprep.subr.bf16.mxu1 %v3320_v3 }
 0x364   : > { %927 = vmatpush1.bf16.msra.mxu0 %v3517_v26  ;;  %2795 = vmatpush3.bf16.msra.mxu1 %v3544_v31 }
 0x365   : > { %1034 = vmatprep.subr.bf16.mxu0 %v3381_v1  ;;  %2800 = vmatprep.subr.bf16.mxu1 %v3320_v3 }
 0x41a   : > { %v824_v36 = vpop.f32.mrb[12].mxu0  ;;  %v865_v37 = vpop.f32.mrb[12].mxu1 }
 0x41b   : > { %v872_v39 = vadd.f32 %v871_v35, %v824_v36  ;;  %v826_v40 = vpop.f32.mrb[13].mxu0  ;;  %v2778_v41 = vpop.f32.mrb[13].mxu1  ;;  %v891_v57 = vadd.f32 %v3591_v53, %v865_v37  ;;  %v1002_v35 = vrot.slane %v2505_v34, 4  ;;  %v993_v36 = vunpack.c.l.bf16 %v2505_v34 }
 0x41c   : > { %v828_v42 = vpop.f32.mrb[14].mxu0  ;;  %v868_v43 = vpop.f32.mrb[14].mxu1  ;;  %v883_v47 = vadd.f32 %v882_v38, %v826_v40 }
 0x41d   : > { %v2503_v44 = vmul.f32 -1.442695, %v872_v39  ;;  %v829_v45 = vpop.f32.mrb[15].mxu0  ;;  %v2779_v46 = vpop.f32.mrb[15].mxu1  ;;  %v1004_v39 = vunpack.c.l.bf16 %v1002_v35 }
 0x41e   : > { %v2504_v48 = vmul.f32 -1.442695, %v883_v47 }
 0x41f   : > { %3113 = vpow2.f32 %v2503_v44 }
 0x420   : > { %3115 = vpow2.f32 %v2504_v48 }
 0x429   : > { %v3114_v49 = vpop.eup %3113 }
 0x42a   : > { %v876_v50 = vadd.f32 1.0, %v3114_v49  ;;  %v3116_v52 = vpop.eup %3115 }
 0x42b   : > { %v887_v55 = vadd.f32 1.0, %v3116_v52 }
 0x42c   : > { %3117 = vrcp.f32 %v876_v50 }
 0x42d   : > { %3119 = vrcp.f32 %v887_v55  ;;  %v3784_v55 = vld [vmem:[%s3373_s24 + $0x38] ss:$12 sps:$4 sm:$0xff]  }
 0x436   : > { %v3118_v58 = vpop.eup %3117 }
 0x437   : > { %v892_v59 = vmul.f32 %v3118_v58, %v891_v57  ;;  %v3120_v61 = vpop.eup %3119  ;;  %v1012_v57 = vunpack.c.l.bf16 %v3784_v55 }
 0x438   : > { %v895_v62 = vsub.f32 1.0, %v3120_v61  ;;  %v897_v54 = vmul.f32 %v3120_v61, %v3694_v29 }
 0x439   : > { %v893_v60 = vadd.f32 %v892_v59, %v890_v56 }
 0x43b   : > { %3121 = vtanh.f32 %v893_v60 }
 0x445   : > { %v3122_v63 = vpop.eup %3121 }
 0x446   : > { %v896_v0 = vmul.f32 %v3122_v63, %v895_v62 }
 0x448   : > { %v3740_v27 = vadd.f32 %v897_v54, %v896_v0 }
 0x44a   : > { %v911_v32 = vpack.c.bf16 %v3740_v27, %v3740_v27 }
 0x44c   : > { %945 = vmatmul.mubr.bf16.vlgmr.msra.gmra.mrb[16].mxu0 %v911_v32  ;;  %2797 = vmatmul.mubr.bf16.vlgmr.msra.gmra.mrb[16].mxu1 %v911_v32 }
 0x44d   : > { %1035 = vmatpush1.bf16.msra.mxu0 %v3386_v2  ;;  %2801 = vmatpush3.bf16.msra.mxu1 %v3427_v10 }
 0x44e   : > { %1036 = vmatprep.subr.bf16.mxu0 %v3394_v5  ;;  %2802 = vmatprep.subr.bf16.mxu1 %v3320_v3 }
 0x44f   : > { %1066 = vmatprep.mubr.bf16.mxu0 %v3321_v4  ;;  %2816 = vmatprep.mubr.msk.bf16.mxu1 %vm3322_vm0, %v3320_v3 }
 0x451   : > { %1037 = vmatpush1.bf16.msra.mxu0 %v3402_v6  ;;  %2803 = vmatpush3.bf16.msra.mxu1 %v3446_v13 }
 0x452   : > { %1038 = vmatprep.subr.bf16.mxu0 %v3409_v7  ;;  %2804 = vmatprep.subr.bf16.mxu1 %v3320_v3 }
 0x455   : > { %1039 = vmatpush1.bf16.msra.mxu0 %v3416_v8  ;;  %2805 = vmatpush3.bf16.msra.mxu1 %v3458_v15 }
 0x456   : > { %1040 = vmatprep.subr.bf16.mxu0 %v3422_v9  ;;  %2806 = vmatprep.subr.bf16.mxu1 %v3320_v3 }
 0x459   : > { %1041 = vmatpush1.bf16.msra.mxu0 %v3433_v11  ;;  %2807 = vmatpush3.bf16.msra.mxu1 %v3478_v19 }
 0x45a   : > { %1042 = vmatprep.subr.bf16.mxu0 %v3440_v12  ;;  %2808 = vmatprep.subr.bf16.mxu1 %v3320_v3 }
 0x45d   : > { %1043 = vmatpush1.bf16.msra.mxu0 %v3451_v14  ;;  %2809 = vmatpush3.bf16.msra.mxu1 %v3504_v24 }
 0x45e   : > { %1044 = vmatprep.subr.bf16.mxu0 %v3464_v16  ;;  %2810 = vmatprep.subr.bf16.mxu1 %v3320_v3 }
 0x461   : > { %1045 = vmatpush1.bf16.msra.mxu0 %v3472_v18  ;;  %2811 = vmatpush3.bf16.msra.mxu1 %v3525_v28 }
 0x462   : > { %1046 = vmatprep.subr.bf16.mxu0 %v3489_v21  ;;  %2812 = vmatprep.subr.bf16.mxu1 %v3320_v3 }
 0x465   : > { %1047 = vmatpush1.bf16.msra.mxu0 %v3498_v23  ;;  %2813 = vmatpush3.bf16.msra.mxu1 %v3536_v30 }
 0x466   : > { %1048 = vmatprep.subr.bf16.mxu0 %v3510_v25  ;;  %2814 = vmatprep.subr.bf16.mxu1 %v3320_v3 }
 0x469   : > { %1049 = vmatpush1.bf16.msra.mxu0 %v3517_v26  ;;  %2815 = vmatpush3.bf16.msra.mxu1 %v3544_v31 }
 0x46a   : > { %1156 = vmatprep.subr.bf16.mxu0 %v3381_v1  ;;  %2820 = vmatprep.subr.bf16.mxu1 %v3320_v3 }
 0x51f   : > { %v946_v37 = vpop.f32.mrb[16].mxu0  ;;  %v987_v38 = vpop.f32.mrb[16].mxu1 }
 0x520   : > { %v994_v40 = vadd.f32 %v993_v36, %v946_v37  ;;  %v948_v41 = vpop.f32.mrb[17].mxu0  ;;  %v2798_v42 = vpop.f32.mrb[17].mxu1  ;;  %v1013_v58 = vadd.f32 %v3591_v53, %v987_v38  ;;  %v1134_v36 = vunpack.c.h.bf16 %v3784_v55  ;;  %v3881_v55 = vld [vmem:[%s4545_s2 + $0x34] ss:$12 sps:$4 sm:$0xff]  }
 0x521   : > { %v950_v1 = vpop.f32.mrb[18].mxu0  ;;  %v990_v43 = vpop.f32.mrb[18].mxu1  ;;  %v1005_v47 = vadd.f32 %v1004_v39, %v948_v41 }
 0x522   : > { %v2507_v44 = vmul.f32 -1.442695, %v994_v40  ;;  %v951_v45 = vpop.f32.mrb[19].mxu0  ;;  %v2799_v46 = vpop.f32.mrb[19].mxu1 }
 0x523   : > { %v2508_v48 = vmul.f32 -1.442695, %v1005_v47  ;;  %v3847_v47 = vld [vmem:[%s4545_s2] ss:$12 sps:$4 sm:$0xff]  }
 0x524   : > { %3123 = vpow2.f32 %v2507_v44 }
 0x525   : > { %3125 = vpow2.f32 %v2508_v48  ;;  %v3853_v48 = vld [vmem:[%s4545_s2 + $0x8] ss:$12 sps:$4 sm:$0xff]  }
 0x52e   : > { %v3124_v49 = vpop.eup %3123 }
 0x52f   : > { %v998_v50 = vadd.f32 1.0, %v3124_v49  ;;  %v3126_v52 = vpop.eup %3125  ;;  %v3859_v49 = vld [vmem:[%s4545_s2 + $0x1c] ss:$12 sps:$4 sm:$0xff]  }
 0x530   : > { %v1009_v56 = vadd.f32 1.0, %v3126_v52  ;;  %v3875_v52 = vld [vmem:[%s4545_s2 + $0x20] ss:$12 sps:$4 sm:$0xff]  }
 0x531   : > { %3127 = vrcp.f32 %v998_v50  ;;  %v3869_v50 = vld [vmem:[%s4545_s2 + $0x18] ss:$12 sps:$4 sm:$0xff]  }
 0x532   : > { %3129 = vrcp.f32 %v1009_v56  ;;  %v3888_v56 = vld [vmem:[%s4545_s2 + $0x30] ss:$12 sps:$4 sm:$0xff]  }
 0x53b   : > { %v3128_v59 = vpop.eup %3127 }
 0x53c   : > { %v1014_v60 = vmul.f32 %v3128_v59, %v1013_v58  ;;  %v3130_v62 = vpop.eup %3129  ;;  %v3900_v58 = vld [vmem:[%s4545_s2 + $0x4c] ss:$12 sps:$4 sm:$0xff]   ;;  %v3907_v59 = vld [vmem:[%s4545_s2 + $0x48] ss:$12 sps:$4 sm:$0xff]  }
 0x53d   : > { %v1017_v63 = vsub.f32 1.0, %v3130_v62  ;;  %v1019_v32 = vmul.f32 %v3130_v62, %v3740_v27  ;;  %v3926_v62 = vld [vmem:[%s4545_s2 + $0x60] ss:$12 sps:$4 sm:$0xff]  }
 0x53e   : > { %v1015_v61 = vadd.f32 %v1014_v60, %v1012_v57  ;;  %v3894_v57 = vld [vmem:[%s4545_s2 + $0x38] ss:$12 sps:$4 sm:$0xff]   ;;  %v3913_v60 = vld [vmem:[%s4545_s2 + $0x50] ss:$12 sps:$4 sm:$0xff]  }
 0x540   : > { %3131 = vtanh.f32 %v1015_v61  ;;  %v3919_v61 = vld [vmem:[%s4545_s2 + $0x64] ss:$12 sps:$4 sm:$0xff]  }
 0x54a   : > { %v3132_v0 = vpop.eup %3131 }
 0x54b   : > { %v1018_v54 = vmul.f32 %v3132_v0, %v1017_v63  ;;  %v3932_v63 = vld [vmem:[%s4545_s2 + $0x68] ss:$12 sps:$4 sm:$0xff]  }
 0x54c   : > { %v3938_v0 = vld [vmem:[%s4545_s2 + $0x7c] ss:$12 sps:$4 sm:$0xff]  }
 0x54d   : > { %v3789_v51 = vadd.f32 %v1019_v32, %v1018_v54  ;;  %v3945_v54 = vld [vmem:[%s4545_s2 + $0x78] ss:$12 sps:$4 sm:$0xff]   ;;  %v3952_v32 = vld [vmem:[%s4545_s2 + $0x94] ss:$12 sps:$4 sm:$0xff]  }
 0x54f   : > { %v1033_v33 = vpack.c.bf16 %v3789_v51, %v3789_v51 }
 0x551   : > { %1067 = vmatmul.mubr.bf16.vlgmr.msra.gmra.mrb[20].mxu0 %v1033_v33  ;;  %2817 = vmatmul.mubr.bf16.vlgmr.msra.gmra.mrb[20].mxu1 %v1033_v33  ;;  %v3959_v33 = vld [vmem:[%s4545_s2 + $0x90] ss:$12 sps:$4 sm:$0xff]  }
 0x552   : > { %1157 = vmatpush1.bf16.msra.mxu0 %v3386_v2  ;;  %2821 = vmatpush3.bf16.msra.mxu1 %v3427_v10  ;;  %v3829_v2 = vld [vmem:[%s4545_s2 + $0x4] ss:$12 sps:$4 sm:$0xff]  }
 0x553   : > { %1158 = vmatprep.subr.bf16.mxu0 %v3394_v5  ;;  %2822 = vmatprep.subr.bf16.mxu1 %v3320_v3  ;;  %v1266_v5 = vstv %s1265_s22 }
 0x554   : > { %1188 = vmatprep.mubr.bf16.mxu0 %v3321_v4  ;;  %2836 = vmatprep.mubr.msk.bf16.mxu1 %vm3322_vm0, %v3320_v3  ;;  %vm1267_vm7 = vcmp.eq.s32.totalorder %v3483_v20, %v1266_v5  ;;  %v3973_v5 = vld [vmem:[%s4545_s2 + $0xa8] ss:$12 sps:$4 sm:$0xff]  }
 0x556   : > { %1159 = vmatpush1.bf16.msra.mxu0 %v3402_v6  ;;  %2823 = vmatpush3.bf16.msra.mxu1 %v3446_v13  ;;  %v1268_v6 = vsel %vm1267_vm7, 1, %v3321_v4 }
 0x557   : > { %1160 = vmatprep.subr.bf16.mxu0 %v3409_v7  ;;  %2824 = vmatprep.subr.bf16.mxu1 %v3320_v3  ;;  %v2509_v7 = vld [vmem:[%s3373_s24 + $0x3c] sm:$0xff] }
 0x558   : > { %1270 = vperm.xlu0 %3049, %v1268_v6   ;;  %v3983_v6 = vld [vmem:[%s4543_s0] sm:$0xff] }
 0x55a   : > { %1161 = vmatpush1.bf16.msra.mxu0 %v3416_v8  ;;  %2825 = vmatpush3.bf16.msra.mxu1 %v3458_v15  ;;  %v1124_v8 = vrot.slane %v2509_v7, 4 }
 0x55b   : > { %1162 = vmatprep.subr.bf16.mxu0 %v3422_v9  ;;  %2826 = vmatprep.subr.bf16.mxu1 %v3320_v3  ;;  %v1115_v9 = vunpack.c.l.bf16 %v2509_v7 }
 0x55e   : > { %1163 = vmatpush1.bf16.msra.mxu0 %v3433_v11  ;;  %2827 = vmatpush3.bf16.msra.mxu1 %v3478_v19 }
 0x55f   : > { %1164 = vmatprep.subr.bf16.mxu0 %v3440_v12  ;;  %2828 = vmatprep.subr.bf16.mxu1 %v3320_v3  ;;  %v1126_v12 = vunpack.c.l.bf16 %v1124_v8  ;;  %v2513_v8 = vld [vmem:[%s3373_s24 + $0x48] sm:$0xff] }
 0x562   : > { %1165 = vmatpush1.bf16.msra.mxu0 %v3451_v14  ;;  %2829 = vmatpush3.bf16.msra.mxu1 %v3504_v24 }
 0x563   : > { %1166 = vmatprep.subr.bf16.mxu0 %v3464_v16  ;;  %2830 = vmatprep.subr.bf16.mxu1 %v3320_v3 }
 0x566   : > { %1167 = vmatpush1.bf16.msra.mxu0 %v3472_v18  ;;  %2831 = vmatpush3.bf16.msra.mxu1 %v3525_v28 }
 0x567   : > { %1168 = vmatprep.subr.bf16.mxu0 %v3489_v21  ;;  %2832 = vmatprep.subr.bf16.mxu1 %v3320_v3 }
 0x56a   : > { %1169 = vmatpush1.bf16.msra.mxu0 %v3498_v23  ;;  %2833 = vmatpush3.bf16.msra.mxu1 %v3536_v30 }
 0x56b   : > { %1170 = vmatprep.subr.bf16.mxu0 %v3510_v25  ;;  %2834 = vmatprep.subr.bf16.mxu1 %v3320_v3 }
 0x56e   : > { %1171 = vmatpush1.bf16.msra.mxu0 %v3517_v26  ;;  %2835 = vmatpush3.bf16.msra.mxu1 %v3544_v31 }
 0x56f   : > { %1278 = vmatprep.subr.bf16.mxu0 %v3829_v2  ;;  %2840 = vmatprep.subr.bf16.mxu1 %v3320_v3 }
 0x624   : > { %v1068_v10 = vpop.f32.mrb[20].mxu0  ;;  %v1109_v11 = vpop.f32.mrb[20].mxu1 }
 0x625   : > { %v1116_v13 = vadd.f32 %v1115_v9, %v1068_v10  ;;  %v1070_v14 = vpop.f32.mrb[21].mxu0  ;;  %v2818_v15 = vpop.f32.mrb[21].mxu1  ;;  %v1135_v37 = vadd.f32 %v3591_v53, %v1109_v11  ;;  %v1246_v9 = vrot.slane %v2513_v8, 4  ;;  %v1237_v10 = vunpack.c.l.bf16 %v2513_v8  ;;  %v4034_v8 = vld [vmem:[%s4545_s2 + $0x98] ss:$12 sps:$4 sm:$0xff]  }
 0x626   : > { %v1072_v16 = vpop.f32.mrb[22].mxu0  ;;  %v1112_v18 = vpop.f32.mrb[22].mxu1  ;;  %v1127_v24 = vadd.f32 %v1126_v12, %v1070_v14 }
 0x627   : > { %v2511_v19 = vmul.f32 -1.442695, %v1116_v13  ;;  %v1073_v21 = vpop.f32.mrb[23].mxu0  ;;  %v2819_v23 = vpop.f32.mrb[23].mxu1  ;;  %v1248_v12 = vunpack.c.l.bf16 %v1246_v9  ;;  %v4043_v9 = vld [vmem:[%s4545_s2 + $0xb0] ss:$12 sps:$4 sm:$0xff]  }
 0x628   : > { %v2512_v20 = vmul.f32 -1.442695, %v1127_v24 }
 0x629   : > { %3133 = vpow2.f32 %v2511_v19 }
 0x62a   : > { %3135 = vpow2.f32 %v2512_v20 }
 0x633   : > { %v3134_v25 = vpop.eup %3133 }
 0x634   : > { %v1120_v26 = vadd.f32 1.0, %v3134_v25  ;;  %v3136_v34 = vpop.eup %3135 }
 0x635   : > { %v1131_v35 = vadd.f32 1.0, %v3136_v34 }
 0x636   : > { %3137 = vrcp.f32 %v1120_v26 }
 0x637   : > { %3139 = vrcp.f32 %v1131_v35  ;;  %v3989_v35 = vld [vmem:[%s3373_s24 + $0x50] ss:$12 sps:$4 sm:$0xff]  }
 0x640   : > { %v3138_v38 = vpop.eup %3137 }
 0x641   : > { %v1136_v39 = vmul.f32 %v3138_v38, %v1135_v37  ;;  %v3140_v41 = vpop.eup %3139  ;;  %v1256_v37 = vunpack.c.l.bf16 %v3989_v35 }
 0x642   : > { %v1139_v42 = vsub.f32 1.0, %v3140_v41  ;;  %v1141_v44 = vmul.f32 %v3140_v41, %v3789_v51 }
 0x643   : > { %v1137_v40 = vadd.f32 %v1136_v39, %v1134_v36 }
 0x645   : > { %3141 = vtanh.f32 %v1137_v40 }
 0x64f   : > { %v3142_v1 = vpop.eup %3141 }
 0x650   : > { %v1140_v43 = vmul.f32 %v3142_v1, %v1139_v42 }
 0x652   : > { %v3840_v45 = vadd.f32 %v1141_v44, %v1140_v43 }
 0x654   : > { %v1155_v46 = vpack.c.bf16 %v3840_v45, %v3840_v45 }
 0x656   : > { %1189 = vmatmul.mubr.bf16.vlgmr.msra.gmra.mrb[24].mxu0 %v1155_v46  ;;  %2837 = vmatmul.mubr.bf16.vlgmr.msra.gmra.mrb[24].mxu1 %v1155_v46 }
 0x657   : > { %1279 = vmatpush1.bf16.msra.mxu0 %v3847_v47  ;;  %2841 = vmatpush3.bf16.msra.mxu1 %v3853_v48 }
 0x658   : > { %1280 = vmatprep.subr.bf16.mxu0 %v3859_v49  ;;  %2842 = vmatprep.subr.bf16.mxu1 %v3320_v3 }
 0x659   : > { %1310 = vmatprep.mubr.bf16.mxu0 %v3321_v4  ;;  %2856 = vmatprep.mubr.msk.bf16.mxu1 %vm3322_vm0, %v3320_v3 }
 0x65b   : > { %1281 = vmatpush1.bf16.msra.mxu0 %v3869_v50  ;;  %2843 = vmatpush3.bf16.msra.mxu1 %v3875_v52 }
 0x65c   : > { %1282 = vmatprep.subr.bf16.mxu0 %v3881_v55  ;;  %2844 = vmatprep.subr.bf16.mxu1 %v3320_v3 }
 0x65f   : > { %1283 = vmatpush1.bf16.msra.mxu0 %v3888_v56  ;;  %2845 = vmatpush3.bf16.msra.mxu1 %v3894_v57 }
 0x660   : > { %1284 = vmatprep.subr.bf16.mxu0 %v3900_v58  ;;  %2846 = vmatprep.subr.bf16.mxu1 %v3320_v3 }
 0x663   : > { %1285 = vmatpush1.bf16.msra.mxu0 %v3907_v59  ;;  %2847 = vmatpush3.bf16.msra.mxu1 %v3913_v60 }
 0x664   : > { %1286 = vmatprep.subr.bf16.mxu0 %v3919_v61  ;;  %2848 = vmatprep.subr.bf16.mxu1 %v3320_v3 }
 0x667   : > { %1287 = vmatpush1.bf16.msra.mxu0 %v3926_v62  ;;  %2849 = vmatpush3.bf16.msra.mxu1 %v3932_v63 }
 0x668   : > { %1288 = vmatprep.subr.bf16.mxu0 %v3938_v0  ;;  %2850 = vmatprep.subr.bf16.mxu1 %v3320_v3 }
 0x66b   : > { %1289 = vmatpush1.bf16.msra.mxu0 %v3945_v54  ;;  %2851 = vmatpush3.bf16.msra.mxu1 %v3525_v28  ;;  %v3966_v28 = vld [vmem:[%s4545_s2 + $0xac] ss:$12 sps:$4 sm:$0xff]  }
 0x66c   : > { %1290 = vmatprep.subr.bf16.mxu0 %v3952_v32  ;;  %2852 = vmatprep.subr.bf16.mxu1 %v3320_v3 }
 0x66f   : > { %1291 = vmatpush1.bf16.msra.mxu0 %v3959_v33  ;;  %2853 = vmatpush3.bf16.msra.mxu1 %v3536_v30  ;;  %v1388_v30 = vstv %s1387_s21 }
 0x670   : > { %1292 = vmatprep.subr.bf16.mxu0 %v3966_v28  ;;  %2854 = vmatprep.subr.bf16.mxu1 %v3320_v3  ;;  %vm1389_vm8 = vcmp.eq.s32.totalorder %v3983_v6, %v1388_v30 }
 0x671   : > { %v1390_v7 = vsel %vm1389_vm8, 1, %v3321_v4 }
 0x672   : > { %1392 = vperm.xlu1 %3050, %v1390_v7  }
 0x673   : > { %1293 = vmatpush1.bf16.msra.mxu0 %v3973_v5  ;;  %2855 = vmatpush3.bf16.msra.mxu1 %v3544_v31 }
 0x674   : > { %1400 = vmatprep.subr.bf16.mxu0 %v3829_v2  ;;  %2860 = vmatprep.subr.bf16.mxu1 %v3320_v3 }
 0x729   : > { %v1190_v31 = vpop.f32.mrb[24].mxu0  ;;  %v1231_v11 = vpop.f32.mrb[24].mxu1 }
 0x72a   : > { %v1238_v13 = vadd.f32 %v1237_v10, %v1190_v31  ;;  %v1192_v14 = vpop.f32.mrb[25].mxu0  ;;  %v2838_v15 = vpop.f32.mrb[25].mxu1  ;;  %v1257_v38 = vadd.f32 %v3591_v53, %v1231_v11  ;;  %v4025_v53 = vld [vmem:[%s4545_s2 + $0x80] ss:$12 sps:$4 sm:$0xff]   ;;  %v1510_v10 = vstv %s1509_s5  ;;  %v2517_v11 = vld [vmem:[%s3373_s24 + $0x54] sm:$0xff] }
 0x72b   : > { %v1194_v16 = vpop.f32.mrb[26].mxu0  ;;  %v1234_v18 = vpop.f32.mrb[26].mxu1  ;;  %v1249_v24 = vadd.f32 %v1248_v12, %v1192_v14  ;;  %vm1511_vm9 = vcmp.eq.s32.totalorder %v3983_v6, %v1510_v10  ;;  %v1368_v12 = vrot.slane %v2517_v11, 4 }
 0x72c   : > { %v2515_v19 = vmul.f32 -1.442695, %v1238_v13  ;;  %v1195_v21 = vpop.f32.mrb[27].mxu0  ;;  %v2839_v23 = vpop.f32.mrb[27].mxu1  ;;  %v1512_v31 = vsel %vm1511_vm9, 1, %v3321_v4  ;;  %v1359_v13 = vunpack.c.l.bf16 %v2517_v11 }
 0x72d   : > { %v2516_v20 = vmul.f32 -1.442695, %v1249_v24  ;;  %1514 = vperm.xlu0 %3049, %v1512_v31   ;;  %v1370_v16 = vunpack.c.l.bf16 %v1368_v12 }
 0x72e   : > { %3143 = vpow2.f32 %v2515_v19 }
 0x72f   : > { %3145 = vpow2.f32 %v2516_v20 }
 0x738   : > { %v3144_v25 = vpop.eup %3143 }
 0x739   : > { %v1242_v26 = vadd.f32 1.0, %v3144_v25  ;;  %v3146_v34 = vpop.eup %3145 }
 0x73a   : > { %v1253_v36 = vadd.f32 1.0, %v3146_v34 }
 0x73b   : > { %3147 = vrcp.f32 %v1242_v26 }
 0x73c   : > { %3149 = vrcp.f32 %v1253_v36 }
 0x745   : > { %v3148_v39 = vpop.eup %3147 }
 0x746   : > { %v1258_v40 = vmul.f32 %v3148_v39, %v1257_v38  ;;  %v3150_v42 = vpop.eup %3149 }
 0x747   : > { %v1261_v1 = vsub.f32 1.0, %v3150_v42  ;;  %v1263_v46 = vmul.f32 %v3150_v42, %v3840_v45  ;;  %v4056_v42 = vld [vmem:[%s4546_s3] ss:$0 sm:$0xff] }
 0x748   : > { %v1259_v41 = vadd.f32 %v1258_v40, %v1256_v37 }
 0x74a   : > { %3151 = vtanh.f32 %v1259_v41  ;;  %v1378_v41 = vunpack.c.h.bf16 %v3989_v35 }
 0x754   : > { %v3152_v43 = vpop.eup %3151 }
 0x755   : > { %v1262_v44 = vmul.f32 %v3152_v43, %v1261_v1 }
 0x757   : > { %v3994_v30 = vadd.f32 %v1263_v46, %v1262_v44 }
 0x759   : > { %v1277_v7 = vpack.c.bf16 %v3994_v30, %v3994_v30 }
 0x75b   : > { %1311 = vmatmul.mubr.bf16.vlgmr.msra.gmra.mrb[28].mxu0 %v1277_v7  ;;  %2857 = vmatmul.mubr.bf16.vlgmr.msra.gmra.mrb[28].mxu1 %v1277_v7 }
 0x75c   : > { %1401 = vmatpush1.bf16.msra.mxu0 %v3847_v47  ;;  %2861 = vmatpush3.bf16.msra.mxu1 %v3853_v48 }
 0x75d   : > { %1402 = vmatprep.subr.bf16.mxu0 %v3859_v49  ;;  %2862 = vmatprep.subr.bf16.mxu1 %v3320_v3 }
 0x75e   : > { %1432 = vmatprep.mubr.bf16.mxu0 %v3321_v4  ;;  %2876 = vmatprep.mubr.msk.bf16.mxu1 %vm3322_vm0, %v3320_v3 }
 0x760   : > { %1403 = vmatpush1.bf16.msra.mxu0 %v3869_v50  ;;  %2863 = vmatpush3.bf16.msra.mxu1 %v3875_v52 }
 0x761   : > { %1404 = vmatprep.subr.bf16.mxu0 %v3881_v55  ;;  %2864 = vmatprep.subr.bf16.mxu1 %v3320_v3 }
 0x764   : > { %1405 = vmatpush1.bf16.msra.mxu0 %v3888_v56  ;;  %2865 = vmatpush3.bf16.msra.mxu1 %v3894_v57 }
 0x765   : > { %1406 = vmatprep.subr.bf16.mxu0 %v3900_v58  ;;  %2866 = vmatprep.subr.bf16.mxu1 %v3320_v3 }
 0x768   : > { %1407 = vmatpush1.bf16.msra.mxu0 %v3907_v59  ;;  %2867 = vmatpush3.bf16.msra.mxu1 %v3913_v60 }
 0x769   : > { %1408 = vmatprep.subr.bf16.mxu0 %v3919_v61  ;;  %2868 = vmatprep.subr.bf16.mxu1 %v3320_v3 }
 0x76c   : > { %1409 = vmatpush1.bf16.msra.mxu0 %v3926_v62  ;;  %2869 = vmatpush3.bf16.msra.mxu1 %v3932_v63 }
 0x76d   : > { %1410 = vmatprep.subr.bf16.mxu0 %v3938_v0  ;;  %2870 = vmatprep.subr.bf16.mxu1 %v3320_v3 }
 0x770   : > { %1411 = vmatpush1.bf16.msra.mxu0 %v3945_v54  ;;  %2871 = vmatpush3.bf16.msra.mxu1 %v4025_v53 }
 0x771   : > { %1412 = vmatprep.subr.bf16.mxu0 %v3952_v32  ;;  %2872 = vmatprep.subr.bf16.mxu1 %v3320_v3 }
 0x774   : > { %1413 = vmatpush1.bf16.msra.mxu0 %v3959_v33  ;;  %2873 = vmatpush3.bf16.msra.mxu1 %v4034_v8 }
 0x775   : > { %1414 = vmatprep.subr.bf16.mxu0 %v3966_v28  ;;  %2874 = vmatprep.subr.bf16.mxu1 %v3320_v3 }
 0x778   : > { %1415 = vmatpush1.bf16.msra.mxu0 %v3973_v5  ;;  %2875 = vmatpush3.bf16.msra.mxu1 %v4043_v9 }
 0x779   : > { %1522 = vmatprep.subr.bf16.mxu0 %v3829_v2  ;;  %2880 = vmatprep.subr.bf16.mxu1 %v3320_v3 }
 0x82e   : > { %v1312_v14 = vpop.f32.mrb[28].mxu0  ;;  %v1353_v15 = vpop.f32.mrb[28].mxu1 }
 0x82f   : > { %v1360_v18 = vadd.f32 %v1359_v13, %v1312_v14  ;;  %v1314_v19 = vpop.f32.mrb[29].mxu0  ;;  %v2858_v21 = vpop.f32.mrb[29].mxu1  ;;  %v1379_v1 = vadd.f32 %v4056_v42, %v1353_v15  ;;  %v1632_v14 = vstv %s1631_s8 }
 0x830   : > { %v1316_v23 = vpop.f32.mrb[30].mxu0  ;;  %v1356_v24 = vpop.f32.mrb[30].mxu1  ;;  %v1371_v34 = vadd.f32 %v1370_v16, %v1314_v19  ;;  %vm1633_vm10 = vcmp.eq.s32.totalorder %v3983_v6, %v1632_v14  ;;  %v2521_v16 = vld [vmem:[%s3373_s24 + $0x60] sm:$0xff] }
 0x831   : > { %v2519_v20 = vmul.f32 -1.442695, %v1360_v18  ;;  %v1317_v25 = vpop.f32.mrb[31].mxu0  ;;  %v2859_v26 = vpop.f32.mrb[31].mxu1  ;;  %v1634_v15 = vsel %vm1633_vm10, 1, %v3321_v4  ;;  %v1490_v18 = vrot.slane %v2521_v16, 4  ;;  %v1481_v19 = vunpack.c.l.bf16 %v2521_v16 }
 0x832   : > { %v2520_v36 = vmul.f32 -1.442695, %v1371_v34  ;;  %1636 = vperm.xlu1 %3050, %v1634_v15  }
 0x833   : > { %3153 = vpow2.f32 %v2519_v20  ;;  %v1492_v24 = vunpack.c.l.bf16 %v1490_v18 }
 0x834   : > { %3155 = vpow2.f32 %v2520_v36 }
 0x83d   : > { %v3154_v37 = vpop.eup %3153 }
 0x83e   : > { %v1364_v38 = vadd.f32 1.0, %v3154_v37  ;;  %v3156_v39 = vpop.eup %3155 }
 0x83f   : > { %v1375_v40 = vadd.f32 1.0, %v3156_v39 }
 0x840   : > { %3157 = vrcp.f32 %v1364_v38 }
 0x841   : > { %3159 = vrcp.f32 %v1375_v40 }
 0x84a   : > { %v3158_v43 = vpop.eup %3157 }
 0x84b   : > { %v1380_v44 = vmul.f32 %v3158_v43, %v1379_v1  ;;  %v3160_v7 = vpop.eup %3159 }
 0x84c   : > { %v1383_v10 = vsub.f32 1.0, %v3160_v7  ;;  %v1385_v12 = vmul.f32 %v3160_v7, %v3994_v30 }
 0x84d   : > { %v1381_v46 = vadd.f32 %v1380_v44, %v1378_v41 }
 0x84f   : > { %3161 = vtanh.f32 %v1381_v46  ;;  %v4104_v46 = vld [vmem:[%s3373_s24 + $0x68] ss:$12 sps:$4 sm:$0xff]  }
 0x859   : > { %v3162_v31 = vpop.eup %3161 }
 0x85a   : > { %v1384_v11 = vmul.f32 %v3162_v31, %v1383_v10  ;;  %v1500_v10 = vunpack.c.l.bf16 %v4104_v46 }
 0x85c   : > { %v4060_v13 = vadd.f32 %v1385_v12, %v1384_v11 }
 0x85e   : > { %v1399_v35 = vpack.c.bf16 %v4060_v13, %v4060_v13 }
 0x860   : > { %1433 = vmatmul.mubr.bf16.vlgmr.msra.gmra.mrb[32].mxu0 %v1399_v35  ;;  %2877 = vmatmul.mubr.bf16.vlgmr.msra.gmra.mrb[32].mxu1 %v1399_v35 }
 0x861   : > { %1523 = vmatpush1.bf16.msra.mxu0 %v3847_v47  ;;  %2881 = vmatpush3.bf16.msra.mxu1 %v3853_v48 }
 0x862   : > { %1524 = vmatprep.subr.bf16.mxu0 %v3859_v49  ;;  %2882 = vmatprep.subr.bf16.mxu1 %v3320_v3 }
 0x863   : > { %1554 = vmatprep.mubr.bf16.mxu0 %v3321_v4  ;;  %2896 = vmatprep.mubr.msk.bf16.mxu1 %vm3322_vm0, %v3320_v3 }
 0x865   : > { %1525 = vmatpush1.bf16.msra.mxu0 %v3869_v50  ;;  %2883 = vmatpush3.bf16.msra.mxu1 %v3875_v52 }
 0x866   : > { %1526 = vmatprep.subr.bf16.mxu0 %v3881_v55  ;;  %2884 = vmatprep.subr.bf16.mxu1 %v3320_v3 }
 0x869   : > { %1527 = vmatpush1.bf16.msra.mxu0 %v3888_v56  ;;  %2885 = vmatpush3.bf16.msra.mxu1 %v3894_v57 }
 0x86a   : > { %1528 = vmatprep.subr.bf16.mxu0 %v3900_v58  ;;  %2886 = vmatprep.subr.bf16.mxu1 %v3320_v3 }
 0x86d   : > { %1529 = vmatpush1.bf16.msra.mxu0 %v3907_v59  ;;  %2887 = vmatpush3.bf16.msra.mxu1 %v3913_v60 }
 0x86e   : > { %1530 = vmatprep.subr.bf16.mxu0 %v3919_v61  ;;  %2888 = vmatprep.subr.bf16.mxu1 %v3320_v3 }
 0x871   : > { %1531 = vmatpush1.bf16.msra.mxu0 %v3926_v62  ;;  %2889 = vmatpush3.bf16.msra.mxu1 %v3932_v63 }
 0x872   : > { %1532 = vmatprep.subr.bf16.mxu0 %v3938_v0  ;;  %2890 = vmatprep.subr.bf16.mxu1 %v3320_v3 }
 0x875   : > { %1533 = vmatpush1.bf16.msra.mxu0 %v3945_v54  ;;  %2891 = vmatpush3.bf16.msra.mxu1 %v4025_v53 }
 0x876   : > { %1534 = vmatprep.subr.bf16.mxu0 %v3952_v32  ;;  %2892 = vmatprep.subr.bf16.mxu1 %v3320_v3 }
 0x879   : > { %1535 = vmatpush1.bf16.msra.mxu0 %v3959_v33  ;;  %2893 = vmatpush3.bf16.msra.mxu1 %v4034_v8 }
 0x87a   : > { %1536 = vmatprep.subr.bf16.mxu0 %v3966_v28  ;;  %2894 = vmatprep.subr.bf16.mxu1 %v3320_v3 }
 0x87d   : > { %1537 = vmatpush1.bf16.msra.mxu0 %v3973_v5  ;;  %2895 = vmatpush3.bf16.msra.mxu1 %v4043_v9 }
 0x87e   : > { %1644 = vmatprep.subr.bf16.mxu0 %v3829_v2  ;;  %2900 = vmatprep.subr.bf16.mxu1 %v3320_v3 }
 0x933   : > { %v1434_v21 = vpop.f32.mrb[32].mxu0  ;;  %v1475_v23 = vpop.f32.mrb[32].mxu1 }
 0x934   : > { %v1482_v20 = vadd.f32 %v1481_v19, %v1434_v21  ;;  %v1436_v25 = vpop.f32.mrb[33].mxu0  ;;  %v2878_v26 = vpop.f32.mrb[33].mxu1  ;;  %v1501_v31 = vadd.f32 %v4056_v42, %v1475_v23  ;;  %v1754_v23 = vstv %s1753_s9 }
 0x935   : > { %v1438_v34 = vpop.f32.mrb[34].mxu0  ;;  %v1478_v36 = vpop.f32.mrb[34].mxu1  ;;  %v1493_v40 = vadd.f32 %v1492_v24, %v1436_v25  ;;  %vm1755_vm11 = vcmp.eq.s32.totalorder %v3983_v6, %v1754_v23  ;;  %v2525_v25 = vld [vmem:[%s3373_s24 + $0x6c] sm:$0xff] }
 0x936   : > { %v2523_v37 = vmul.f32 -1.442695, %v1482_v20  ;;  %v1439_v38 = vpop.f32.mrb[35].mxu0  ;;  %v2879_v39 = vpop.f32.mrb[35].mxu1  ;;  %v1756_v20 = vsel %vm1755_vm11, 1, %v3321_v4  ;;  %v1612_v26 = vrot.slane %v2525_v25, 4  ;;  %v1603_v34 = vunpack.c.l.bf16 %v2525_v25 }
 0x937   : > { %v2524_v41 = vmul.f32 -1.442695, %v1493_v40  ;;  %1758 = vperm.xlu0 %3049, %v1756_v20  }
 0x938   : > { %3163 = vpow2.f32 %v2523_v37  ;;  %v1614_v38 = vunpack.c.l.bf16 %v1612_v26 }
 0x939   : > { %3165 = vpow2.f32 %v2524_v41 }
 0x942   : > { %v3164_v1 = vpop.eup %3163 }
 0x943   : > { %v1486_v43 = vadd.f32 1.0, %v3164_v1  ;;  %v3166_v44 = vpop.eup %3165 }
 0x944   : > { %v1497_v7 = vadd.f32 1.0, %v3166_v44 }
 0x945   : > { %3167 = vrcp.f32 %v1486_v43 }
 0x946   : > { %3169 = vrcp.f32 %v1497_v7 }
 0x94f   : > { %v3168_v11 = vpop.eup %3167 }
 0x950   : > { %v1502_v12 = vmul.f32 %v3168_v11, %v1501_v31  ;;  %v3170_v14 = vpop.eup %3169 }
 0x951   : > { %v1505_v15 = vsub.f32 1.0, %v3170_v14  ;;  %v1507_v19 = vmul.f32 %v3170_v14, %v4060_v13 }
 0x952   : > { %v1503_v35 = vadd.f32 %v1502_v12, %v1500_v10 }
 0x954   : > { %3171 = vtanh.f32 %v1503_v35 }
 0x95e   : > { %v3172_v16 = vpop.eup %3171 }
 0x95f   : > { %v1506_v18 = vmul.f32 %v3172_v16, %v1505_v15  ;;  %v1622_v16 = vunpack.c.h.bf16 %v4104_v46  ;;  %v1876_v46 = vstv %s1875_s10 }
 0x960   : > { %vm1877_vm12 = vcmp.eq.s32.totalorder %v3983_v6, %v1876_v46 }
 0x961   : > { %v4109_v21 = vadd.f32 %v1507_v19, %v1506_v18 }
 0x963   : > { %v1521_v24 = vpack.c.bf16 %v4109_v21, %v4109_v21 }
 0x965   : > { %1555 = vmatmul.mubr.bf16.vlgmr.msra.gmra.mrb[36].mxu0 %v1521_v24  ;;  %2897 = vmatmul.mubr.bf16.vlgmr.msra.gmra.mrb[36].mxu1 %v1521_v24 }
 0x966   : > { %1645 = vmatpush1.bf16.msra.mxu0 %v3847_v47  ;;  %2901 = vmatpush3.bf16.msra.mxu1 %v3853_v48 }
 0x967   : > { %1646 = vmatprep.subr.bf16.mxu0 %v3859_v49  ;;  %2902 = vmatprep.subr.bf16.mxu1 %v3320_v3 }
 0x968   : > { %1676 = vmatprep.mubr.bf16.mxu0 %v3321_v4  ;;  %2916 = vmatprep.mubr.msk.bf16.mxu1 %vm3322_vm0, %v3320_v3 }
 0x96a   : > { %1647 = vmatpush1.bf16.msra.mxu0 %v3869_v50  ;;  %2903 = vmatpush3.bf16.msra.mxu1 %v3875_v52 }
 0x96b   : > { %1648 = vmatprep.subr.bf16.mxu0 %v3881_v55  ;;  %2904 = vmatprep.subr.bf16.mxu1 %v3320_v3 }
 0x96e   : > { %1649 = vmatpush1.bf16.msra.mxu0 %v3888_v56  ;;  %2905 = vmatpush3.bf16.msra.mxu1 %v3894_v57 }
 0x96f   : > { %1650 = vmatprep.subr.bf16.mxu0 %v3900_v58  ;;  %2906 = vmatprep.subr.bf16.mxu1 %v3320_v3 }
 0x972   : > { %1651 = vmatpush1.bf16.msra.mxu0 %v3907_v59  ;;  %2907 = vmatpush3.bf16.msra.mxu1 %v3913_v60 }
 0x973   : > { %1652 = vmatprep.subr.bf16.mxu0 %v3919_v61  ;;  %2908 = vmatprep.subr.bf16.mxu1 %v3320_v3 }
 0x976   : > { %1653 = vmatpush1.bf16.msra.mxu0 %v3926_v62  ;;  %2909 = vmatpush3.bf16.msra.mxu1 %v3932_v63 }
 0x977   : > { %1654 = vmatprep.subr.bf16.mxu0 %v3938_v0  ;;  %2910 = vmatprep.subr.bf16.mxu1 %v3320_v3 }
 0x97a   : > { %1655 = vmatpush1.bf16.msra.mxu0 %v3945_v54  ;;  %2911 = vmatpush3.bf16.msra.mxu1 %v4025_v53 }
 0x97b   : > { %1656 = vmatprep.subr.bf16.mxu0 %v3952_v32  ;;  %2912 = vmatprep.subr.bf16.mxu1 %v3320_v3 }
 0x97e   : > { %1657 = vmatpush1.bf16.msra.mxu0 %v3959_v33  ;;  %2913 = vmatpush3.bf16.msra.mxu1 %v4034_v8 }
 0x97f   : > { %1658 = vmatprep.subr.bf16.mxu0 %v3966_v28  ;;  %2914 = vmatprep.subr.bf16.mxu1 %v3320_v3 }
 0x982   : > { %1659 = vmatpush1.bf16.msra.mxu0 %v3973_v5  ;;  %2915 = vmatpush3.bf16.msra.mxu1 %v4043_v9 }
 0x983   : > { %1766 = vmatprep.subr.bf16.mxu0 %v3829_v2  ;;  %2920 = vmatprep.subr.bf16.mxu1 %v3320_v3 }
 0xa38   : > { %v1556_v36 = vpop.f32.mrb[36].mxu0  ;;  %v1597_v37 = vpop.f32.mrb[36].mxu1 }
 0xa39   : > { %v1604_v39 = vadd.f32 %v1603_v34, %v1556_v36  ;;  %v1558_v40 = vpop.f32.mrb[37].mxu0  ;;  %v2898_v41 = vpop.f32.mrb[37].mxu1  ;;  %v1623_v18 = vadd.f32 %v4056_v42, %v1597_v37  ;;  %v1878_v37 = vsel %vm1877_vm12, 1, %v3321_v4 }
 0xa3a   : > { %v1560_v1 = vpop.f32.mrb[38].mxu0  ;;  %v1600_v43 = vpop.f32.mrb[38].mxu1  ;;  %v1615_v31 = vadd.f32 %v1614_v38, %v1558_v40  ;;  %1880 = vperm.xlu1 %3050, %v1878_v37   ;;  %v2529_v40 = vld [vmem:[%s3373_s24 + $0x78] sm:$0xff] }
 0xa3b   : > { %v2527_v44 = vmul.f32 -1.442695, %v1604_v39  ;;  %v1561_v7 = vpop.f32.mrb[39].mxu0  ;;  %v2899_v10 = vpop.f32.mrb[39].mxu1  ;;  %v1734_v41 = vrot.slane %v2529_v40, 4  ;;  %v1725_v1 = vunpack.c.l.bf16 %v2529_v40 }
 0xa3c   : > { %v2528_v11 = vmul.f32 -1.442695, %v1615_v31 }
 0xa3d   : > { %3173 = vpow2.f32 %v2527_v44  ;;  %v1736_v7 = vunpack.c.l.bf16 %v1734_v41 }
 0xa3e   : > { %3175 = vpow2.f32 %v2528_v11 }
 0xa47   : > { %v3174_v12 = vpop.eup %3173 }
 0xa48   : > { %v1608_v35 = vadd.f32 1.0, %v3174_v12  ;;  %v3176_v14 = vpop.eup %3175 }
 0xa49   : > { %v1619_v15 = vadd.f32 1.0, %v3176_v14 }
 0xa4a   : > { %3177 = vrcp.f32 %v1608_v35 }
 0xa4b   : > { %3179 = vrcp.f32 %v1619_v15 }
 0xa54   : > { %v3178_v19 = vpop.eup %3177 }
 0xa55   : > { %v1624_v24 = vmul.f32 %v3178_v19, %v1623_v18  ;;  %v3180_v20 = vpop.eup %3179 }
 0xa56   : > { %v1627_v25 = vsub.f32 1.0, %v3180_v20  ;;  %v1629_v36 = vmul.f32 %v3180_v20, %v4109_v21 }
 0xa57   : > { %v1625_v23 = vadd.f32 %v1624_v24, %v1622_v16 }
 0xa59   : > { %3181 = vtanh.f32 %v1625_v23 }
 0xa63   : > { %v3182_v26 = vpop.eup %3181 }
 0xa64   : > { %v1628_v34 = vmul.f32 %v3182_v26, %v1627_v25  ;;  %v4199_v25 = vld [vmem:[%s3373_s24 + $0x80] ss:$12 sps:$4 sm:$0xff]  }
 0xa66   : > { %v4155_v38 = vadd.f32 %v1629_v36, %v1628_v34  ;;  %v1744_v34 = vunpack.c.l.bf16 %v4199_v25 }
 0xa68   : > { %v1643_v39 = vpack.c.bf16 %v4155_v38, %v4155_v38 }
 0xa6a   : > { %1677 = vmatmul.mubr.bf16.vlgmr.msra.gmra.mrb[40].mxu0 %v1643_v39  ;;  %2917 = vmatmul.mubr.bf16.vlgmr.msra.gmra.mrb[40].mxu1 %v1643_v39 }
 0xa6b   : > { %1767 = vmatpush1.bf16.msra.mxu0 %v3847_v47  ;;  %2921 = vmatpush3.bf16.msra.mxu1 %v3853_v48 }
 0xa6c   : > { %1768 = vmatprep.subr.bf16.mxu0 %v3859_v49  ;;  %2922 = vmatprep.subr.bf16.mxu1 %v3320_v3 }
 0xa6d   : > { %1798 = vmatprep.mubr.bf16.mxu0 %v3321_v4  ;;  %2936 = vmatprep.mubr.msk.bf16.mxu1 %vm3322_vm0, %v3320_v3 }
 0xa6f   : > { %1769 = vmatpush1.bf16.msra.mxu0 %v3869_v50  ;;  %2923 = vmatpush3.bf16.msra.mxu1 %v3875_v52 }
 0xa70   : > { %1770 = vmatprep.subr.bf16.mxu0 %v3881_v55  ;;  %2924 = vmatprep.subr.bf16.mxu1 %v3320_v3 }
 0xa73   : > { %1771 = vmatpush1.bf16.msra.mxu0 %v3888_v56  ;;  %2925 = vmatpush3.bf16.msra.mxu1 %v3894_v57 }
 0xa74   : > { %1772 = vmatprep.subr.bf16.mxu0 %v3900_v58  ;;  %2926 = vmatprep.subr.bf16.mxu1 %v3320_v3 }
 0xa77   : > { %1773 = vmatpush1.bf16.msra.mxu0 %v3907_v59  ;;  %2927 = vmatpush3.bf16.msra.mxu1 %v3913_v60 }
 0xa78   : > { %1774 = vmatprep.subr.bf16.mxu0 %v3919_v61  ;;  %2928 = vmatprep.subr.bf16.mxu1 %v3320_v3 }
 0xa7b   : > { %1775 = vmatpush1.bf16.msra.mxu0 %v3926_v62  ;;  %2929 = vmatpush3.bf16.msra.mxu1 %v3932_v63 }
 0xa7c   : > { %1776 = vmatprep.subr.bf16.mxu0 %v3938_v0  ;;  %2930 = vmatprep.subr.bf16.mxu1 %v3320_v3 }
 0xa7f   : > { %1777 = vmatpush1.bf16.msra.mxu0 %v3945_v54  ;;  %2931 = vmatpush3.bf16.msra.mxu1 %v4025_v53 }
 0xa80   : > { %1778 = vmatprep.subr.bf16.mxu0 %v3952_v32  ;;  %2932 = vmatprep.subr.bf16.mxu1 %v3320_v3 }
 0xa83   : > { %1779 = vmatpush1.bf16.msra.mxu0 %v3959_v33  ;;  %2933 = vmatpush3.bf16.msra.mxu1 %v4034_v8 }
 0xa84   : > { %1780 = vmatprep.subr.bf16.mxu0 %v3966_v28  ;;  %2934 = vmatprep.subr.bf16.mxu1 %v3320_v3 }
 0xa87   : > { %1781 = vmatpush1.bf16.msra.mxu0 %v3973_v5  ;;  %2935 = vmatpush3.bf16.msra.mxu1 %v4043_v9 }
 0xa88   : > { %1888 = vmatprep.subr.bf16.mxu0 %v3829_v2  ;;  %2940 = vmatprep.subr.bf16.mxu1 %v3320_v3 }
 0xb3d   : > { %v1678_v43 = vpop.f32.mrb[40].mxu0  ;;  %v1719_v44 = vpop.f32.mrb[40].mxu1 }
 0xb3e   : > { %v1726_v10 = vadd.f32 %v1725_v1, %v1678_v43  ;;  %v1680_v31 = vpop.f32.mrb[41].mxu0  ;;  %v2918_v11 = vpop.f32.mrb[41].mxu1  ;;  %v1745_v36 = vadd.f32 %v4056_v42, %v1719_v44  ;;  %v1998_v44 = vstv %s1997_s11 }
 0xb3f   : > { %v1682_v12 = vpop.f32.mrb[42].mxu0  ;;  %v1722_v35 = vpop.f32.mrb[42].mxu1  ;;  %v1737_v18 = vadd.f32 %v1736_v7, %v1680_v31  ;;  %vm1999_vm13 = vcmp.eq.s32.totalorder %v3983_v6, %v1998_v44 }
 0xb40   : > { %v2531_v14 = vmul.f32 -1.442695, %v1726_v10  ;;  %v1683_v15 = vpop.f32.mrb[43].mxu0  ;;  %v2919_v16 = vpop.f32.mrb[43].mxu1  ;;  %v2000_v11 = vsel %vm1999_vm13, 1, %v3321_v4  ;;  %v2533_v12 = vld [vmem:[%s3373_s24 + $0x84] sm:$0xff] }
 0xb41   : > { %v2532_v19 = vmul.f32 -1.442695, %v1737_v18  ;;  %2002 = vperm.xlu0 %3049, %v2000_v11   ;;  %v1856_v35 = vrot.slane %v2533_v12, 4 }
 0xb42   : > { %3183 = vpow2.f32 %v2531_v14  ;;  %v1847_v14 = vunpack.c.l.bf16 %v2533_v12 }
 0xb43   : > { %3185 = vpow2.f32 %v2532_v19  ;;  %v1858_v18 = vunpack.c.l.bf16 %v1856_v35 }
 0xb4c   : > { %v3184_v24 = vpop.eup %3183 }
 0xb4d   : > { %v1730_v23 = vadd.f32 1.0, %v3184_v24  ;;  %v3186_v20 = vpop.eup %3185 }
 0xb4e   : > { %v1741_v26 = vadd.f32 1.0, %v3186_v20 }
 0xb4f   : > { %3187 = vrcp.f32 %v1730_v23 }
 0xb50   : > { %3189 = vrcp.f32 %v1741_v26 }
 0xb59   : > { %v3188_v39 = vpop.eup %3187 }
 0xb5a   : > { %v1746_v46 = vmul.f32 %v3188_v39, %v1745_v36  ;;  %v3190_v40 = vpop.eup %3189 }
 0xb5b   : > { %v1749_v41 = vsub.f32 1.0, %v3190_v40  ;;  %v1751_v7 = vmul.f32 %v3190_v40, %v4155_v38 }
 0xb5c   : > { %v1747_v37 = vadd.f32 %v1746_v46, %v1744_v34 }
 0xb5e   : > { %3191 = vtanh.f32 %v1747_v37 }
 0xb68   : > { %v3192_v1 = vpop.eup %3191 }
 0xb69   : > { %v1750_v43 = vmul.f32 %v3192_v1, %v1749_v41 }
 0xb6b   : > { %v4204_v10 = vadd.f32 %v1751_v7, %v1750_v43  ;;  %v1866_v43 = vunpack.c.h.bf16 %v4199_v25 }
 0xb6d   : > { %v1765_v31 = vpack.c.bf16 %v4204_v10, %v4204_v10 }
 0xb6f   : > { %1799 = vmatmul.mubr.bf16.vlgmr.msra.gmra.mrb[44].mxu0 %v1765_v31  ;;  %2937 = vmatmul.mubr.bf16.vlgmr.msra.gmra.mrb[44].mxu1 %v1765_v31 }
 0xb70   : > { %1889 = vmatpush1.bf16.msra.mxu0 %v3847_v47  ;;  %2941 = vmatpush3.bf16.msra.mxu1 %v3853_v48 }
 0xb71   : > { %1890 = vmatprep.subr.bf16.mxu0 %v3859_v49  ;;  %2942 = vmatprep.subr.bf16.mxu1 %v3320_v3 }
 0xb72   : > { %1920 = vmatprep.mubr.bf16.mxu0 %v3321_v4  ;;  %2956 = vmatprep.mubr.msk.bf16.mxu1 %vm3322_vm0, %v3320_v3 }
 0xb74   : > { %1891 = vmatpush1.bf16.msra.mxu0 %v3869_v50  ;;  %2943 = vmatpush3.bf16.msra.mxu1 %v3875_v52 }
 0xb75   : > { %1892 = vmatprep.subr.bf16.mxu0 %v3881_v55  ;;  %2944 = vmatprep.subr.bf16.mxu1 %v3320_v3 }
 0xb78   : > { %1893 = vmatpush1.bf16.msra.mxu0 %v3888_v56  ;;  %2945 = vmatpush3.bf16.msra.mxu1 %v3894_v57 }
 0xb79   : > { %1894 = vmatprep.subr.bf16.mxu0 %v3900_v58  ;;  %2946 = vmatprep.subr.bf16.mxu1 %v3320_v3 }
 0xb7c   : > { %1895 = vmatpush1.bf16.msra.mxu0 %v3907_v59  ;;  %2947 = vmatpush3.bf16.msra.mxu1 %v3913_v60 }
 0xb7d   : > { %1896 = vmatprep.subr.bf16.mxu0 %v3919_v61  ;;  %2948 = vmatprep.subr.bf16.mxu1 %v3320_v3 }
 0xb80   : > { %1897 = vmatpush1.bf16.msra.mxu0 %v3926_v62  ;;  %2949 = vmatpush3.bf16.msra.mxu1 %v3932_v63 }
 0xb81   : > { %1898 = vmatprep.subr.bf16.mxu0 %v3938_v0  ;;  %2950 = vmatprep.subr.bf16.mxu1 %v3320_v3 }
 0xb84   : > { %1899 = vmatpush1.bf16.msra.mxu0 %v3945_v54  ;;  %2951 = vmatpush3.bf16.msra.mxu1 %v4025_v53 }
 0xb85   : > { %1900 = vmatprep.subr.bf16.mxu0 %v3952_v32  ;;  %2952 = vmatprep.subr.bf16.mxu1 %v3320_v3 }
 0xb88   : > { %1901 = vmatpush1.bf16.msra.mxu0 %v3959_v33  ;;  %2953 = vmatpush3.bf16.msra.mxu1 %v4034_v8 }
 0xb89   : > { %1902 = vmatprep.subr.bf16.mxu0 %v3966_v28  ;;  %2954 = vmatprep.subr.bf16.mxu1 %v3320_v3 }
 0xb8c   : > { %1903 = vmatpush1.bf16.msra.mxu0 %v3973_v5  ;;  %2955 = vmatpush3.bf16.msra.mxu1 %v4043_v9 }
 0xb8d   : > { %2010 = vmatprep.subr.bf16.mxu0 %v3829_v2  ;;  %2960 = vmatprep.subr.bf16.mxu1 %v3320_v3 }
 0xc42   : > { %v1800_v15 = vpop.f32.mrb[44].mxu0  ;;  %v1841_v16 = vpop.f32.mrb[44].mxu1 }
 0xc43   : > { %v1848_v19 = vadd.f32 %v1847_v14, %v1800_v15  ;;  %v1802_v24 = vpop.f32.mrb[45].mxu0  ;;  %v2938_v23 = vpop.f32.mrb[45].mxu1  ;;  %v1867_v7 = vadd.f32 %v4056_v42, %v1841_v16  ;;  %v4299_v16 = vld [vmem:[%s3373_s24 + $0x98] ss:$12 sps:$4 sm:$0xff]  }
 0xc44   : > { %v1804_v20 = vpop.f32.mrb[46].mxu0  ;;  %v1844_v2 = vpop.f32.mrb[46].mxu1  ;;  %v1859_v39 = vadd.f32 %v1858_v18, %v1802_v24 }
 0xc45   : > { %v2535_v26 = vmul.f32 -1.442695, %v1848_v19  ;;  %v1805_v34 = vpop.f32.mrb[47].mxu0  ;;  %v2939_v36 = vpop.f32.mrb[47].mxu1  ;;  %v1988_v20 = vunpack.c.l.bf16 %v4299_v16 }
 0xc46   : > { %v2536_v46 = vmul.f32 -1.442695, %v1859_v39 }
 0xc47   : > { %3193 = vpow2.f32 %v2535_v26 }
 0xc48   : > { %3195 = vpow2.f32 %v2536_v46 }
 0xc51   : > { %v3194_v37 = vpop.eup %3193 }
 0xc52   : > { %v1852_v40 = vadd.f32 1.0, %v3194_v37  ;;  %v3196_v41 = vpop.eup %3195 }
 0xc53   : > { %v1863_v1 = vadd.f32 1.0, %v3196_v41 }
 0xc54   : > { %3197 = vrcp.f32 %v1852_v40 }
 0xc55   : > { %3199 = vrcp.f32 %v1863_v1 }
 0xc5e   : > { %v3198_v31 = vpop.eup %3197 }
 0xc5f   : > { %v1868_v44 = vmul.f32 %v3198_v31, %v1867_v7  ;;  %v3200_v12 = vpop.eup %3199  ;;  %v4311_v7 = vld [vmem:[%s4545_s2] ss:$12 sps:$4 sm:$0xff]   ;;  %v4317_v31 = vld [vmem:[%s4545_s2 + $0x8] ss:$12 sps:$4 sm:$0xff]  }
 0xc60   : > { %v1871_v35 = vsub.f32 1.0, %v3200_v12  ;;  %v1873_v18 = vmul.f32 %v3200_v12, %v4204_v10  ;;  %v4339_v12 = vld [vmem:[%s4545_s2 + $0x20] ss:$12 sps:$4 sm:$0xff]  }
 0xc61   : > { %v1869_v11 = vadd.f32 %v1868_v44, %v1866_v43  ;;  %v4323_v44 = vld [vmem:[%s4545_s2 + $0x1c] ss:$12 sps:$4 sm:$0xff]  }
 0xc63   : > { %3201 = vtanh.f32 %v1869_v11  ;;  %v4333_v11 = vld [vmem:[%s4545_s2 + $0x18] ss:$12 sps:$4 sm:$0xff]  }
 0xc6d   : > { %v3202_v14 = vpop.eup %3201 }
 0xc6e   : > { %v1872_v15 = vmul.f32 %v3202_v14, %v1871_v35  ;;  %v4345_v35 = vld [vmem:[%s4545_s2 + $0x34] ss:$12 sps:$4 sm:$0xff]   ;;  %v4352_v14 = vld [vmem:[%s4545_s2 + $0x30] ss:$12 sps:$4 sm:$0xff]  }
 0xc70   : > { %v4250_v19 = vadd.f32 %v1873_v18, %v1872_v15  ;;  %v4358_v15 = vld [vmem:[%s4545_s2 + $0x38] ss:$12 sps:$4 sm:$0xff]  }
 0xc71   : > { %v4364_v18 = vld [vmem:[%s4545_s2 + $0x4c] ss:$12 sps:$4 sm:$0xff]  }
 0xc72   : > { %v1887_v24 = vpack.c.bf16 %v4250_v19, %v4250_v19 }
 0xc74   : > { %1921 = vmatmul.mubr.bf16.vlgmr.msra.gmra.mrb[48].mxu0 %v1887_v24  ;;  %2957 = vmatmul.mubr.bf16.vlgmr.msra.gmra.mrb[48].mxu1 %v1887_v24  ;;  %v4371_v24 = vld [vmem:[%s4545_s2 + $0x48] ss:$12 sps:$4 sm:$0xff]  }
 0xc75   : > { %2011 = vmatpush1.bf16.msra.mxu0 %v3847_v47  ;;  %2961 = vmatpush3.bf16.msra.mxu1 %v3853_v48  ;;  %v4290_v47 = vld [vmem:[%s4545_s2 + $0x4] ss:$12 sps:$4 sm:$0xff]   ;;  %v2120_v48 = vstv %s2119_s14 }
 0xc76   : > { %2012 = vmatprep.subr.bf16.mxu0 %v3859_v49  ;;  %2962 = vmatprep.subr.bf16.mxu1 %v3320_v3  ;;  %vm2121_vm14 = vcmp.eq.s32.totalorder %v3983_v6, %v2120_v48  ;;  %v4377_v48 = vld [vmem:[%s4545_s2 + $0x50] ss:$12 sps:$4 sm:$0xff]  }
 0xc77   : > { %2042 = vmatprep.mubr.bf16.mxu0 %v3321_v4  ;;  %2976 = vmatprep.mubr.msk.bf16.mxu1 %vm3322_vm0, %v3320_v3  ;;  %v2122_v49 = vsel %vm2121_vm14, 1, %v3321_v4 }
 0xc78   : > { %2124 = vperm.xlu1 %3050, %v2122_v49   ;;  %v4383_v49 = vld [vmem:[%s4545_s2 + $0x64] ss:$12 sps:$4 sm:$0xff]  }
 0xc79   : > { %2013 = vmatpush1.bf16.msra.mxu0 %v3869_v50  ;;  %2963 = vmatpush3.bf16.msra.mxu1 %v3875_v52  ;;  %v2537_v50 = vld [vmem:[%s3373_s24 + $0x90] sm:$0xff] }
 0xc7a   : > { %2014 = vmatprep.subr.bf16.mxu0 %v3881_v55  ;;  %2964 = vmatprep.subr.bf16.mxu1 %v3320_v3  ;;  %v1978_v52 = vrot.slane %v2537_v50, 4  ;;  %v1969_v55 = vunpack.c.l.bf16 %v2537_v50  ;;  %v4390_v50 = vld [vmem:[%s4545_s2 + $0x60] ss:$12 sps:$4 sm:$0xff]  }
 0xc7d   : > { %2015 = vmatpush1.bf16.msra.mxu0 %v3888_v56  ;;  %2965 = vmatpush3.bf16.msra.mxu1 %v3894_v57 }
 0xc7e   : > { %2016 = vmatprep.subr.bf16.mxu0 %v3900_v58  ;;  %2966 = vmatprep.subr.bf16.mxu1 %v3320_v3  ;;  %v1980_v58 = vunpack.c.l.bf16 %v1978_v52  ;;  %v4396_v52 = vld [vmem:[%s4545_s2 + $0x68] ss:$12 sps:$4 sm:$0xff]  }
 0xc81   : > { %2017 = vmatpush1.bf16.msra.mxu0 %v3907_v59  ;;  %2967 = vmatpush3.bf16.msra.mxu1 %v3913_v60 }
 0xc82   : > { %2018 = vmatprep.subr.bf16.mxu0 %v3919_v61  ;;  %2968 = vmatprep.subr.bf16.mxu1 %v3320_v3 }
 0xc85   : > { %2019 = vmatpush1.bf16.msra.mxu0 %v3926_v62  ;;  %2969 = vmatpush3.bf16.msra.mxu1 %v3932_v63 }
 0xc86   : > { %2020 = vmatprep.subr.bf16.mxu0 %v3938_v0  ;;  %2970 = vmatprep.subr.bf16.mxu1 %v3320_v3 }
 0xc89   : > { %2021 = vmatpush1.bf16.msra.mxu0 %v3945_v54  ;;  %2971 = vmatpush3.bf16.msra.mxu1 %v4025_v53 }
 0xc8a   : > { %2022 = vmatprep.subr.bf16.mxu0 %v3952_v32  ;;  %2972 = vmatprep.subr.bf16.mxu1 %v3320_v3 }
 0xc8d   : > { %2023 = vmatpush1.bf16.msra.mxu0 %v3959_v33  ;;  %2973 = vmatpush3.bf16.msra.mxu1 %v4034_v8 }
 0xc8e   : > { %2024 = vmatprep.subr.bf16.mxu0 %v3966_v28  ;;  %2974 = vmatprep.subr.bf16.mxu1 %v3320_v3 }
 0xc91   : > { %2025 = vmatpush1.bf16.msra.mxu0 %v3973_v5  ;;  %2975 = vmatpush3.bf16.msra.mxu1 %v4043_v9 }
 0xc92   : > { %2132 = vmatprep.subr.bf16.mxu0 %v4290_v47  ;;  %2980 = vmatprep.subr.bf16.mxu1 %v3320_v3 }
 0xd47   : > { %v1922_v56 = vpop.f32.mrb[48].mxu0  ;;  %v1963_v57 = vpop.f32.mrb[48].mxu1 }
 0xd48   : > { %v1970_v59 = vadd.f32 %v1969_v55, %v1922_v56  ;;  %v1924_v60 = vpop.f32.mrb[49].mxu0  ;;  %v2958_v61 = vpop.f32.mrb[49].mxu1  ;;  %v1989_v2 = vadd.f32 %v4056_v42, %v1963_v57  ;;  %v4402_v55 = vld [vmem:[%s4545_s2 + $0x7c] ss:$12 sps:$4 sm:$0xff]   ;;  %v4409_v56 = vld [vmem:[%s4545_s2 + $0x78] ss:$12 sps:$4 sm:$0xff]  }
 0xd49   : > { %v1926_v62 = vpop.f32.mrb[50].mxu0  ;;  %v1966_v63 = vpop.f32.mrb[50].mxu1  ;;  %v1981_v33 = vadd.f32 %v1980_v58, %v1924_v60  ;;  %v4416_v57 = vld [vmem:[%s4545_s2 + $0x94] ss:$12 sps:$4 sm:$0xff]   ;;  %v4423_v58 = vld [vmem:[%s4545_s2 + $0x90] ss:$12 sps:$4 sm:$0xff]  }
 0xd4a   : > { %v2539_v0 = vmul.f32 -1.442695, %v1970_v59  ;;  %v1927_v54 = vpop.f32.mrb[51].mxu0  ;;  %v2959_v32 = vpop.f32.mrb[51].mxu1  ;;  %v4437_v59 = vld [vmem:[%s4545_s2 + $0xa8] ss:$12 sps:$4 sm:$0xff]  }
 0xd4b   : > { %v2540_v28 = vmul.f32 -1.442695, %v1981_v33  ;;  %v4447_v60 = vld [vmem:[%s4543_s0] sm:$0xff] }
 0xd4c   : > { %3203 = vpow2.f32 %v2539_v0  ;;  %v2541_v62 = vld [vmem:[%s3373_s24 + $0x9c] sm:$0xff] }
 0xd4d   : > { %3205 = vpow2.f32 %v2540_v28  ;;  %v2100_v63 = vrot.slane %v2541_v62, 4  ;;  %v2091_v0 = vunpack.c.l.bf16 %v2541_v62 }
 0xd56   : > { %v3204_v5 = vpop.eup %3203 }
 0xd57   : > { %v1974_v6 = vadd.f32 1.0, %v3204_v5  ;;  %v3206_v25 = vpop.eup %3205 }
 0xd58   : > { %v1985_v23 = vadd.f32 1.0, %v3206_v25 }
 0xd59   : > { %3207 = vrcp.f32 %v1974_v6 }
 0xd5a   : > { %3209 = vrcp.f32 %v1985_v23 }
 0xd63   : > { %v3208_v26 = vpop.eup %3207 }
 0xd64   : > { %v1990_v34 = vmul.f32 %v3208_v26, %v1989_v2  ;;  %v3210_v39 = vpop.eup %3209 }
 0xd65   : > { %v1993_v46 = vsub.f32 1.0, %v3210_v39  ;;  %v1995_v41 = vmul.f32 %v3210_v39, %v4250_v19 }
 0xd66   : > { %v1991_v36 = vadd.f32 %v1990_v34, %v1988_v20 }
 0xd68   : > { %3211 = vtanh.f32 %v1991_v36 }
 0xd72   : > { %v3212_v37 = vpop.eup %3211 }
 0xd73   : > { %v1994_v40 = vmul.f32 %v3212_v37, %v1993_v46  ;;  %v2110_v37 = vunpack.c.h.bf16 %v4299_v16  ;;  %v3292_v16 = vld [vmem:[%s4545_s2 + $0x98] ss:$12 sps:$4 sm:$0xff]  }
 0xd75   : > { %v4304_v1 = vadd.f32 %v1995_v41, %v1994_v40 }
 0xd77   : > { %v2009_v43 = vpack.c.bf16 %v4304_v1, %v4304_v1 }
 0xd79   : > { %2043 = vmatmul.mubr.bf16.vlgmr.msra.gmra.mrb[52].mxu0 %v2009_v43  ;;  %2977 = vmatmul.mubr.bf16.vlgmr.msra.gmra.mrb[52].mxu1 %v2009_v43 }
 0xd7a   : > { %2133 = vmatpush1.bf16.msra.mxu0 %v4311_v7  ;;  %2981 = vmatpush3.bf16.msra.mxu1 %v4317_v31 }
 0xd7b   : > { %2134 = vmatprep.subr.bf16.mxu0 %v4323_v44  ;;  %2982 = vmatprep.subr.bf16.mxu1 %v3320_v3 }
 0xd7c   : > { %2164 = vmatprep.mubr.bf16.mxu0 %v3321_v4  ;;  %2996 = vmatprep.mubr.msk.bf16.mxu1 %vm3322_vm0, %v3320_v3 }
 0xd7e   : > { %2135 = vmatpush1.bf16.msra.mxu0 %v4333_v11  ;;  %2983 = vmatpush3.bf16.msra.mxu1 %v4339_v12 }
 0xd7f   : > { %2136 = vmatprep.subr.bf16.mxu0 %v4345_v35  ;;  %2984 = vmatprep.subr.bf16.mxu1 %v3320_v3 }
 0xd82   : > { %2137 = vmatpush1.bf16.msra.mxu0 %v4352_v14  ;;  %2985 = vmatpush3.bf16.msra.mxu1 %v4358_v15 }
 0xd83   : > { %2138 = vmatprep.subr.bf16.mxu0 %v4364_v18  ;;  %2986 = vmatprep.subr.bf16.mxu1 %v3320_v3 }
 0xd86   : > { %2139 = vmatpush1.bf16.msra.mxu0 %v4371_v24  ;;  %2987 = vmatpush3.bf16.msra.mxu1 %v4377_v48 }
 0xd87   : > { %2140 = vmatprep.subr.bf16.mxu0 %v4383_v49  ;;  %2988 = vmatprep.subr.bf16.mxu1 %v3320_v3 }
 0xd8a   : > { %2141 = vmatpush1.bf16.msra.mxu0 %v4390_v50  ;;  %2989 = vmatpush3.bf16.msra.mxu1 %v4396_v52 }
 0xd8b   : > { %2142 = vmatprep.subr.bf16.mxu0 %v4402_v55  ;;  %2990 = vmatprep.subr.bf16.mxu1 %v3320_v3 }
 0xd8e   : > { %2143 = vmatpush1.bf16.msra.mxu0 %v4409_v56  ;;  %2991 = vmatpush3.bf16.msra.mxu1 %v4025_v53  ;;  %v4430_v53 = vld [vmem:[%s4545_s2 + $0xac] ss:$12 sps:$4 sm:$0xff]  }
 0xd8f   : > { %2144 = vmatprep.subr.bf16.mxu0 %v4416_v57  ;;  %2992 = vmatprep.subr.bf16.mxu1 %v3320_v3 }
 0xd92   : > { %2145 = vmatpush1.bf16.msra.mxu0 %v4423_v58  ;;  %2993 = vmatpush3.bf16.msra.mxu1 %v4034_v8  ;;  %v2242_v8 = vstv %s2241_s13 }
 0xd93   : > { %2146 = vmatprep.subr.bf16.mxu0 %v4430_v53  ;;  %2994 = vmatprep.subr.bf16.mxu1 %v3320_v3  ;;  %vm2243_vm15 = vcmp.eq.s32.totalorder %v4447_v60, %v2242_v8 }
 0xd94   : > { %v2244_v61 = vsel %vm2243_vm15, 1, %v3321_v4 }
 0xd95   : > { %2246 = vperm.xlu0 %3049, %v2244_v61  }
 0xd96   : > { %2147 = vmatpush1.bf16.msra.mxu0 %v4437_v59  ;;  %2995 = vmatpush3.bf16.msra.mxu1 %v4043_v9 }
 0xd97   : > { %2254 = vmatprep.subr.bf16.mxu0 %v4290_v47  ;;  %3000 = vmatprep.subr.bf16.mxu1 %v3320_v3  ;;  %v2102_v47 = vunpack.c.l.bf16 %v2100_v63 }
 0xe4c   : > { %v2044_v9 = vpop.f32.mrb[52].mxu0  ;;  %v2085_v54 = vpop.f32.mrb[52].mxu1 }
 0xe4d   : > { %v2092_v32 = vadd.f32 %v2091_v0, %v2044_v9  ;;  %v2046_v33 = vpop.f32.mrb[53].mxu0  ;;  %v2978_v28 = vpop.f32.mrb[53].mxu1  ;;  %v2111_v40 = vadd.f32 %v4056_v42, %v2085_v54  ;;  %v3291_v42 = vld [vmem:[%s4545_s2 + $0x80] ss:$12 sps:$4 sm:$0xff]  }
 0xe4e   : > { %v2048_v5 = vpop.f32.mrb[54].mxu0  ;;  %v2088_v6 = vpop.f32.mrb[54].mxu1  ;;  %v2103_v2 = vadd.f32 %v2102_v47, %v2046_v33  ;;  %v3294_v28 = vld [vmem:[%s4546_s3] ss:$0 sm:$0xff] }
 0xe4f   : > { %v2543_v25 = vmul.f32 -1.442695, %v2092_v32  ;;  %v2049_v23 = vpop.f32.mrb[55].mxu0  ;;  %v2979_v20 = vpop.f32.mrb[55].mxu1 }
 0xe50   : > { %v2544_v26 = vmul.f32 -1.442695, %v2103_v2 }
 0xe51   : > { %3213 = vpow2.f32 %v2543_v25 }
 0xe52   : > { %3215 = vpow2.f32 %v2544_v26 }
 0xe5b   : > { %v3214_v34 = vpop.eup %3213 }
 0xe5c   : > { %v2096_v36 = vadd.f32 1.0, %v3214_v34  ;;  %v3216_v39 = vpop.eup %3215 }
 0xe5d   : > { %v2107_v46 = vadd.f32 1.0, %v3216_v39 }
 0xe5e   : > { %3217 = vrcp.f32 %v2096_v36 }
 0xe5f   : > { %3219 = vrcp.f32 %v2107_v46 }
 0xe68   : > { %v3218_v41 = vpop.eup %3217 }
 0xe69   : > { %v2112_v43 = vmul.f32 %v3218_v41, %v2111_v40  ;;  %v3220_v61 = vpop.eup %3219 }
 0xe6a   : > { %v2115_v62 = vsub.f32 1.0, %v3220_v61  ;;  %v2117_v9 = vmul.f32 %v3220_v61, %v4304_v1 }
 0xe6b   : > { %v2113_v8 = vadd.f32 %v2112_v43, %v2110_v37  ;;  %v2549_v37 = vld [vmem:[%s3373_s24 + $0xb4] sm:$0xff] }
 0xe6c   : > { %v2344_v40 = vrot.slane %v2549_v37, 4  ;;  %v2335_v41 = vunpack.c.l.bf16 %v2549_v37 }
 0xe6d   : > { %3221 = vtanh.f32 %v2113_v8 }
 0xe6e   : > { %v2346_v61 = vunpack.c.l.bf16 %v2344_v40 }
 0xe77   : > { %v3222_v63 = vpop.eup %3221 }
 0xe78   : > { %v2116_v0 = vmul.f32 %v3222_v63, %v2115_v62 }
 0xe7a   : > { %v4455_v47 = vadd.f32 %v2117_v9, %v2116_v0 }
 0xe7c   : > { %v2131_v32 = vpack.c.bf16 %v4455_v47, %v4455_v47 }
 0xe7e   : > { %2165 = vmatmul.mubr.bf16.vlgmr.msra.gmra.mrb[56].mxu0 %v2131_v32  ;;  %2997 = vmatmul.mubr.bf16.vlgmr.msra.gmra.mrb[56].mxu1 %v2131_v32 }
 0xe7f   : > { %2255 = vmatpush1.bf16.msra.mxu0 %v4311_v7  ;;  %3001 = vmatpush3.bf16.msra.mxu1 %v4317_v31  ;;  %v3293_v7 = vld [vmem:[%s4545_s2 + $0xb0] ss:$12 sps:$4 sm:$0xff]   ;;  %v2364_v31 = vstv %s2363_s27 }
 0xe80   : > { %2256 = vmatprep.subr.bf16.mxu0 %v4323_v44  ;;  %3002 = vmatprep.subr.bf16.mxu1 %v3320_v3 }
 0xe81   : > { %2286 = vmatprep.mubr.bf16.mxu0 %v3321_v4  ;;  %3016 = vmatprep.mubr.msk.bf16.mxu1 %vm3322_vm0, %v3320_v3  ;;  %vm2365_vm0 = vcmp.eq.s32.totalorder %v4447_v60, %v2364_v31  ;;  %v2546_v60 = vld [vmem:[%s3373_s24 + $0xb0] ss:$12 sps:$4 sm:$0xff]  }
 0xe82   : > { %v2366_v44 = vsel %vm2365_vm0, 1, %v3321_v4  ;;  %v2232_v33 = vunpack.c.l.bf16 %v2546_v60 }
 0xe83   : > { %2257 = vmatpush1.bf16.msra.mxu0 %v4333_v11  ;;  %3003 = vmatpush3.bf16.msra.mxu1 %v4339_v12  ;;  %v2545_v11 = vld [vmem:[%s3373_s24 + $0xa8] sm:$0xff] }
 0xe84   : > { %2258 = vmatprep.subr.bf16.mxu0 %v4345_v35  ;;  %3004 = vmatprep.subr.bf16.mxu1 %v3320_v3  ;;  %v2222_v12 = vrot.slane %v2545_v11, 4  ;;  %v2213_v35 = vunpack.c.l.bf16 %v2545_v11  ;;  %v539_v11 = vpop.permute.xlu0 %538 }
 0xe85   : > { %2368 = vperm.xlu1 %3050, %v2366_v44   ;;  %vm540_vm1 = vcmp.eq.s32.totalorder %v539_v11, 1 }
 0xe87   : > { %2259 = vmatpush1.bf16.msra.mxu0 %v4352_v14  ;;  %3005 = vmatpush3.bf16.msra.mxu1 %v4358_v15 }
 0xe88   : > { %2260 = vmatprep.subr.bf16.mxu0 %v4364_v18  ;;  %3006 = vmatprep.subr.bf16.mxu1 %v3320_v3 }
 0xe8b   : > { %2261 = vmatpush1.bf16.msra.mxu0 %v4371_v24  ;;  %3007 = vmatpush3.bf16.msra.mxu1 %v4377_v48 }
 0xe8c   : > { %2262 = vmatprep.subr.bf16.mxu0 %v4383_v49  ;;  %3008 = vmatprep.subr.bf16.mxu1 %v3320_v3 }
 0xe8f   : > { %2263 = vmatpush1.bf16.msra.mxu0 %v4390_v50  ;;  %3009 = vmatpush3.bf16.msra.mxu1 %v4396_v52 }
 0xe90   : > { %2264 = vmatprep.subr.bf16.mxu0 %v4402_v55  ;;  %3010 = vmatprep.subr.bf16.mxu1 %v3320_v3 }
 0xe93   : > { %2265 = vmatpush1.bf16.msra.mxu0 %v4409_v56  ;;  %3011 = vmatpush3.bf16.msra.mxu1 %v3291_v42 }
 0xe94   : > { %2266 = vmatprep.subr.bf16.mxu0 %v4416_v57  ;;  %3012 = vmatprep.subr.bf16.mxu1 %v3320_v3 }
 0xe97   : > { %2267 = vmatpush1.bf16.msra.mxu0 %v4423_v58  ;;  %3013 = vmatpush3.bf16.msra.mxu1 %v3292_v16 }
 0xe98   : > { %2268 = vmatprep.subr.bf16.mxu0 %v4430_v53  ;;  %3014 = vmatprep.subr.bf16.mxu1 %v3320_v3  ;;  %v2224_v3 = vunpack.c.l.bf16 %v2222_v12 }
 0xe9b   : > { %2269 = vmatpush1.bf16.msra.mxu0 %v4437_v59  ;;  %3015 = vmatpush3.bf16.msra.mxu1 %v3293_v7 }
 0xf51   : > { %v2166_v14 = vpop.f32.mrb[56].mxu0  ;;  %v2207_v15 = vpop.f32.mrb[56].mxu1 }
 0xf52   : > { %v2214_v18 = vadd.f32 %v2213_v35, %v2166_v14  ;;  %v2168_v24 = vpop.f32.mrb[57].mxu0  ;;  %v2998_v48 = vpop.f32.mrb[57].mxu1  ;;  %v2233_v5 = vadd.f32 %v3294_v28, %v2207_v15 }
 0xf53   : > { %v2170_v49 = vpop.f32.mrb[58].mxu0  ;;  %v2210_v50 = vpop.f32.mrb[58].mxu1  ;;  %v2225_v57 = vadd.f32 %v2224_v3, %v2168_v24 }
 0xf54   : > { %v2547_v52 = vmul.f32 -1.442695, %v2214_v18  ;;  %v2171_v55 = vpop.f32.mrb[59].mxu0  ;;  %v2999_v56 = vpop.f32.mrb[59].mxu1 }
 0xf55   : > { %v2548_v58 = vmul.f32 -1.442695, %v2225_v57  ;;  %v783_v35 = vpop.permute.xlu1 %782  ;;  %v661_v15 = vpop.permute.xlu0 %660 }
 0xf56   : > { %3223 = vpow2.f32 %v2547_v52  ;;  %v2354_v52 = vunpack.c.h.bf16 %v2546_v60  ;;  %vm662_vm2 = vcmp.eq.s32.totalorder %v661_v15, 1  ;;  %vm784_vm3 = vcmp.eq.s32.totalorder %v783_v35, 1 }
 0xf57   : > { %3225 = vpow2.f32 %v2548_v58 }
 0xf59   : > { %v905_v3 = vpop.permute.xlu1 %904  ;;  %v1027_v18 = vpop.permute.xlu0 %1026 }
 0xf5a   : > { %vm906_vm4 = vcmp.eq.s32.totalorder %v905_v3, 1  ;;  %vm1028_vm5 = vcmp.eq.s32.totalorder %v1027_v18, 1 }
 0xf5d   : > { %v1149_v48 = vpop.permute.xlu1 %1148  ;;  %v1271_v49 = vpop.permute.xlu0 %1270 }
 0xf5e   : > { %vm1150_vm6 = vcmp.eq.s32.totalorder %v1149_v48, 1  ;;  %vm1272_vm7 = vcmp.eq.s32.totalorder %v1271_v49, 1 }
 0xf60   : > { %v3224_v4 = vpop.eup %3223 }
 0xf61   : > { %v2218_v53 = vadd.f32 1.0, %v3224_v4  ;;  %v3226_v59 = vpop.eup %3225  ;;  %v1393_v57 = vpop.permute.xlu1 %1392 }
 0xf62   : > { %v2229_v54 = vadd.f32 1.0, %v3226_v59  ;;  %v1515_v58 = vpop.permute.xlu0 %1514  ;;  %vm1394_vm8 = vcmp.eq.s32.totalorder %v1393_v57, 1 }
 0xf63   : > { %3227 = vrcp.f32 %v2218_v53  ;;  %v287_v53 = vld [vmem:[%s4547_s4] sm:$0xff]  ;;  %vm1516_vm9 = vcmp.eq.s32.totalorder %v1515_v58, 1 }
 0xf64   : > { %3229 = vrcp.f32 %v2229_v54 }
 0xf65   : > { %v1637_v54 = vpop.permute.xlu1 %1636 }
 0xf66   : > { %vm1638_vm10 = vcmp.eq.s32.totalorder %v1637_v54, 1 }
 0xf6d   : > { %v3228_v6 = vpop.eup %3227 }
 0xf6e   : > { %v2234_v25 = vmul.f32 %v3228_v6, %v2233_v5  ;;  %v3230_v20 = vpop.eup %3229  ;;  %v1759_v5 = vpop.permute.xlu0 %1758 }
 0xf6f   : > { %v2237_v2 = vsub.f32 1.0, %v3230_v20  ;;  %v2239_v36 = vmul.f32 %v3230_v20, %v4455_v47  ;;  %vm1760_vm11 = vcmp.eq.s32.totalorder %v1759_v5, 1 }
 0xf70   : > { %v2235_v23 = vadd.f32 %v2234_v25, %v2232_v33  ;;  %v541_v33 = vsel %vm540_vm1, %v3599_v22, %v287_v53  ;;  %v1881_v25 = vpop.permute.xlu1 %1880 }
 0xf71   : > { %v663_v60 = vsel %vm662_vm2, %v3645_v17, %v541_v33  ;;  %vm1882_vm12 = vcmp.eq.s32.totalorder %v1881_v25, 1 }
 0xf72   : > { %3231 = vtanh.f32 %v2235_v23  ;;  %v2003_v20 = vpop.permute.xlu0 %2002 }
 0xf73   : > { %vm2004_vm13 = vcmp.eq.s32.totalorder %v2003_v20, 1 }
 0xf7c   : > { %v3232_v26 = vpop.eup %3231 }
 0xf7d   : > { %v2238_v34 = vmul.f32 %v3232_v26, %v2237_v2 }
 0xf7f   : > { %v4507_v39 = vadd.f32 %v2239_v36, %v2238_v34 }
 0xf81   : > { %v2253_v46 = vpack.c.bf16 %v4507_v39, %v4507_v39 }
 0xf83   : > { %2287 = vmatmul.mubr.bf16.vlgmr.msra.gmra.mrb[60].mxu0 %v2253_v46  ;;  %3017 = vmatmul.mubr.bf16.vlgmr.msra.gmra.mrb[60].mxu1 %v2253_v46 }
0x1056   : > { %v2288_v43 = vpop.f32.mrb[60].mxu0  ;;  %v2329_v8 = vpop.f32.mrb[60].mxu1 }
0x1057   : > { %v2336_v62 = vadd.f32 %v2335_v41, %v2288_v43  ;;  %v2290_v63 = vpop.f32.mrb[61].mxu0  ;;  %v3018_v0 = vpop.f32.mrb[61].mxu1  ;;  %v2355_v55 = vadd.f32 %v3294_v28, %v2329_v8  ;;  %v785_v28 = vsel %vm784_vm3, %v3694_v29, %v663_v60 }
0x1058   : > { %v2292_v9 = vpop.f32.mrb[62].mxu0  ;;  %v2332_v32 = vpop.f32.mrb[62].mxu1  ;;  %v2347_v31 = vadd.f32 %v2346_v61, %v2290_v63  ;;  %v907_v6 = vsel %vm906_vm4, %v3740_v27, %v785_v28 }
0x1059   : > { %v2551_v42 = vmul.f32 -1.442695, %v2336_v62  ;;  %v2293_v16 = vpop.f32.mrb[63].mxu0  ;;  %v3019_v7 = vpop.f32.mrb[63].mxu1  ;;  %v1029_v23 = vsel %vm1028_vm5, %v3789_v51, %v907_v6 }
0x105a   : > { %v2552_v44 = vmul.f32 -1.442695, %v2347_v31  ;;  %v1151_v2 = vsel %vm1150_vm6, %v3840_v45, %v1029_v23  ;;  %v2125_v29 = vpop.permute.xlu1 %2124  ;;  %v2247_v27 = vpop.permute.xlu0 %2246 }
0x105b   : > { %3233 = vpow2.f32 %v2551_v42  ;;  %v1273_v26 = vsel %vm1272_vm7, %v3994_v30, %v1151_v2  ;;  %vm2126_vm14 = vcmp.eq.s32.totalorder %v2125_v29, 1  ;;  %vm2248_vm15 = vcmp.eq.s32.totalorder %v2247_v27, 1 }
0x105c   : > { %3235 = vpow2.f32 %v2552_v44  ;;  %v1395_v17 = vsel %vm1394_vm8, %v4060_v13, %v1273_v26 }
0x105d   : > { %v1517_v34 = vsel %vm1516_vm9, %v4109_v21, %v1395_v17 }
0x105e   : > { %v1639_v36 = vsel %vm1638_vm10, %v4155_v38, %v1517_v34  ;;  %v2369_v30 = vpop.permute.xlu1 %2368 }
0x105f   : > { %v1761_v45 = vsel %vm1760_vm11, %v4204_v10, %v1639_v36  ;;  %vm2370_vm0 = vcmp.eq.s32.totalorder %v2369_v30, 1 }
0x1060   : > { %v1883_v37 = vsel %vm1882_vm12, %v4250_v19, %v1761_v45 }
0x1061   : > { %v2005_v41 = vsel %vm2004_vm13, %v4304_v1, %v1883_v37 }
0x1062   : > { %v2127_v21 = vsel %vm2126_vm14, %v4455_v47, %v2005_v41 }
0x1063   : > { %v2249_v38 = vsel %vm2248_vm15, %v4507_v39, %v2127_v21 }
0x1065   : > { %v3234_v12 = vpop.eup %3233 }
0x1066   : > { %v2340_v14 = vadd.f32 1.0, %v3234_v12  ;;  %v3236_v24 = vpop.eup %3235 }
0x1067   : > { %v2351_v50 = vadd.f32 1.0, %v3236_v24 }
0x1068   : > { %3237 = vrcp.f32 %v2340_v14 }
0x1069   : > { %3239 = vrcp.f32 %v2351_v50 }
0x1072   : > { %v3238_v56 = vpop.eup %3237 }
0x1073   : > { %v2356_v4 = vmul.f32 %v3238_v56, %v2355_v55  ;;  %v3240_v22 = vpop.eup %3239 }
0x1074   : > { %v2359_v51 = vsub.f32 1.0, %v3240_v22  ;;  %v2361_v13 = vmul.f32 %v3240_v22, %v4507_v39 }
0x1075   : > { %v2357_v59 = vadd.f32 %v2356_v4, %v2354_v52 }
0x1077   : > { %3241 = vtanh.f32 %v2357_v59 }
0x1081   : > { %v3242_v46 = vpop.eup %3241 }
0x1082   : > { %v2360_v40 = vmul.f32 %v3242_v46, %v2359_v51 }
0x1084   : > { %v2362_v43 = vadd.f32 %v2361_v13, %v2360_v40 }
0x1086   : > { %v2371_v8 = vsel %vm2370_vm0, %v2362_v43, %v2249_v38  ;;  %2372 = vst [vmem:[#allocation2] sm:$0xff] %v2362_v43 }
0x1087   : > { %2373 = vst [vmem:[%s4547_s4] sm:$0xff] %v2371_v8 }
0x1088 PF: > { %s14_s17 = sadd.s32 1, %s3317_s17   ;;  %s4548_s15 = smov %s3313_s16 }
0x1089   : > { %p11_p6 = scmp.ge.s32.totalorder %s14_s17, 4   ;;  %s4549_s16 = smov %s4551_s18 }
0x108b   :  { %13 = sbr.rel (!%p11_p6) target bundleno = 2 (0x2), region = 88 }

</bundles_post_ra>
